<compile_context>
chip_gen: v5e
topology: v5e:2x2
jax: 0.10.0
libtpu: 0.0.40
codegen_flags: <defaults>
</compile_context>

<pallas_src>
import math

import jax
import jax.numpy as jnp
from jax import lax
from jax.experimental import pallas as pl
from jax.experimental.pallas import tpu as pltpu


# ---------------------------------------------------------------------------
# Fused kernel builder
# ---------------------------------------------------------------------------
def _build_fused_kernel(*, P, W1, W2, H2, xscale, compute_dtype):
    KH = KW = 3

    def kernel(xp0_ref, xp1_ref, xp2_ref, xp3_ref,       # input rows split by (t mod 4)
               w1_ref, b1_ref, w2_ref, b2_ref, wl_ref, bl_ref,
               pe_ref,                                    # PE rows, already sliced (H2, P)
               out_ref):                                  # output (H2, P)
        xph = (xp0_ref[...], xp1_ref[...], xp2_ref[...], xp3_ref[...])
        w1 = w1_ref[...]          # (9, P) f32, row = kh*3 + kw   (C_in = 1)
        b1 = b1_ref[...]          # (1, P) f32
        b2 = b2_ref[...]          # (1, P) f32
        bl = bl_ref[...]          # (1, P) f32

        # ---- conv1 + ReLU: 9-tap VPU accumulation, all math in f32 -----------
        # Rows are produced split by output-time parity so conv2's stride-2
        # access below becomes plain contiguous slices (no strided reads).
        def conv1_rows(parity, count):
            taps = []
            for kh in range(KH):
                r = 2 * parity + kh                 # absolute input-row offset
                q, s = r % 4, r // 4                # phase array, row shift
                taps.append(xph[q][s:s + count, :])             # (count, idim)
            accs = [jnp.zeros((count, P), jnp.float32) for _ in range(W1)]
            for kh in range(KH):
                tap = taps[kh]
                for kw in range(KW):
                    k = KW * kh + kw
                    # Hoisted: one materialized weight-row broadcast per tap,
                    # not one per (tap, f1) inner iteration.
                    w1k = jnp.broadcast_to(w1[k:k + 1, :], (count, P))
                    for f1 in range(W1):
                        col = tap[:, 2 * f1 + kw:2 * f1 + kw + 1]   # (count, 1)
                        accs[f1] = accs[f1] + col * w1k
            return [jnp.maximum(a + b1, 0.0) for a in accs]         # f32

        y1_even = conv1_rows(0, H2 + 1)    # conv1 rows t1 = 0, 2, ..., 2*H2
        y1_odd = conv1_rows(1, H2)         # conv1 rows t1 = 1, 3, ..., 2*H2-1

        # Row-views needed by conv2, sliced and cast to the matmul dtype ONCE.
        top = [y[0:H2, :].astype(compute_dtype) for y in y1_even]       # kh2 == 0
        mid = [y.astype(compute_dtype) for y in y1_odd]                 # kh2 == 1
        bot = [y[1:H2 + 1, :].astype(compute_dtype) for y in y1_even]   # kh2 == 2
        rowsel = (top, mid, bot)

        # ---- conv2 + ReLU: ONE MXU matmul, K = 9*P ----------------------------
        # lhs row  = f2*H2 + t2 ; lhs lane = (kh*3+kw)*P + c
        tap_blocks = []
        for kh in range(KH):
            for kw in range(KW):
                pieces = [rowsel[kh][kw + 2 * f2] for f2 in range(W2)]  # (H2, P) each
                tap_blocks.append(jnp.concatenate(pieces, axis=0))      # (W2*H2, P)
        lhs2 = jnp.concatenate(tap_blocks, axis=1)                      # (W2*H2, 9*P)
        z = jnp.dot(lhs2, w2_ref[...], preferred_element_type=jnp.float32)
        z = jnp.maximum(z + b2, 0.0)                                    # (W2*H2, P) f32

        # ---- Linear(odim*W2 -> odim): ONE MXU matmul, K = W2*P ----------------
        # Freq blocks concatenated along LANES: lhs lane = f2*P + c.
        lhs3 = jnp.concatenate(
            [z[f2 * H2:(f2 + 1) * H2, :] for f2 in range(W2)],
            axis=1).astype(compute_dtype)                               # (H2, W2*P)
        y3 = jnp.dot(lhs3, wl_ref[...], preferred_element_type=jnp.float32) + bl

        # ---- positional-encoding epilogue: x*sqrt(d) + pe ---------------------
        out_ref[...] = y3 * xscale + pe_ref[...]

    return kernel


# ---------------------------------------------------------------------------
# Forward wrapper
# ---------------------------------------------------------------------------
def conv2d_subsampling4_forward(x, params, odim, offset=0):
    """x: (1, 1, T, idim) f32 (NCHW). Returns (out (1,T',odim), pos_emb (1,T',odim))."""
    B, Cin, T, idim = x.shape
    if B != 1 or Cin != 1:
        raise ValueError("Conv2dSubsampling4 forward hard-codes batch=1, C_in=1")
    P = int(params["w2p"].shape[-1])                    # padded channel width (mult of 128)
    H1, W1 = (T - 3) // 2 + 1, (idim - 3) // 2 + 1
    H2, W2 = (H1 - 3) // 2 + 1, (W1 - 3) // 2 + 1
    assert params["w2p"].shape == (9 * P, P)
    assert params["wlp"].shape == (W2 * P, P)
    assert odim <= P
    xscale = math.sqrt(odim)

    # Split input rows by (t mod 4) once in XLA: all stride-2 accesses of both
    # convs then become contiguous slices inside the kernel.
    x2d = x[0, 0]
    xph = tuple(x2d[p::4, :] for p in range(4))
    ph_len = tuple(int(a.shape[0]) for a in xph)
    for parity, count in ((0, H2 + 1), (1, H2)):
        for kh in range(3):
            r = 2 * parity + kh
            assert r // 4 + count <= ph_len[r % 4], "input length T too short"

    # Positional-encoding rows: clamped dynamic_slice in the wrapper (no OOB DMA
    # risk), fed to the kernel for the fused add and reused as pos_emb output.
    pe_rows = lax.dynamic_slice_in_dim(params["pe"], offset, H2, axis=0)   # (H2, P)

    kernel = _build_fused_kernel(
        P=P, W1=W1, W2=W2, H2=H2, xscale=xscale,
        compute_dtype=jnp.dtype(params["w2p"].dtype))

    def full_spec(shape):
        nd = len(shape)
        return pl.BlockSpec(tuple(shape), lambda i, _n=nd: (0,) * _n)

    operands = (*xph, params["w1p"], params["b1"], params["w2p"], params["b2"],
                params["wlp"], params["bl"], pe_rows)
    in_specs = [full_spec(tuple(int(d) for d in a.shape)) for a in operands]

    flops = 2 * ((2 * H2 + 1) * W1 * 9 * P           # conv1 (rows actually computed)
                 + (W2 * H2) * (9 * P) * P           # conv2
                 + H2 * (W2 * P) * P) + 2 * H2 * P   # linear + epilogue
    bytes_accessed = (sum(int(a.size) * a.dtype.itemsize for a in operands)
                      + H2 * P * 4)

    out = pl.pallas_call(
        kernel,
        out_shape=jax.ShapeDtypeStruct((H2, P), jnp.float32),
        grid=(1,),
        in_specs=in_specs,
        out_specs=full_spec((H2, P)),
        compiler_params=pltpu.CompilerParams(
            dimension_semantics=("arbitrary",),
            vmem_limit_bytes=32 * 1024 * 1024),      # explicit: v5e default is 16 MiB
        cost_estimate=pl.CostEstimate(flops=flops, transcendentals=0,
                                      bytes_accessed=bytes_accessed),
    )(*operands)

    # Slice the zero-padded channels back out (lane-dense inside the kernel).
    return out[None, :, :odim], pe_rows[None, :, :odim]


# ---------------------------------------------------------------------------
# Parameters (torch layout) + one-time relayout/padding for the kernel
# ---------------------------------------------------------------------------
def sinusoid_pos_table(max_len, d_model):
    pos = jnp.arange(max_len, dtype=jnp.float32)[:, None]
    div = jnp.exp(jnp.arange(0, d_model, 2, dtype=jnp.float32)
                  * (-math.log(10000.0) / d_model))
    pe = jnp.zeros((max_len, d_model), jnp.float32)
    pe = pe.at[:, 0::2].set(jnp.sin(pos * div))
    pe = pe.at[:, 1::2].set(jnp.cos(pos * div))
    return pe


def init_raw_params(key, idim, odim, max_len=5000):
    k1, k2, k3, k4, k5, k6 = jax.random.split(key, 6)
    f_out = ((idim - 1) // 2 - 1) // 2
    return {
        "w1": jax.random.normal(k1, (odim, 1, 3, 3), jnp.float32) * 0.1,
        "b1": jax.random.normal(k2, (odim,), jnp.float32) * 0.1,
        "w2": jax.random.normal(k3, (odim, odim, 3, 3), jnp.float32) * 0.05,
        "b2": jax.random.normal(k4, (odim,), jnp.float32) * 0.1,
        "wl": jax.random.normal(k5, (odim, odim * f_out), jnp.float32) * 0.05,
        "bl": jax.random.normal(k6, (odim,), jnp.float32) * 0.1,
        "pe": sinusoid_pos_table(max_len, odim),
    }


def preprocess_params(raw, use_bf16_matmul=True):
    """One-time weight relayout + channel padding so the fused kernel consumes
    lane-dense, MXU-folded operands. Element-wise operands stay f32; only the
    matmul weights are (optionally) bf16 (set use_bf16_matmul=False for f32)."""
    O = int(raw["w2"].shape[0])
    f_out = int(raw["wl"].shape[1]) // O
    P = max(128, ((O + 127) // 128) * 128)          # pad channels to multiple of 128
    cdt = jnp.bfloat16 if use_bf16_matmul else jnp.float32

    def pad_lanes(a):
        return jnp.pad(a, [(0, 0)] * (a.ndim - 1) + [(0, P - a.shape[-1])])

    # conv1 weight (C_in=1) as (9, P): row = kh*3 + kw
    w1p = pad_lanes(raw["w1"].reshape(O, 9).T).astype(jnp.float32)
    b1 = pad_lanes(raw["b1"].reshape(1, O)).astype(jnp.float32)

    # conv2 weight folded to (9*P, P): row = (kh*3+kw)*P + c_in, lane = c_out
    w2f = raw["w2"].transpose(2, 3, 1, 0).reshape(9, O, O)          # (k, c, o)
    w2p = jnp.pad(w2f, ((0, 0), (0, P - O), (0, P - O))).reshape(9 * P, P).astype(cdt)
    b2 = pad_lanes(raw["b2"].reshape(1, O)).astype(jnp.float32)

    # linear weight folded to (f_out*P, P): row = f*P + c, lane = o
    # (torch feature order after transpose+reshape is feature = c*f_out + f)
    wlf = raw["wl"].reshape(O, O, f_out).transpose(2, 1, 0)         # (f, c, o)
    wlp = jnp.pad(wlf, ((0, 0), (0, P - O), (0, P - O))).reshape(f_out * P, P).astype(cdt)
    bl = pad_lanes(raw["bl"].reshape(1, O)).astype(jnp.float32)

    pe = pad_lanes(raw["pe"]).astype(jnp.float32)                   # (max_len, P)
    return {"w1p": w1p, "b1": b1, "w2p": w2p, "b2": b2,
            "wlp": wlp, "bl": bl, "pe": pe}


# ---------------------------------------------------------------------------
# Plain-JAX reference (f32, HIGHEST precision) of the PyTorch module
# ---------------------------------------------------------------------------
def reference_forward(x, raw, offset=0):
    odim = raw["b1"].shape[0]
    hp = jax.lax.Precision.HIGHEST
    y = jax.lax.conv_general_dilated(x, raw["w1"], (2, 2), "VALID",
                                     dimension_numbers=("NCHW", "OIHW", "NCHW"),
                                     precision=hp)
    y = jnp.maximum(y + raw["b1"][None, :, None, None], 0.0)
    y = jax.lax.conv_general_dilated(y, raw["w2"], (2, 2), "VALID",
                                     dimension_numbers=("NCHW", "OIHW", "NCHW"),
                                     precision=hp)
    y = jnp.maximum(y + raw["b2"][None, :, None, None], 0.0)     # (1, O, T', F')
    b, c, t2, f2 = y.shape
    y = y.transpose(0, 2, 1, 3).reshape(b, t2, c * f2)           # features = (chan, freq)
    y = jnp.einsum("btk,ok->bto", y, raw["wl"], precision=hp) + raw["bl"]
    pe = jax.lax.dynamic_slice_in_dim(raw["pe"], offset, t2, axis=0)[None]
    return y * math.sqrt(odim) + pe, pe


if __name__ == "__main__":
    # T=67 -> (67-1)//2 = 33 -> (33-1)//2 = 16 output frames, matching the
    # module's hard-coded reshape(1, 16, -1); idim=19 -> 4 freq bins after convs.
    idim, odim, T = 19, 32, 67
    key = jax.random.PRNGKey(0)
    kx, kp = jax.random.split(key)
    x = jax.random.normal(kx, (1, 1, T, idim), jnp.float32)

    raw = init_raw_params(kp, idim, odim)
    params = preprocess_params(raw, use_bf16_matmul=True)

    fwd = jax.jit(conv2d_subsampling4_forward, static_argnames=("odim",))
    out, pos_emb = fwd(x, params, odim=odim)
    jax.block_until_ready((out, pos_emb))

    assert out.shape == (1, 16, odim) and pos_emb.shape == (1, 16, odim)
    ref_out, ref_pos = reference_forward(x, raw, offset=0)
    assert bool(jnp.allclose(pos_emb, ref_pos, rtol=1e-5, atol=1e-5)), "pos_emb mismatch"
    assert bool(jnp.allclose(out, ref_out, rtol=2e-2, atol=5e-2)), \
        f"max abs err {float(jnp.max(jnp.abs(out - ref_out)))}"
    print("KERNEL_OK")
</pallas_src>

<mosaic_0001>
module attributes {stable_mosaic.version = 11 : i64} {
  func.func @kernel(%arg0: i32, %arg1: memref<17x19xf32, #tpu.memory_space<vmem>>, %arg2: memref<17x19xf32, #tpu.memory_space<vmem>>, %arg3: memref<17x19xf32, #tpu.memory_space<vmem>>, %arg4: memref<16x19xf32, #tpu.memory_space<vmem>>, %arg5: memref<9x128xf32, #tpu.memory_space<vmem>>, %arg6: memref<1x128xf32, #tpu.memory_space<vmem>>, %arg7: memref<1152x128xbf16, #tpu.memory_space<vmem>>, %arg8: memref<1x128xf32, #tpu.memory_space<vmem>>, %arg9: memref<512x128xbf16, #tpu.memory_space<vmem>>, %arg10: memref<1x128xf32, #tpu.memory_space<vmem>>, %arg11: memref<16x128xf32, #tpu.memory_space<vmem>>, %arg12: memref<16x128xf32, #tpu.memory_space<vmem>>) attributes {dimension_semantics = [#tpu.dimension_semantics<arbitrary>], iteration_bounds = array<i64: 1>, scalar_prefetch = 0 : i64, scratch_operands = 0 : i64, tpu.core_type = #tpu.core_type<tc>, window_params = [{pipeline_mode = #tpu.pipeline_mode<synchronous>, transform_indices = @transform_0, window_bounds = array<i64: 17, 19>}, {pipeline_mode = #tpu.pipeline_mode<synchronous>, transform_indices = @transform_1, window_bounds = array<i64: 17, 19>}, {pipeline_mode = #tpu.pipeline_mode<synchronous>, transform_indices = @transform_2, window_bounds = array<i64: 17, 19>}, {pipeline_mode = #tpu.pipeline_mode<synchronous>, transform_indices = @transform_3, window_bounds = array<i64: 16, 19>}, {pipeline_mode = #tpu.pipeline_mode<synchronous>, transform_indices = @transform_4, window_bounds = array<i64: 9, 128>}, {pipeline_mode = #tpu.pipeline_mode<synchronous>, transform_indices = @transform_5, window_bounds = array<i64: 1, 128>}, {pipeline_mode = #tpu.pipeline_mode<synchronous>, transform_indices = @transform_6, window_bounds = array<i64: 1152, 128>}, {pipeline_mode = #tpu.pipeline_mode<synchronous>, transform_indices = @transform_7, window_bounds = array<i64: 1, 128>}, {pipeline_mode = #tpu.pipeline_mode<synchronous>, transform_indices = @transform_8, window_bounds = array<i64: 512, 128>}, {pipeline_mode = #tpu.pipeline_mode<synchronous>, transform_indices = @transform_9, window_bounds = array<i64: 1, 128>}, {pipeline_mode = #tpu.pipeline_mode<synchronous>, transform_indices = @transform_10, window_bounds = array<i64: 16, 128>}, {pipeline_mode = #tpu.pipeline_mode<synchronous>, transform_indices = @transform_11, window_bounds = array<i64: 16, 128>}]} {
    %c0 = arith.constant 0 : index
    %c0_0 = arith.constant 0 : index
    %0 = vector.load %arg1[%c0, %c0_0] : memref<17x19xf32, #tpu.memory_space<vmem>>, vector<17x19xf32>
    %c0_1 = arith.constant 0 : index
    %c0_2 = arith.constant 0 : index
    %1 = vector.load %arg2[%c0_1, %c0_2] : memref<17x19xf32, #tpu.memory_space<vmem>>, vector<17x19xf32>
    %c0_3 = arith.constant 0 : index
    %c0_4 = arith.constant 0 : index
    %2 = vector.load %arg3[%c0_3, %c0_4] : memref<17x19xf32, #tpu.memory_space<vmem>>, vector<17x19xf32>
    %c0_5 = arith.constant 0 : index
    %c0_6 = arith.constant 0 : index
    %3 = vector.load %arg4[%c0_5, %c0_6] : memref<16x19xf32, #tpu.memory_space<vmem>>, vector<16x19xf32>
    %c0_7 = arith.constant 0 : index
    %c0_8 = arith.constant 0 : index
    %4 = vector.load %arg5[%c0_7, %c0_8] : memref<9x128xf32, #tpu.memory_space<vmem>>, vector<9x128xf32>
    %c0_9 = arith.constant 0 : index
    %c0_10 = arith.constant 0 : index
    %5 = vector.load %arg6[%c0_9, %c0_10] : memref<1x128xf32, #tpu.memory_space<vmem>>, vector<1x128xf32>
    %c0_11 = arith.constant 0 : index
    %c0_12 = arith.constant 0 : index
    %6 = vector.load %arg8[%c0_11, %c0_12] : memref<1x128xf32, #tpu.memory_space<vmem>>, vector<1x128xf32>
    %c0_13 = arith.constant 0 : index
    %c0_14 = arith.constant 0 : index
    %7 = vector.load %arg10[%c0_13, %c0_14] : memref<1x128xf32, #tpu.memory_space<vmem>>, vector<1x128xf32>
    %cst = arith.constant 0.000000e+00 : f32
    %8 = vector.broadcast %cst : f32 to vector<17x128xf32>
    %cst_15 = arith.constant 0.000000e+00 : f32
    %9 = vector.broadcast %cst_15 : f32 to vector<17x128xf32>
    %cst_16 = arith.constant 0.000000e+00 : f32
    %10 = vector.broadcast %cst_16 : f32 to vector<17x128xf32>
    %cst_17 = arith.constant 0.000000e+00 : f32
    %11 = vector.broadcast %cst_17 : f32 to vector<17x128xf32>
    %cst_18 = arith.constant 0.000000e+00 : f32
    %12 = vector.broadcast %cst_18 : f32 to vector<17x128xf32>
    %cst_19 = arith.constant 0.000000e+00 : f32
    %13 = vector.broadcast %cst_19 : f32 to vector<17x128xf32>
    %cst_20 = arith.constant 0.000000e+00 : f32
    %14 = vector.broadcast %cst_20 : f32 to vector<17x128xf32>
    %cst_21 = arith.constant 0.000000e+00 : f32
    %15 = vector.broadcast %cst_21 : f32 to vector<17x128xf32>
    %cst_22 = arith.constant 0.000000e+00 : f32
    %16 = vector.broadcast %cst_22 : f32 to vector<17x128xf32>
    %17 = vector.extract_strided_slice %4 {offsets = [0, 0], sizes = [1, 128], strides = [1, 1]} : vector<9x128xf32> to vector<1x128xf32>
    %18 = vector.shape_cast %17 : vector<1x128xf32> to vector<1x128xf32>
    %19 = vector.broadcast %18 : vector<1x128xf32> to vector<17x128xf32>
    %20 = vector.extract_strided_slice %0 {offsets = [0, 0], sizes = [17, 1], strides = [1, 1]} : vector<17x19xf32> to vector<17x1xf32>
    %21 = vector.broadcast %20 : vector<17x1xf32> to vector<17x128xf32>
    %22 = arith.mulf %21, %19 : vector<17x128xf32>
    %23 = arith.addf %8, %22 : vector<17x128xf32>
    %24 = vector.extract_strided_slice %0 {offsets = [0, 2], sizes = [17, 1], strides = [1, 1]} : vector<17x19xf32> to vector<17x1xf32>
    %25 = vector.broadcast %24 : vector<17x1xf32> to vector<17x128xf32>
    %26 = arith.mulf %25, %19 : vector<17x128xf32>
    %27 = arith.addf %9, %26 : vector<17x128xf32>
    %28 = vector.extract_strided_slice %0 {offsets = [0, 4], sizes = [17, 1], strides = [1, 1]} : vector<17x19xf32> to vector<17x1xf32>
    %29 = vector.broadcast %28 : vector<17x1xf32> to vector<17x128xf32>
    %30 = arith.mulf %29, %19 : vector<17x128xf32>
    %31 = arith.addf %10, %30 : vector<17x128xf32>
    %32 = vector.extract_strided_slice %0 {offsets = [0, 6], sizes = [17, 1], strides = [1, 1]} : vector<17x19xf32> to vector<17x1xf32>
    %33 = vector.broadcast %32 : vector<17x1xf32> to vector<17x128xf32>
    %34 = arith.mulf %33, %19 : vector<17x128xf32>
    %35 = arith.addf %11, %34 : vector<17x128xf32>
    %36 = vector.extract_strided_slice %0 {offsets = [0, 8], sizes = [17, 1], strides = [1, 1]} : vector<17x19xf32> to vector<17x1xf32>
    %37 = vector.broadcast %36 : vector<17x1xf32> to vector<17x128xf32>
    %38 = arith.mulf %37, %19 : vector<17x128xf32>
    %39 = arith.addf %12, %38 : vector<17x128xf32>
    %40 = vector.extract_strided_slice %0 {offsets = [0, 10], sizes = [17, 1], strides = [1, 1]} : vector<17x19xf32> to vector<17x1xf32>
    %41 = vector.broadcast %40 : vector<17x1xf32> to vector<17x128xf32>
    %42 = arith.mulf %41, %19 : vector<17x128xf32>
    %43 = arith.addf %13, %42 : vector<17x128xf32>
    %44 = vector.extract_strided_slice %0 {offsets = [0, 12], sizes = [17, 1], strides = [1, 1]} : vector<17x19xf32> to vector<17x1xf32>
    %45 = vector.broadcast %44 : vector<17x1xf32> to vector<17x128xf32>
    %46 = arith.mulf %45, %19 : vector<17x128xf32>
    %47 = arith.addf %14, %46 : vector<17x128xf32>
    %48 = vector.extract_strided_slice %0 {offsets = [0, 14], sizes = [17, 1], strides = [1, 1]} : vector<17x19xf32> to vector<17x1xf32>
    %49 = vector.broadcast %48 : vector<17x1xf32> to vector<17x128xf32>
    %50 = arith.mulf %49, %19 : vector<17x128xf32>
    %51 = arith.addf %15, %50 : vector<17x128xf32>
    %52 = vector.extract_strided_slice %0 {offsets = [0, 16], sizes = [17, 1], strides = [1, 1]} : vector<17x19xf32> to vector<17x1xf32>
    %53 = vector.broadcast %52 : vector<17x1xf32> to vector<17x128xf32>
    %54 = arith.mulf %53, %19 : vector<17x128xf32>
    %55 = arith.addf %16, %54 : vector<17x128xf32>
    %56 = vector.extract_strided_slice %4 {offsets = [1, 0], sizes = [1, 128], strides = [1, 1]} : vector<9x128xf32> to vector<1x128xf32>
    %57 = vector.shape_cast %56 : vector<1x128xf32> to vector<1x128xf32>
    %58 = vector.broadcast %57 : vector<1x128xf32> to vector<17x128xf32>
    %59 = vector.extract_strided_slice %0 {offsets = [0, 1], sizes = [17, 1], strides = [1, 1]} : vector<17x19xf32> to vector<17x1xf32>
    %60 = vector.broadcast %59 : vector<17x1xf32> to vector<17x128xf32>
    %61 = arith.mulf %60, %58 : vector<17x128xf32>
    %62 = arith.addf %23, %61 : vector<17x128xf32>
    %63 = vector.extract_strided_slice %0 {offsets = [0, 3], sizes = [17, 1], strides = [1, 1]} : vector<17x19xf32> to vector<17x1xf32>
    %64 = vector.broadcast %63 : vector<17x1xf32> to vector<17x128xf32>
    %65 = arith.mulf %64, %58 : vector<17x128xf32>
    %66 = arith.addf %27, %65 : vector<17x128xf32>
    %67 = vector.extract_strided_slice %0 {offsets = [0, 5], sizes = [17, 1], strides = [1, 1]} : vector<17x19xf32> to vector<17x1xf32>
    %68 = vector.broadcast %67 : vector<17x1xf32> to vector<17x128xf32>
    %69 = arith.mulf %68, %58 : vector<17x128xf32>
    %70 = arith.addf %31, %69 : vector<17x128xf32>
    %71 = vector.extract_strided_slice %0 {offsets = [0, 7], sizes = [17, 1], strides = [1, 1]} : vector<17x19xf32> to vector<17x1xf32>
    %72 = vector.broadcast %71 : vector<17x1xf32> to vector<17x128xf32>
    %73 = arith.mulf %72, %58 : vector<17x128xf32>
    %74 = arith.addf %35, %73 : vector<17x128xf32>
    %75 = vector.extract_strided_slice %0 {offsets = [0, 9], sizes = [17, 1], strides = [1, 1]} : vector<17x19xf32> to vector<17x1xf32>
    %76 = vector.broadcast %75 : vector<17x1xf32> to vector<17x128xf32>
    %77 = arith.mulf %76, %58 : vector<17x128xf32>
    %78 = arith.addf %39, %77 : vector<17x128xf32>
    %79 = vector.extract_strided_slice %0 {offsets = [0, 11], sizes = [17, 1], strides = [1, 1]} : vector<17x19xf32> to vector<17x1xf32>
    %80 = vector.broadcast %79 : vector<17x1xf32> to vector<17x128xf32>
    %81 = arith.mulf %80, %58 : vector<17x128xf32>
    %82 = arith.addf %43, %81 : vector<17x128xf32>
    %83 = vector.extract_strided_slice %0 {offsets = [0, 13], sizes = [17, 1], strides = [1, 1]} : vector<17x19xf32> to vector<17x1xf32>
    %84 = vector.broadcast %83 : vector<17x1xf32> to vector<17x128xf32>
    %85 = arith.mulf %84, %58 : vector<17x128xf32>
    %86 = arith.addf %47, %85 : vector<17x128xf32>
    %87 = vector.extract_strided_slice %0 {offsets = [0, 15], sizes = [17, 1], strides = [1, 1]} : vector<17x19xf32> to vector<17x1xf32>
    %88 = vector.broadcast %87 : vector<17x1xf32> to vector<17x128xf32>
    %89 = arith.mulf %88, %58 : vector<17x128xf32>
    %90 = arith.addf %51, %89 : vector<17x128xf32>
    %91 = vector.extract_strided_slice %0 {offsets = [0, 17], sizes = [17, 1], strides = [1, 1]} : vector<17x19xf32> to vector<17x1xf32>
    %92 = vector.broadcast %91 : vector<17x1xf32> to vector<17x128xf32>
    %93 = arith.mulf %92, %58 : vector<17x128xf32>
    %94 = arith.addf %55, %93 : vector<17x128xf32>
    %95 = vector.extract_strided_slice %4 {offsets = [2, 0], sizes = [1, 128], strides = [1, 1]} : vector<9x128xf32> to vector<1x128xf32>
    %96 = vector.shape_cast %95 : vector<1x128xf32> to vector<1x128xf32>
    %97 = vector.broadcast %96 : vector<1x128xf32> to vector<17x128xf32>
    %98 = vector.extract_strided_slice %0 {offsets = [0, 2], sizes = [17, 1], strides = [1, 1]} : vector<17x19xf32> to vector<17x1xf32>
    %99 = vector.broadcast %98 : vector<17x1xf32> to vector<17x128xf32>
    %100 = arith.mulf %99, %97 : vector<17x128xf32>
    %101 = arith.addf %62, %100 : vector<17x128xf32>
    %102 = vector.extract_strided_slice %0 {offsets = [0, 4], sizes = [17, 1], strides = [1, 1]} : vector<17x19xf32> to vector<17x1xf32>
    %103 = vector.broadcast %102 : vector<17x1xf32> to vector<17x128xf32>
    %104 = arith.mulf %103, %97 : vector<17x128xf32>
    %105 = arith.addf %66, %104 : vector<17x128xf32>
    %106 = vector.extract_strided_slice %0 {offsets = [0, 6], sizes = [17, 1], strides = [1, 1]} : vector<17x19xf32> to vector<17x1xf32>
    %107 = vector.broadcast %106 : vector<17x1xf32> to vector<17x128xf32>
    %108 = arith.mulf %107, %97 : vector<17x128xf32>
    %109 = arith.addf %70, %108 : vector<17x128xf32>
    %110 = vector.extract_strided_slice %0 {offsets = [0, 8], sizes = [17, 1], strides = [1, 1]} : vector<17x19xf32> to vector<17x1xf32>
    %111 = vector.broadcast %110 : vector<17x1xf32> to vector<17x128xf32>
    %112 = arith.mulf %111, %97 : vector<17x128xf32>
    %113 = arith.addf %74, %112 : vector<17x128xf32>
    %114 = vector.extract_strided_slice %0 {offsets = [0, 10], sizes = [17, 1], strides = [1, 1]} : vector<17x19xf32> to vector<17x1xf32>
    %115 = vector.broadcast %114 : vector<17x1xf32> to vector<17x128xf32>
    %116 = arith.mulf %115, %97 : vector<17x128xf32>
    %117 = arith.addf %78, %116 : vector<17x128xf32>
    %118 = vector.extract_strided_slice %0 {offsets = [0, 12], sizes = [17, 1], strides = [1, 1]} : vector<17x19xf32> to vector<17x1xf32>
    %119 = vector.broadcast %118 : vector<17x1xf32> to vector<17x128xf32>
    %120 = arith.mulf %119, %97 : vector<17x128xf32>
    %121 = arith.addf %82, %120 : vector<17x128xf32>
    %122 = vector.extract_strided_slice %0 {offsets = [0, 14], sizes = [17, 1], strides = [1, 1]} : vector<17x19xf32> to vector<17x1xf32>
    %123 = vector.broadcast %122 : vector<17x1xf32> to vector<17x128xf32>
    %124 = arith.mulf %123, %97 : vector<17x128xf32>
    %125 = arith.addf %86, %124 : vector<17x128xf32>
    %126 = vector.extract_strided_slice %0 {offsets = [0, 16], sizes = [17, 1], strides = [1, 1]} : vector<17x19xf32> to vector<17x1xf32>
    %127 = vector.broadcast %126 : vector<17x1xf32> to vector<17x128xf32>
    %128 = arith.mulf %127, %97 : vector<17x128xf32>
    %129 = arith.addf %90, %128 : vector<17x128xf32>
    %130 = vector.extract_strided_slice %0 {offsets = [0, 18], sizes = [17, 1], strides = [1, 1]} : vector<17x19xf32> to vector<17x1xf32>
    %131 = vector.broadcast %130 : vector<17x1xf32> to vector<17x128xf32>
    %132 = arith.mulf %131, %97 : vector<17x128xf32>
    %133 = arith.addf %94, %132 : vector<17x128xf32>
    %134 = vector.extract_strided_slice %4 {offsets = [3, 0], sizes = [1, 128], strides = [1, 1]} : vector<9x128xf32> to vector<1x128xf32>
    %135 = vector.shape_cast %134 : vector<1x128xf32> to vector<1x128xf32>
    %136 = vector.broadcast %135 : vector<1x128xf32> to vector<17x128xf32>
    %137 = vector.extract_strided_slice %1 {offsets = [0, 0], sizes = [17, 1], strides = [1, 1]} : vector<17x19xf32> to vector<17x1xf32>
    %138 = vector.broadcast %137 : vector<17x1xf32> to vector<17x128xf32>
    %139 = arith.mulf %138, %136 : vector<17x128xf32>
    %140 = arith.addf %101, %139 : vector<17x128xf32>
    %141 = vector.extract_strided_slice %1 {offsets = [0, 2], sizes = [17, 1], strides = [1, 1]} : vector<17x19xf32> to vector<17x1xf32>
    %142 = vector.broadcast %141 : vector<17x1xf32> to vector<17x128xf32>
    %143 = arith.mulf %142, %136 : vector<17x128xf32>
    %144 = arith.addf %105, %143 : vector<17x128xf32>
    %145 = vector.extract_strided_slice %1 {offsets = [0, 4], sizes = [17, 1], strides = [1, 1]} : vector<17x19xf32> to vector<17x1xf32>
    %146 = vector.broadcast %145 : vector<17x1xf32> to vector<17x128xf32>
    %147 = arith.mulf %146, %136 : vector<17x128xf32>
    %148 = arith.addf %109, %147 : vector<17x128xf32>
    %149 = vector.extract_strided_slice %1 {offsets = [0, 6], sizes = [17, 1], strides = [1, 1]} : vector<17x19xf32> to vector<17x1xf32>
    %150 = vector.broadcast %149 : vector<17x1xf32> to vector<17x128xf32>
    %151 = arith.mulf %150, %136 : vector<17x128xf32>
    %152 = arith.addf %113, %151 : vector<17x128xf32>
    %153 = vector.extract_strided_slice %1 {offsets = [0, 8], sizes = [17, 1], strides = [1, 1]} : vector<17x19xf32> to vector<17x1xf32>
    %154 = vector.broadcast %153 : vector<17x1xf32> to vector<17x128xf32>
    %155 = arith.mulf %154, %136 : vector<17x128xf32>
    %156 = arith.addf %117, %155 : vector<17x128xf32>
    %157 = vector.extract_strided_slice %1 {offsets = [0, 10], sizes = [17, 1], strides = [1, 1]} : vector<17x19xf32> to vector<17x1xf32>
    %158 = vector.broadcast %157 : vector<17x1xf32> to vector<17x128xf32>
    %159 = arith.mulf %158, %136 : vector<17x128xf32>
    %160 = arith.addf %121, %159 : vector<17x128xf32>
    %161 = vector.extract_strided_slice %1 {offsets = [0, 12], sizes = [17, 1], strides = [1, 1]} : vector<17x19xf32> to vector<17x1xf32>
    %162 = vector.broadcast %161 : vector<17x1xf32> to vector<17x128xf32>
    %163 = arith.mulf %162, %136 : vector<17x128xf32>
    %164 = arith.addf %125, %163 : vector<17x128xf32>
    %165 = vector.extract_strided_slice %1 {offsets = [0, 14], sizes = [17, 1], strides = [1, 1]} : vector<17x19xf32> to vector<17x1xf32>
    %166 = vector.broadcast %165 : vector<17x1xf32> to vector<17x128xf32>
    %167 = arith.mulf %166, %136 : vector<17x128xf32>
    %168 = arith.addf %129, %167 : vector<17x128xf32>
    %169 = vector.extract_strided_slice %1 {offsets = [0, 16], sizes = [17, 1], strides = [1, 1]} : vector<17x19xf32> to vector<17x1xf32>
    %170 = vector.broadcast %169 : vector<17x1xf32> to vector<17x128xf32>
    %171 = arith.mulf %170, %136 : vector<17x128xf32>
    %172 = arith.addf %133, %171 : vector<17x128xf32>
    %173 = vector.extract_strided_slice %4 {offsets = [4, 0], sizes = [1, 128], strides = [1, 1]} : vector<9x128xf32> to vector<1x128xf32>
    %174 = vector.shape_cast %173 : vector<1x128xf32> to vector<1x128xf32>
    %175 = vector.broadcast %174 : vector<1x128xf32> to vector<17x128xf32>
    %176 = vector.extract_strided_slice %1 {offsets = [0, 1], sizes = [17, 1], strides = [1, 1]} : vector<17x19xf32> to vector<17x1xf32>
    %177 = vector.broadcast %176 : vector<17x1xf32> to vector<17x128xf32>
    %178 = arith.mulf %177, %175 : vector<17x128xf32>
    %179 = arith.addf %140, %178 : vector<17x128xf32>
    %180 = vector.extract_strided_slice %1 {offsets = [0, 3], sizes = [17, 1], strides = [1, 1]} : vector<17x19xf32> to vector<17x1xf32>
    %181 = vector.broadcast %180 : vector<17x1xf32> to vector<17x128xf32>
    %182 = arith.mulf %181, %175 : vector<17x128xf32>
    %183 = arith.addf %144, %182 : vector<17x128xf32>
    %184 = vector.extract_strided_slice %1 {offsets = [0, 5], sizes = [17, 1], strides = [1, 1]} : vector<17x19xf32> to vector<17x1xf32>
    %185 = vector.broadcast %184 : vector<17x1xf32> to vector<17x128xf32>
    %186 = arith.mulf %185, %175 : vector<17x128xf32>
    %187 = arith.addf %148, %186 : vector<17x128xf32>
    %188 = vector.extract_strided_slice %1 {offsets = [0, 7], sizes = [17, 1], strides = [1, 1]} : vector<17x19xf32> to vector<17x1xf32>
    %189 = vector.broadcast %188 : vector<17x1xf32> to vector<17x128xf32>
    %190 = arith.mulf %189, %175 : vector<17x128xf32>
    %191 = arith.addf %152, %190 : vector<17x128xf32>
    %192 = vector.extract_strided_slice %1 {offsets = [0, 9], sizes = [17, 1], strides = [1, 1]} : vector<17x19xf32> to vector<17x1xf32>
    %193 = vector.broadcast %192 : vector<17x1xf32> to vector<17x128xf32>
    %194 = arith.mulf %193, %175 : vector<17x128xf32>
    %195 = arith.addf %156, %194 : vector<17x128xf32>
    %196 = vector.extract_strided_slice %1 {offsets = [0, 11], sizes = [17, 1], strides = [1, 1]} : vector<17x19xf32> to vector<17x1xf32>
    %197 = vector.broadcast %196 : vector<17x1xf32> to vector<17x128xf32>
    %198 = arith.mulf %197, %175 : vector<17x128xf32>
    %199 = arith.addf %160, %198 : vector<17x128xf32>
    %200 = vector.extract_strided_slice %1 {offsets = [0, 13], sizes = [17, 1], strides = [1, 1]} : vector<17x19xf32> to vector<17x1xf32>
    %201 = vector.broadcast %200 : vector<17x1xf32> to vector<17x128xf32>
    %202 = arith.mulf %201, %175 : vector<17x128xf32>
    %203 = arith.addf %164, %202 : vector<17x128xf32>
    %204 = vector.extract_strided_slice %1 {offsets = [0, 15], sizes = [17, 1], strides = [1, 1]} : vector<17x19xf32> to vector<17x1xf32>
    %205 = vector.broadcast %204 : vector<17x1xf32> to vector<17x128xf32>
    %206 = arith.mulf %205, %175 : vector<17x128xf32>
    %207 = arith.addf %168, %206 : vector<17x128xf32>
    %208 = vector.extract_strided_slice %1 {offsets = [0, 17], sizes = [17, 1], strides = [1, 1]} : vector<17x19xf32> to vector<17x1xf32>
    %209 = vector.broadcast %208 : vector<17x1xf32> to vector<17x128xf32>
    %210 = arith.mulf %209, %175 : vector<17x128xf32>
    %211 = arith.addf %172, %210 : vector<17x128xf32>
    %212 = vector.extract_strided_slice %4 {offsets = [5, 0], sizes = [1, 128], strides = [1, 1]} : vector<9x128xf32> to vector<1x128xf32>
    %213 = vector.shape_cast %212 : vector<1x128xf32> to vector<1x128xf32>
    %214 = vector.broadcast %213 : vector<1x128xf32> to vector<17x128xf32>
    %215 = vector.extract_strided_slice %1 {offsets = [0, 2], sizes = [17, 1], strides = [1, 1]} : vector<17x19xf32> to vector<17x1xf32>
    %216 = vector.broadcast %215 : vector<17x1xf32> to vector<17x128xf32>
    %217 = arith.mulf %216, %214 : vector<17x128xf32>
    %218 = arith.addf %179, %217 : vector<17x128xf32>
    %219 = vector.extract_strided_slice %1 {offsets = [0, 4], sizes = [17, 1], strides = [1, 1]} : vector<17x19xf32> to vector<17x1xf32>
    %220 = vector.broadcast %219 : vector<17x1xf32> to vector<17x128xf32>
    %221 = arith.mulf %220, %214 : vector<17x128xf32>
    %222 = arith.addf %183, %221 : vector<17x128xf32>
    %223 = vector.extract_strided_slice %1 {offsets = [0, 6], sizes = [17, 1], strides = [1, 1]} : vector<17x19xf32> to vector<17x1xf32>
    %224 = vector.broadcast %223 : vector<17x1xf32> to vector<17x128xf32>
    %225 = arith.mulf %224, %214 : vector<17x128xf32>
    %226 = arith.addf %187, %225 : vector<17x128xf32>
    %227 = vector.extract_strided_slice %1 {offsets = [0, 8], sizes = [17, 1], strides = [1, 1]} : vector<17x19xf32> to vector<17x1xf32>
    %228 = vector.broadcast %227 : vector<17x1xf32> to vector<17x128xf32>
    %229 = arith.mulf %228, %214 : vector<17x128xf32>
    %230 = arith.addf %191, %229 : vector<17x128xf32>
    %231 = vector.extract_strided_slice %1 {offsets = [0, 10], sizes = [17, 1], strides = [1, 1]} : vector<17x19xf32> to vector<17x1xf32>
    %232 = vector.broadcast %231 : vector<17x1xf32> to vector<17x128xf32>
    %233 = arith.mulf %232, %214 : vector<17x128xf32>
    %234 = arith.addf %195, %233 : vector<17x128xf32>
    %235 = vector.extract_strided_slice %1 {offsets = [0, 12], sizes = [17, 1], strides = [1, 1]} : vector<17x19xf32> to vector<17x1xf32>
    %236 = vector.broadcast %235 : vector<17x1xf32> to vector<17x128xf32>
    %237 = arith.mulf %236, %214 : vector<17x128xf32>
    %238 = arith.addf %199, %237 : vector<17x128xf32>
    %239 = vector.extract_strided_slice %1 {offsets = [0, 14], sizes = [17, 1], strides = [1, 1]} : vector<17x19xf32> to vector<17x1xf32>
    %240 = vector.broadcast %239 : vector<17x1xf32> to vector<17x128xf32>
    %241 = arith.mulf %240, %214 : vector<17x128xf32>
    %242 = arith.addf %203, %241 : vector<17x128xf32>
    %243 = vector.extract_strided_slice %1 {offsets = [0, 16], sizes = [17, 1], strides = [1, 1]} : vector<17x19xf32> to vector<17x1xf32>
    %244 = vector.broadcast %243 : vector<17x1xf32> to vector<17x128xf32>
    %245 = arith.mulf %244, %214 : vector<17x128xf32>
    %246 = arith.addf %207, %245 : vector<17x128xf32>
    %247 = vector.extract_strided_slice %1 {offsets = [0, 18], sizes = [17, 1], strides = [1, 1]} : vector<17x19xf32> to vector<17x1xf32>
    %248 = vector.broadcast %247 : vector<17x1xf32> to vector<17x128xf32>
    %249 = arith.mulf %248, %214 : vector<17x128xf32>
    %250 = arith.addf %211, %249 : vector<17x128xf32>
    %251 = vector.extract_strided_slice %4 {offsets = [6, 0], sizes = [1, 128], strides = [1, 1]} : vector<9x128xf32> to vector<1x128xf32>
    %252 = vector.shape_cast %251 : vector<1x128xf32> to vector<1x128xf32>
    %253 = vector.broadcast %252 : vector<1x128xf32> to vector<17x128xf32>
    %254 = vector.extract_strided_slice %2 {offsets = [0, 0], sizes = [17, 1], strides = [1, 1]} : vector<17x19xf32> to vector<17x1xf32>
    %255 = vector.broadcast %254 : vector<17x1xf32> to vector<17x128xf32>
    %256 = arith.mulf %255, %253 : vector<17x128xf32>
    %257 = arith.addf %218, %256 : vector<17x128xf32>
    %258 = vector.extract_strided_slice %2 {offsets = [0, 2], sizes = [17, 1], strides = [1, 1]} : vector<17x19xf32> to vector<17x1xf32>
    %259 = vector.broadcast %258 : vector<17x1xf32> to vector<17x128xf32>
    %260 = arith.mulf %259, %253 : vector<17x128xf32>
    %261 = arith.addf %222, %260 : vector<17x128xf32>
    %262 = vector.extract_strided_slice %2 {offsets = [0, 4], sizes = [17, 1], strides = [1, 1]} : vector<17x19xf32> to vector<17x1xf32>
    %263 = vector.broadcast %262 : vector<17x1xf32> to vector<17x128xf32>
    %264 = arith.mulf %263, %253 : vector<17x128xf32>
    %265 = arith.addf %226, %264 : vector<17x128xf32>
    %266 = vector.extract_strided_slice %2 {offsets = [0, 6], sizes = [17, 1], strides = [1, 1]} : vector<17x19xf32> to vector<17x1xf32>
    %267 = vector.broadcast %266 : vector<17x1xf32> to vector<17x128xf32>
    %268 = arith.mulf %267, %253 : vector<17x128xf32>
    %269 = arith.addf %230, %268 : vector<17x128xf32>
    %270 = vector.extract_strided_slice %2 {offsets = [0, 8], sizes = [17, 1], strides = [1, 1]} : vector<17x19xf32> to vector<17x1xf32>
    %271 = vector.broadcast %270 : vector<17x1xf32> to vector<17x128xf32>
    %272 = arith.mulf %271, %253 : vector<17x128xf32>
    %273 = arith.addf %234, %272 : vector<17x128xf32>
    %274 = vector.extract_strided_slice %2 {offsets = [0, 10], sizes = [17, 1], strides = [1, 1]} : vector<17x19xf32> to vector<17x1xf32>
    %275 = vector.broadcast %274 : vector<17x1xf32> to vector<17x128xf32>
    %276 = arith.mulf %275, %253 : vector<17x128xf32>
    %277 = arith.addf %238, %276 : vector<17x128xf32>
    %278 = vector.extract_strided_slice %2 {offsets = [0, 12], sizes = [17, 1], strides = [1, 1]} : vector<17x19xf32> to vector<17x1xf32>
    %279 = vector.broadcast %278 : vector<17x1xf32> to vector<17x128xf32>
    %280 = arith.mulf %279, %253 : vector<17x128xf32>
    %281 = arith.addf %242, %280 : vector<17x128xf32>
    %282 = vector.extract_strided_slice %2 {offsets = [0, 14], sizes = [17, 1], strides = [1, 1]} : vector<17x19xf32> to vector<17x1xf32>
    %283 = vector.broadcast %282 : vector<17x1xf32> to vector<17x128xf32>
    %284 = arith.mulf %283, %253 : vector<17x128xf32>
    %285 = arith.addf %246, %284 : vector<17x128xf32>
    %286 = vector.extract_strided_slice %2 {offsets = [0, 16], sizes = [17, 1], strides = [1, 1]} : vector<17x19xf32> to vector<17x1xf32>
    %287 = vector.broadcast %286 : vector<17x1xf32> to vector<17x128xf32>
    %288 = arith.mulf %287, %253 : vector<17x128xf32>
    %289 = arith.addf %250, %288 : vector<17x128xf32>
    %290 = vector.extract_strided_slice %4 {offsets = [7, 0], sizes = [1, 128], strides = [1, 1]} : vector<9x128xf32> to vector<1x128xf32>
    %291 = vector.shape_cast %290 : vector<1x128xf32> to vector<1x128xf32>
    %292 = vector.broadcast %291 : vector<1x128xf32> to vector<17x128xf32>
    %293 = vector.extract_strided_slice %2 {offsets = [0, 1], sizes = [17, 1], strides = [1, 1]} : vector<17x19xf32> to vector<17x1xf32>
    %294 = vector.broadcast %293 : vector<17x1xf32> to vector<17x128xf32>
    %295 = arith.mulf %294, %292 : vector<17x128xf32>
    %296 = arith.addf %257, %295 : vector<17x128xf32>
    %297 = vector.extract_strided_slice %2 {offsets = [0, 3], sizes = [17, 1], strides = [1, 1]} : vector<17x19xf32> to vector<17x1xf32>
    %298 = vector.broadcast %297 : vector<17x1xf32> to vector<17x128xf32>
    %299 = arith.mulf %298, %292 : vector<17x128xf32>
    %300 = arith.addf %261, %299 : vector<17x128xf32>
    %301 = vector.extract_strided_slice %2 {offsets = [0, 5], sizes = [17, 1], strides = [1, 1]} : vector<17x19xf32> to vector<17x1xf32>
    %302 = vector.broadcast %301 : vector<17x1xf32> to vector<17x128xf32>
    %303 = arith.mulf %302, %292 : vector<17x128xf32>
    %304 = arith.addf %265, %303 : vector<17x128xf32>
    %305 = vector.extract_strided_slice %2 {offsets = [0, 7], sizes = [17, 1], strides = [1, 1]} : vector<17x19xf32> to vector<17x1xf32>
    %306 = vector.broadcast %305 : vector<17x1xf32> to vector<17x128xf32>
    %307 = arith.mulf %306, %292 : vector<17x128xf32>
    %308 = arith.addf %269, %307 : vector<17x128xf32>
    %309 = vector.extract_strided_slice %2 {offsets = [0, 9], sizes = [17, 1], strides = [1, 1]} : vector<17x19xf32> to vector<17x1xf32>
    %310 = vector.broadcast %309 : vector<17x1xf32> to vector<17x128xf32>
    %311 = arith.mulf %310, %292 : vector<17x128xf32>
    %312 = arith.addf %273, %311 : vector<17x128xf32>
    %313 = vector.extract_strided_slice %2 {offsets = [0, 11], sizes = [17, 1], strides = [1, 1]} : vector<17x19xf32> to vector<17x1xf32>
    %314 = vector.broadcast %313 : vector<17x1xf32> to vector<17x128xf32>
    %315 = arith.mulf %314, %292 : vector<17x128xf32>
    %316 = arith.addf %277, %315 : vector<17x128xf32>
    %317 = vector.extract_strided_slice %2 {offsets = [0, 13], sizes = [17, 1], strides = [1, 1]} : vector<17x19xf32> to vector<17x1xf32>
    %318 = vector.broadcast %317 : vector<17x1xf32> to vector<17x128xf32>
    %319 = arith.mulf %318, %292 : vector<17x128xf32>
    %320 = arith.addf %281, %319 : vector<17x128xf32>
    %321 = vector.extract_strided_slice %2 {offsets = [0, 15], sizes = [17, 1], strides = [1, 1]} : vector<17x19xf32> to vector<17x1xf32>
    %322 = vector.broadcast %321 : vector<17x1xf32> to vector<17x128xf32>
    %323 = arith.mulf %322, %292 : vector<17x128xf32>
    %324 = arith.addf %285, %323 : vector<17x128xf32>
    %325 = vector.extract_strided_slice %2 {offsets = [0, 17], sizes = [17, 1], strides = [1, 1]} : vector<17x19xf32> to vector<17x1xf32>
    %326 = vector.broadcast %325 : vector<17x1xf32> to vector<17x128xf32>
    %327 = arith.mulf %326, %292 : vector<17x128xf32>
    %328 = arith.addf %289, %327 : vector<17x128xf32>
    %329 = vector.extract_strided_slice %4 {offsets = [8, 0], sizes = [1, 128], strides = [1, 1]} : vector<9x128xf32> to vector<1x128xf32>
    %330 = vector.shape_cast %329 : vector<1x128xf32> to vector<1x128xf32>
    %331 = vector.broadcast %330 : vector<1x128xf32> to vector<17x128xf32>
    %332 = vector.extract_strided_slice %2 {offsets = [0, 2], sizes = [17, 1], strides = [1, 1]} : vector<17x19xf32> to vector<17x1xf32>
    %333 = vector.broadcast %332 : vector<17x1xf32> to vector<17x128xf32>
    %334 = arith.mulf %333, %331 : vector<17x128xf32>
    %335 = arith.addf %296, %334 : vector<17x128xf32>
    %336 = vector.extract_strided_slice %2 {offsets = [0, 4], sizes = [17, 1], strides = [1, 1]} : vector<17x19xf32> to vector<17x1xf32>
    %337 = vector.broadcast %336 : vector<17x1xf32> to vector<17x128xf32>
    %338 = arith.mulf %337, %331 : vector<17x128xf32>
    %339 = arith.addf %300, %338 : vector<17x128xf32>
    %340 = vector.extract_strided_slice %2 {offsets = [0, 6], sizes = [17, 1], strides = [1, 1]} : vector<17x19xf32> to vector<17x1xf32>
    %341 = vector.broadcast %340 : vector<17x1xf32> to vector<17x128xf32>
    %342 = arith.mulf %341, %331 : vector<17x128xf32>
    %343 = arith.addf %304, %342 : vector<17x128xf32>
    %344 = vector.extract_strided_slice %2 {offsets = [0, 8], sizes = [17, 1], strides = [1, 1]} : vector<17x19xf32> to vector<17x1xf32>
    %345 = vector.broadcast %344 : vector<17x1xf32> to vector<17x128xf32>
    %346 = arith.mulf %345, %331 : vector<17x128xf32>
    %347 = arith.addf %308, %346 : vector<17x128xf32>
    %348 = vector.extract_strided_slice %2 {offsets = [0, 10], sizes = [17, 1], strides = [1, 1]} : vector<17x19xf32> to vector<17x1xf32>
    %349 = vector.broadcast %348 : vector<17x1xf32> to vector<17x128xf32>
    %350 = arith.mulf %349, %331 : vector<17x128xf32>
    %351 = arith.addf %312, %350 : vector<17x128xf32>
    %352 = vector.extract_strided_slice %2 {offsets = [0, 12], sizes = [17, 1], strides = [1, 1]} : vector<17x19xf32> to vector<17x1xf32>
    %353 = vector.broadcast %352 : vector<17x1xf32> to vector<17x128xf32>
    %354 = arith.mulf %353, %331 : vector<17x128xf32>
    %355 = arith.addf %316, %354 : vector<17x128xf32>
    %356 = vector.extract_strided_slice %2 {offsets = [0, 14], sizes = [17, 1], strides = [1, 1]} : vector<17x19xf32> to vector<17x1xf32>
    %357 = vector.broadcast %356 : vector<17x1xf32> to vector<17x128xf32>
    %358 = arith.mulf %357, %331 : vector<17x128xf32>
    %359 = arith.addf %320, %358 : vector<17x128xf32>
    %360 = vector.extract_strided_slice %2 {offsets = [0, 16], sizes = [17, 1], strides = [1, 1]} : vector<17x19xf32> to vector<17x1xf32>
    %361 = vector.broadcast %360 : vector<17x1xf32> to vector<17x128xf32>
    %362 = arith.mulf %361, %331 : vector<17x128xf32>
    %363 = arith.addf %324, %362 : vector<17x128xf32>
    %364 = vector.extract_strided_slice %2 {offsets = [0, 18], sizes = [17, 1], strides = [1, 1]} : vector<17x19xf32> to vector<17x1xf32>
    %365 = vector.broadcast %364 : vector<17x1xf32> to vector<17x128xf32>
    %366 = arith.mulf %365, %331 : vector<17x128xf32>
    %367 = arith.addf %328, %366 : vector<17x128xf32>
    %368 = vector.broadcast %5 : vector<1x128xf32> to vector<17x128xf32>
    %369 = arith.addf %335, %368 : vector<17x128xf32>
    %cst_23 = arith.constant 0.000000e+00 : f32
    %370 = vector.broadcast %cst_23 : f32 to vector<17x128xf32>
    %371 = arith.maximumf %369, %370 : vector<17x128xf32>
    %372 = vector.broadcast %5 : vector<1x128xf32> to vector<17x128xf32>
    %373 = arith.addf %339, %372 : vector<17x128xf32>
    %cst_24 = arith.constant 0.000000e+00 : f32
    %374 = vector.broadcast %cst_24 : f32 to vector<17x128xf32>
    %375 = arith.maximumf %373, %374 : vector<17x128xf32>
    %376 = vector.broadcast %5 : vector<1x128xf32> to vector<17x128xf32>
    %377 = arith.addf %343, %376 : vector<17x128xf32>
    %cst_25 = arith.constant 0.000000e+00 : f32
    %378 = vector.broadcast %cst_25 : f32 to vector<17x128xf32>
    %379 = arith.maximumf %377, %378 : vector<17x128xf32>
    %380 = vector.broadcast %5 : vector<1x128xf32> to vector<17x128xf32>
    %381 = arith.addf %347, %380 : vector<17x128xf32>
    %cst_26 = arith.constant 0.000000e+00 : f32
    %382 = vector.broadcast %cst_26 : f32 to vector<17x128xf32>
    %383 = arith.maximumf %381, %382 : vector<17x128xf32>
    %384 = vector.broadcast %5 : vector<1x128xf32> to vector<17x128xf32>
    %385 = arith.addf %351, %384 : vector<17x128xf32>
    %cst_27 = arith.constant 0.000000e+00 : f32
    %386 = vector.broadcast %cst_27 : f32 to vector<17x128xf32>
    %387 = arith.maximumf %385, %386 : vector<17x128xf32>
    %388 = vector.broadcast %5 : vector<1x128xf32> to vector<17x128xf32>
    %389 = arith.addf %355, %388 : vector<17x128xf32>
    %cst_28 = arith.constant 0.000000e+00 : f32
    %390 = vector.broadcast %cst_28 : f32 to vector<17x128xf32>
    %391 = arith.maximumf %389, %390 : vector<17x128xf32>
    %392 = vector.broadcast %5 : vector<1x128xf32> to vector<17x128xf32>
    %393 = arith.addf %359, %392 : vector<17x128xf32>
    %cst_29 = arith.constant 0.000000e+00 : f32
    %394 = vector.broadcast %cst_29 : f32 to vector<17x128xf32>
    %395 = arith.maximumf %393, %394 : vector<17x128xf32>
    %396 = vector.broadcast %5 : vector<1x128xf32> to vector<17x128xf32>
    %397 = arith.addf %363, %396 : vector<17x128xf32>
    %cst_30 = arith.constant 0.000000e+00 : f32
    %398 = vector.broadcast %cst_30 : f32 to vector<17x128xf32>
    %399 = arith.maximumf %397, %398 : vector<17x128xf32>
    %400 = vector.broadcast %5 : vector<1x128xf32> to vector<17x128xf32>
    %401 = arith.addf %367, %400 : vector<17x128xf32>
    %cst_31 = arith.constant 0.000000e+00 : f32
    %402 = vector.broadcast %cst_31 : f32 to vector<17x128xf32>
    %403 = arith.maximumf %401, %402 : vector<17x128xf32>
    %404 = vector.extract_strided_slice %2 {offsets = [0, 0], sizes = [16, 19], strides = [1, 1]} : vector<17x19xf32> to vector<16x19xf32>
    %405 = vector.extract_strided_slice %0 {offsets = [1, 0], sizes = [16, 19], strides = [1, 1]} : vector<17x19xf32> to vector<16x19xf32>
    %cst_32 = arith.constant 0.000000e+00 : f32
    %406 = vector.broadcast %cst_32 : f32 to vector<16x128xf32>
    %cst_33 = arith.constant 0.000000e+00 : f32
    %407 = vector.broadcast %cst_33 : f32 to vector<16x128xf32>
    %cst_34 = arith.constant 0.000000e+00 : f32
    %408 = vector.broadcast %cst_34 : f32 to vector<16x128xf32>
    %cst_35 = arith.constant 0.000000e+00 : f32
    %409 = vector.broadcast %cst_35 : f32 to vector<16x128xf32>
    %cst_36 = arith.constant 0.000000e+00 : f32
    %410 = vector.broadcast %cst_36 : f32 to vector<16x128xf32>
    %cst_37 = arith.constant 0.000000e+00 : f32
    %411 = vector.broadcast %cst_37 : f32 to vector<16x128xf32>
    %cst_38 = arith.constant 0.000000e+00 : f32
    %412 = vector.broadcast %cst_38 : f32 to vector<16x128xf32>
    %cst_39 = arith.constant 0.000000e+00 : f32
    %413 = vector.broadcast %cst_39 : f32 to vector<16x128xf32>
    %cst_40 = arith.constant 0.000000e+00 : f32
    %414 = vector.broadcast %cst_40 : f32 to vector<16x128xf32>
    %415 = vector.extract_strided_slice %4 {offsets = [0, 0], sizes = [1, 128], strides = [1, 1]} : vector<9x128xf32> to vector<1x128xf32>
    %416 = vector.shape_cast %415 : vector<1x128xf32> to vector<1x128xf32>
    %417 = vector.broadcast %416 : vector<1x128xf32> to vector<16x128xf32>
    %418 = vector.extract_strided_slice %404 {offsets = [0, 0], sizes = [16, 1], strides = [1, 1]} : vector<16x19xf32> to vector<16x1xf32>
    %419 = vector.broadcast %418 : vector<16x1xf32> to vector<16x128xf32>
    %420 = arith.mulf %419, %417 : vector<16x128xf32>
    %421 = arith.addf %406, %420 : vector<16x128xf32>
    %422 = vector.extract_strided_slice %404 {offsets = [0, 2], sizes = [16, 1], strides = [1, 1]} : vector<16x19xf32> to vector<16x1xf32>
    %423 = vector.broadcast %422 : vector<16x1xf32> to vector<16x128xf32>
    %424 = arith.mulf %423, %417 : vector<16x128xf32>
    %425 = arith.addf %407, %424 : vector<16x128xf32>
    %426 = vector.extract_strided_slice %404 {offsets = [0, 4], sizes = [16, 1], strides = [1, 1]} : vector<16x19xf32> to vector<16x1xf32>
    %427 = vector.broadcast %426 : vector<16x1xf32> to vector<16x128xf32>
    %428 = arith.mulf %427, %417 : vector<16x128xf32>
    %429 = arith.addf %408, %428 : vector<16x128xf32>
    %430 = vector.extract_strided_slice %404 {offsets = [0, 6], sizes = [16, 1], strides = [1, 1]} : vector<16x19xf32> to vector<16x1xf32>
    %431 = vector.broadcast %430 : vector<16x1xf32> to vector<16x128xf32>
    %432 = arith.mulf %431, %417 : vector<16x128xf32>
    %433 = arith.addf %409, %432 : vector<16x128xf32>
    %434 = vector.extract_strided_slice %404 {offsets = [0, 8], sizes = [16, 1], strides = [1, 1]} : vector<16x19xf32> to vector<16x1xf32>
    %435 = vector.broadcast %434 : vector<16x1xf32> to vector<16x128xf32>
    %436 = arith.mulf %435, %417 : vector<16x128xf32>
    %437 = arith.addf %410, %436 : vector<16x128xf32>
    %438 = vector.extract_strided_slice %404 {offsets = [0, 10], sizes = [16, 1], strides = [1, 1]} : vector<16x19xf32> to vector<16x1xf32>
    %439 = vector.broadcast %438 : vector<16x1xf32> to vector<16x128xf32>
    %440 = arith.mulf %439, %417 : vector<16x128xf32>
    %441 = arith.addf %411, %440 : vector<16x128xf32>
    %442 = vector.extract_strided_slice %404 {offsets = [0, 12], sizes = [16, 1], strides = [1, 1]} : vector<16x19xf32> to vector<16x1xf32>
    %443 = vector.broadcast %442 : vector<16x1xf32> to vector<16x128xf32>
    %444 = arith.mulf %443, %417 : vector<16x128xf32>
    %445 = arith.addf %412, %444 : vector<16x128xf32>
    %446 = vector.extract_strided_slice %404 {offsets = [0, 14], sizes = [16, 1], strides = [1, 1]} : vector<16x19xf32> to vector<16x1xf32>
    %447 = vector.broadcast %446 : vector<16x1xf32> to vector<16x128xf32>
    %448 = arith.mulf %447, %417 : vector<16x128xf32>
    %449 = arith.addf %413, %448 : vector<16x128xf32>
    %450 = vector.extract_strided_slice %404 {offsets = [0, 16], sizes = [16, 1], strides = [1, 1]} : vector<16x19xf32> to vector<16x1xf32>
    %451 = vector.broadcast %450 : vector<16x1xf32> to vector<16x128xf32>
    %452 = arith.mulf %451, %417 : vector<16x128xf32>
    %453 = arith.addf %414, %452 : vector<16x128xf32>
    %454 = vector.extract_strided_slice %4 {offsets = [1, 0], sizes = [1, 128], strides = [1, 1]} : vector<9x128xf32> to vector<1x128xf32>
    %455 = vector.shape_cast %454 : vector<1x128xf32> to vector<1x128xf32>
    %456 = vector.broadcast %455 : vector<1x128xf32> to vector<16x128xf32>
    %457 = vector.extract_strided_slice %404 {offsets = [0, 1], sizes = [16, 1], strides = [1, 1]} : vector<16x19xf32> to vector<16x1xf32>
    %458 = vector.broadcast %457 : vector<16x1xf32> to vector<16x128xf32>
    %459 = arith.mulf %458, %456 : vector<16x128xf32>
    %460 = arith.addf %421, %459 : vector<16x128xf32>
    %461 = vector.extract_strided_slice %404 {offsets = [0, 3], sizes = [16, 1], strides = [1, 1]} : vector<16x19xf32> to vector<16x1xf32>
    %462 = vector.broadcast %461 : vector<16x1xf32> to vector<16x128xf32>
    %463 = arith.mulf %462, %456 : vector<16x128xf32>
    %464 = arith.addf %425, %463 : vector<16x128xf32>
    %465 = vector.extract_strided_slice %404 {offsets = [0, 5], sizes = [16, 1], strides = [1, 1]} : vector<16x19xf32> to vector<16x1xf32>
    %466 = vector.broadcast %465 : vector<16x1xf32> to vector<16x128xf32>
    %467 = arith.mulf %466, %456 : vector<16x128xf32>
    %468 = arith.addf %429, %467 : vector<16x128xf32>
    %469 = vector.extract_strided_slice %404 {offsets = [0, 7], sizes = [16, 1], strides = [1, 1]} : vector<16x19xf32> to vector<16x1xf32>
    %470 = vector.broadcast %469 : vector<16x1xf32> to vector<16x128xf32>
    %471 = arith.mulf %470, %456 : vector<16x128xf32>
    %472 = arith.addf %433, %471 : vector<16x128xf32>
    %473 = vector.extract_strided_slice %404 {offsets = [0, 9], sizes = [16, 1], strides = [1, 1]} : vector<16x19xf32> to vector<16x1xf32>
    %474 = vector.broadcast %473 : vector<16x1xf32> to vector<16x128xf32>
    %475 = arith.mulf %474, %456 : vector<16x128xf32>
    %476 = arith.addf %437, %475 : vector<16x128xf32>
    %477 = vector.extract_strided_slice %404 {offsets = [0, 11], sizes = [16, 1], strides = [1, 1]} : vector<16x19xf32> to vector<16x1xf32>
    %478 = vector.broadcast %477 : vector<16x1xf32> to vector<16x128xf32>
    %479 = arith.mulf %478, %456 : vector<16x128xf32>
    %480 = arith.addf %441, %479 : vector<16x128xf32>
    %481 = vector.extract_strided_slice %404 {offsets = [0, 13], sizes = [16, 1], strides = [1, 1]} : vector<16x19xf32> to vector<16x1xf32>
    %482 = vector.broadcast %481 : vector<16x1xf32> to vector<16x128xf32>
    %483 = arith.mulf %482, %456 : vector<16x128xf32>
    %484 = arith.addf %445, %483 : vector<16x128xf32>
    %485 = vector.extract_strided_slice %404 {offsets = [0, 15], sizes = [16, 1], strides = [1, 1]} : vector<16x19xf32> to vector<16x1xf32>
    %486 = vector.broadcast %485 : vector<16x1xf32> to vector<16x128xf32>
    %487 = arith.mulf %486, %456 : vector<16x128xf32>
    %488 = arith.addf %449, %487 : vector<16x128xf32>
    %489 = vector.extract_strided_slice %404 {offsets = [0, 17], sizes = [16, 1], strides = [1, 1]} : vector<16x19xf32> to vector<16x1xf32>
    %490 = vector.broadcast %489 : vector<16x1xf32> to vector<16x128xf32>
    %491 = arith.mulf %490, %456 : vector<16x128xf32>
    %492 = arith.addf %453, %491 : vector<16x128xf32>
    %493 = vector.extract_strided_slice %4 {offsets = [2, 0], sizes = [1, 128], strides = [1, 1]} : vector<9x128xf32> to vector<1x128xf32>
    %494 = vector.shape_cast %493 : vector<1x128xf32> to vector<1x128xf32>
    %495 = vector.broadcast %494 : vector<1x128xf32> to vector<16x128xf32>
    %496 = vector.extract_strided_slice %404 {offsets = [0, 2], sizes = [16, 1], strides = [1, 1]} : vector<16x19xf32> to vector<16x1xf32>
    %497 = vector.broadcast %496 : vector<16x1xf32> to vector<16x128xf32>
    %498 = arith.mulf %497, %495 : vector<16x128xf32>
    %499 = arith.addf %460, %498 : vector<16x128xf32>
    %500 = vector.extract_strided_slice %404 {offsets = [0, 4], sizes = [16, 1], strides = [1, 1]} : vector<16x19xf32> to vector<16x1xf32>
    %501 = vector.broadcast %500 : vector<16x1xf32> to vector<16x128xf32>
    %502 = arith.mulf %501, %495 : vector<16x128xf32>
    %503 = arith.addf %464, %502 : vector<16x128xf32>
    %504 = vector.extract_strided_slice %404 {offsets = [0, 6], sizes = [16, 1], strides = [1, 1]} : vector<16x19xf32> to vector<16x1xf32>
    %505 = vector.broadcast %504 : vector<16x1xf32> to vector<16x128xf32>
    %506 = arith.mulf %505, %495 : vector<16x128xf32>
    %507 = arith.addf %468, %506 : vector<16x128xf32>
    %508 = vector.extract_strided_slice %404 {offsets = [0, 8], sizes = [16, 1], strides = [1, 1]} : vector<16x19xf32> to vector<16x1xf32>
    %509 = vector.broadcast %508 : vector<16x1xf32> to vector<16x128xf32>
    %510 = arith.mulf %509, %495 : vector<16x128xf32>
    %511 = arith.addf %472, %510 : vector<16x128xf32>
    %512 = vector.extract_strided_slice %404 {offsets = [0, 10], sizes = [16, 1], strides = [1, 1]} : vector<16x19xf32> to vector<16x1xf32>
    %513 = vector.broadcast %512 : vector<16x1xf32> to vector<16x128xf32>
    %514 = arith.mulf %513, %495 : vector<16x128xf32>
    %515 = arith.addf %476, %514 : vector<16x128xf32>
    %516 = vector.extract_strided_slice %404 {offsets = [0, 12], sizes = [16, 1], strides = [1, 1]} : vector<16x19xf32> to vector<16x1xf32>
    %517 = vector.broadcast %516 : vector<16x1xf32> to vector<16x128xf32>
    %518 = arith.mulf %517, %495 : vector<16x128xf32>
    %519 = arith.addf %480, %518 : vector<16x128xf32>
    %520 = vector.extract_strided_slice %404 {offsets = [0, 14], sizes = [16, 1], strides = [1, 1]} : vector<16x19xf32> to vector<16x1xf32>
    %521 = vector.broadcast %520 : vector<16x1xf32> to vector<16x128xf32>
    %522 = arith.mulf %521, %495 : vector<16x128xf32>
    %523 = arith.addf %484, %522 : vector<16x128xf32>
    %524 = vector.extract_strided_slice %404 {offsets = [0, 16], sizes = [16, 1], strides = [1, 1]} : vector<16x19xf32> to vector<16x1xf32>
    %525 = vector.broadcast %524 : vector<16x1xf32> to vector<16x128xf32>
    %526 = arith.mulf %525, %495 : vector<16x128xf32>
    %527 = arith.addf %488, %526 : vector<16x128xf32>
    %528 = vector.extract_strided_slice %404 {offsets = [0, 18], sizes = [16, 1], strides = [1, 1]} : vector<16x19xf32> to vector<16x1xf32>
    %529 = vector.broadcast %528 : vector<16x1xf32> to vector<16x128xf32>
    %530 = arith.mulf %529, %495 : vector<16x128xf32>
    %531 = arith.addf %492, %530 : vector<16x128xf32>
    %532 = vector.extract_strided_slice %4 {offsets = [3, 0], sizes = [1, 128], strides = [1, 1]} : vector<9x128xf32> to vector<1x128xf32>
    %533 = vector.shape_cast %532 : vector<1x128xf32> to vector<1x128xf32>
    %534 = vector.broadcast %533 : vector<1x128xf32> to vector<16x128xf32>
    %535 = vector.extract_strided_slice %3 {offsets = [0, 0], sizes = [16, 1], strides = [1, 1]} : vector<16x19xf32> to vector<16x1xf32>
    %536 = vector.broadcast %535 : vector<16x1xf32> to vector<16x128xf32>
    %537 = arith.mulf %536, %534 : vector<16x128xf32>
    %538 = arith.addf %499, %537 : vector<16x128xf32>
    %539 = vector.extract_strided_slice %3 {offsets = [0, 2], sizes = [16, 1], strides = [1, 1]} : vector<16x19xf32> to vector<16x1xf32>
    %540 = vector.broadcast %539 : vector<16x1xf32> to vector<16x128xf32>
    %541 = arith.mulf %540, %534 : vector<16x128xf32>
    %542 = arith.addf %503, %541 : vector<16x128xf32>
    %543 = vector.extract_strided_slice %3 {offsets = [0, 4], sizes = [16, 1], strides = [1, 1]} : vector<16x19xf32> to vector<16x1xf32>
    %544 = vector.broadcast %543 : vector<16x1xf32> to vector<16x128xf32>
    %545 = arith.mulf %544, %534 : vector<16x128xf32>
    %546 = arith.addf %507, %545 : vector<16x128xf32>
    %547 = vector.extract_strided_slice %3 {offsets = [0, 6], sizes = [16, 1], strides = [1, 1]} : vector<16x19xf32> to vector<16x1xf32>
    %548 = vector.broadcast %547 : vector<16x1xf32> to vector<16x128xf32>
    %549 = arith.mulf %548, %534 : vector<16x128xf32>
    %550 = arith.addf %511, %549 : vector<16x128xf32>
    %551 = vector.extract_strided_slice %3 {offsets = [0, 8], sizes = [16, 1], strides = [1, 1]} : vector<16x19xf32> to vector<16x1xf32>
    %552 = vector.broadcast %551 : vector<16x1xf32> to vector<16x128xf32>
    %553 = arith.mulf %552, %534 : vector<16x128xf32>
    %554 = arith.addf %515, %553 : vector<16x128xf32>
    %555 = vector.extract_strided_slice %3 {offsets = [0, 10], sizes = [16, 1], strides = [1, 1]} : vector<16x19xf32> to vector<16x1xf32>
    %556 = vector.broadcast %555 : vector<16x1xf32> to vector<16x128xf32>
    %557 = arith.mulf %556, %534 : vector<16x128xf32>
    %558 = arith.addf %519, %557 : vector<16x128xf32>
    %559 = vector.extract_strided_slice %3 {offsets = [0, 12], sizes = [16, 1], strides = [1, 1]} : vector<16x19xf32> to vector<16x1xf32>
    %560 = vector.broadcast %559 : vector<16x1xf32> to vector<16x128xf32>
    %561 = arith.mulf %560, %534 : vector<16x128xf32>
    %562 = arith.addf %523, %561 : vector<16x128xf32>
    %563 = vector.extract_strided_slice %3 {offsets = [0, 14], sizes = [16, 1], strides = [1, 1]} : vector<16x19xf32> to vector<16x1xf32>
    %564 = vector.broadcast %563 : vector<16x1xf32> to vector<16x128xf32>
    %565 = arith.mulf %564, %534 : vector<16x128xf32>
    %566 = arith.addf %527, %565 : vector<16x128xf32>
    %567 = vector.extract_strided_slice %3 {offsets = [0, 16], sizes = [16, 1], strides = [1, 1]} : vector<16x19xf32> to vector<16x1xf32>
    %568 = vector.broadcast %567 : vector<16x1xf32> to vector<16x128xf32>
    %569 = arith.mulf %568, %534 : vector<16x128xf32>
    %570 = arith.addf %531, %569 : vector<16x128xf32>
    %571 = vector.extract_strided_slice %4 {offsets = [4, 0], sizes = [1, 128], strides = [1, 1]} : vector<9x128xf32> to vector<1x128xf32>
    %572 = vector.shape_cast %571 : vector<1x128xf32> to vector<1x128xf32>
    %573 = vector.broadcast %572 : vector<1x128xf32> to vector<16x128xf32>
    %574 = vector.extract_strided_slice %3 {offsets = [0, 1], sizes = [16, 1], strides = [1, 1]} : vector<16x19xf32> to vector<16x1xf32>
    %575 = vector.broadcast %574 : vector<16x1xf32> to vector<16x128xf32>
    %576 = arith.mulf %575, %573 : vector<16x128xf32>
    %577 = arith.addf %538, %576 : vector<16x128xf32>
    %578 = vector.extract_strided_slice %3 {offsets = [0, 3], sizes = [16, 1], strides = [1, 1]} : vector<16x19xf32> to vector<16x1xf32>
    %579 = vector.broadcast %578 : vector<16x1xf32> to vector<16x128xf32>
    %580 = arith.mulf %579, %573 : vector<16x128xf32>
    %581 = arith.addf %542, %580 : vector<16x128xf32>
    %582 = vector.extract_strided_slice %3 {offsets = [0, 5], sizes = [16, 1], strides = [1, 1]} : vector<16x19xf32> to vector<16x1xf32>
    %583 = vector.broadcast %582 : vector<16x1xf32> to vector<16x128xf32>
    %584 = arith.mulf %583, %573 : vector<16x128xf32>
    %585 = arith.addf %546, %584 : vector<16x128xf32>
    %586 = vector.extract_strided_slice %3 {offsets = [0, 7], sizes = [16, 1], strides = [1, 1]} : vector<16x19xf32> to vector<16x1xf32>
    %587 = vector.broadcast %586 : vector<16x1xf32> to vector<16x128xf32>
    %588 = arith.mulf %587, %573 : vector<16x128xf32>
    %589 = arith.addf %550, %588 : vector<16x128xf32>
    %590 = vector.extract_strided_slice %3 {offsets = [0, 9], sizes = [16, 1], strides = [1, 1]} : vector<16x19xf32> to vector<16x1xf32>
    %591 = vector.broadcast %590 : vector<16x1xf32> to vector<16x128xf32>
    %592 = arith.mulf %591, %573 : vector<16x128xf32>
    %593 = arith.addf %554, %592 : vector<16x128xf32>
    %594 = vector.extract_strided_slice %3 {offsets = [0, 11], sizes = [16, 1], strides = [1, 1]} : vector<16x19xf32> to vector<16x1xf32>
    %595 = vector.broadcast %594 : vector<16x1xf32> to vector<16x128xf32>
    %596 = arith.mulf %595, %573 : vector<16x128xf32>
    %597 = arith.addf %558, %596 : vector<16x128xf32>
    %598 = vector.extract_strided_slice %3 {offsets = [0, 13], sizes = [16, 1], strides = [1, 1]} : vector<16x19xf32> to vector<16x1xf32>
    %599 = vector.broadcast %598 : vector<16x1xf32> to vector<16x128xf32>
    %600 = arith.mulf %599, %573 : vector<16x128xf32>
    %601 = arith.addf %562, %600 : vector<16x128xf32>
    %602 = vector.extract_strided_slice %3 {offsets = [0, 15], sizes = [16, 1], strides = [1, 1]} : vector<16x19xf32> to vector<16x1xf32>
    %603 = vector.broadcast %602 : vector<16x1xf32> to vector<16x128xf32>
    %604 = arith.mulf %603, %573 : vector<16x128xf32>
    %605 = arith.addf %566, %604 : vector<16x128xf32>
    %606 = vector.extract_strided_slice %3 {offsets = [0, 17], sizes = [16, 1], strides = [1, 1]} : vector<16x19xf32> to vector<16x1xf32>
    %607 = vector.broadcast %606 : vector<16x1xf32> to vector<16x128xf32>
    %608 = arith.mulf %607, %573 : vector<16x128xf32>
    %609 = arith.addf %570, %608 : vector<16x128xf32>
    %610 = vector.extract_strided_slice %4 {offsets = [5, 0], sizes = [1, 128], strides = [1, 1]} : vector<9x128xf32> to vector<1x128xf32>
    %611 = vector.shape_cast %610 : vector<1x128xf32> to vector<1x128xf32>
    %612 = vector.broadcast %611 : vector<1x128xf32> to vector<16x128xf32>
    %613 = vector.extract_strided_slice %3 {offsets = [0, 2], sizes = [16, 1], strides = [1, 1]} : vector<16x19xf32> to vector<16x1xf32>
    %614 = vector.broadcast %613 : vector<16x1xf32> to vector<16x128xf32>
    %615 = arith.mulf %614, %612 : vector<16x128xf32>
    %616 = arith.addf %577, %615 : vector<16x128xf32>
    %617 = vector.extract_strided_slice %3 {offsets = [0, 4], sizes = [16, 1], strides = [1, 1]} : vector<16x19xf32> to vector<16x1xf32>
    %618 = vector.broadcast %617 : vector<16x1xf32> to vector<16x128xf32>
    %619 = arith.mulf %618, %612 : vector<16x128xf32>
    %620 = arith.addf %581, %619 : vector<16x128xf32>
    %621 = vector.extract_strided_slice %3 {offsets = [0, 6], sizes = [16, 1], strides = [1, 1]} : vector<16x19xf32> to vector<16x1xf32>
    %622 = vector.broadcast %621 : vector<16x1xf32> to vector<16x128xf32>
    %623 = arith.mulf %622, %612 : vector<16x128xf32>
    %624 = arith.addf %585, %623 : vector<16x128xf32>
    %625 = vector.extract_strided_slice %3 {offsets = [0, 8], sizes = [16, 1], strides = [1, 1]} : vector<16x19xf32> to vector<16x1xf32>
    %626 = vector.broadcast %625 : vector<16x1xf32> to vector<16x128xf32>
    %627 = arith.mulf %626, %612 : vector<16x128xf32>
    %628 = arith.addf %589, %627 : vector<16x128xf32>
    %629 = vector.extract_strided_slice %3 {offsets = [0, 10], sizes = [16, 1], strides = [1, 1]} : vector<16x19xf32> to vector<16x1xf32>
    %630 = vector.broadcast %629 : vector<16x1xf32> to vector<16x128xf32>
    %631 = arith.mulf %630, %612 : vector<16x128xf32>
    %632 = arith.addf %593, %631 : vector<16x128xf32>
    %633 = vector.extract_strided_slice %3 {offsets = [0, 12], sizes = [16, 1], strides = [1, 1]} : vector<16x19xf32> to vector<16x1xf32>
    %634 = vector.broadcast %633 : vector<16x1xf32> to vector<16x128xf32>
    %635 = arith.mulf %634, %612 : vector<16x128xf32>
    %636 = arith.addf %597, %635 : vector<16x128xf32>
    %637 = vector.extract_strided_slice %3 {offsets = [0, 14], sizes = [16, 1], strides = [1, 1]} : vector<16x19xf32> to vector<16x1xf32>
    %638 = vector.broadcast %637 : vector<16x1xf32> to vector<16x128xf32>
    %639 = arith.mulf %638, %612 : vector<16x128xf32>
    %640 = arith.addf %601, %639 : vector<16x128xf32>
    %641 = vector.extract_strided_slice %3 {offsets = [0, 16], sizes = [16, 1], strides = [1, 1]} : vector<16x19xf32> to vector<16x1xf32>
    %642 = vector.broadcast %641 : vector<16x1xf32> to vector<16x128xf32>
    %643 = arith.mulf %642, %612 : vector<16x128xf32>
    %644 = arith.addf %605, %643 : vector<16x128xf32>
    %645 = vector.extract_strided_slice %3 {offsets = [0, 18], sizes = [16, 1], strides = [1, 1]} : vector<16x19xf32> to vector<16x1xf32>
    %646 = vector.broadcast %645 : vector<16x1xf32> to vector<16x128xf32>
    %647 = arith.mulf %646, %612 : vector<16x128xf32>
    %648 = arith.addf %609, %647 : vector<16x128xf32>
    %649 = vector.extract_strided_slice %4 {offsets = [6, 0], sizes = [1, 128], strides = [1, 1]} : vector<9x128xf32> to vector<1x128xf32>
    %650 = vector.shape_cast %649 : vector<1x128xf32> to vector<1x128xf32>
    %651 = vector.broadcast %650 : vector<1x128xf32> to vector<16x128xf32>
    %652 = vector.extract_strided_slice %405 {offsets = [0, 0], sizes = [16, 1], strides = [1, 1]} : vector<16x19xf32> to vector<16x1xf32>
    %653 = vector.broadcast %652 : vector<16x1xf32> to vector<16x128xf32>
    %654 = arith.mulf %653, %651 : vector<16x128xf32>
    %655 = arith.addf %616, %654 : vector<16x128xf32>
    %656 = vector.extract_strided_slice %405 {offsets = [0, 2], sizes = [16, 1], strides = [1, 1]} : vector<16x19xf32> to vector<16x1xf32>
    %657 = vector.broadcast %656 : vector<16x1xf32> to vector<16x128xf32>
    %658 = arith.mulf %657, %651 : vector<16x128xf32>
    %659 = arith.addf %620, %658 : vector<16x128xf32>
    %660 = vector.extract_strided_slice %405 {offsets = [0, 4], sizes = [16, 1], strides = [1, 1]} : vector<16x19xf32> to vector<16x1xf32>
    %661 = vector.broadcast %660 : vector<16x1xf32> to vector<16x128xf32>
    %662 = arith.mulf %661, %651 : vector<16x128xf32>
    %663 = arith.addf %624, %662 : vector<16x128xf32>
    %664 = vector.extract_strided_slice %405 {offsets = [0, 6], sizes = [16, 1], strides = [1, 1]} : vector<16x19xf32> to vector<16x1xf32>
    %665 = vector.broadcast %664 : vector<16x1xf32> to vector<16x128xf32>
    %666 = arith.mulf %665, %651 : vector<16x128xf32>
    %667 = arith.addf %628, %666 : vector<16x128xf32>
    %668 = vector.extract_strided_slice %405 {offsets = [0, 8], sizes = [16, 1], strides = [1, 1]} : vector<16x19xf32> to vector<16x1xf32>
    %669 = vector.broadcast %668 : vector<16x1xf32> to vector<16x128xf32>
    %670 = arith.mulf %669, %651 : vector<16x128xf32>
    %671 = arith.addf %632, %670 : vector<16x128xf32>
    %672 = vector.extract_strided_slice %405 {offsets = [0, 10], sizes = [16, 1], strides = [1, 1]} : vector<16x19xf32> to vector<16x1xf32>
    %673 = vector.broadcast %672 : vector<16x1xf32> to vector<16x128xf32>
    %674 = arith.mulf %673, %651 : vector<16x128xf32>
    %675 = arith.addf %636, %674 : vector<16x128xf32>
    %676 = vector.extract_strided_slice %405 {offsets = [0, 12], sizes = [16, 1], strides = [1, 1]} : vector<16x19xf32> to vector<16x1xf32>
    %677 = vector.broadcast %676 : vector<16x1xf32> to vector<16x128xf32>
    %678 = arith.mulf %677, %651 : vector<16x128xf32>
    %679 = arith.addf %640, %678 : vector<16x128xf32>
    %680 = vector.extract_strided_slice %405 {offsets = [0, 14], sizes = [16, 1], strides = [1, 1]} : vector<16x19xf32> to vector<16x1xf32>
    %681 = vector.broadcast %680 : vector<16x1xf32> to vector<16x128xf32>
    %682 = arith.mulf %681, %651 : vector<16x128xf32>
    %683 = arith.addf %644, %682 : vector<16x128xf32>
    %684 = vector.extract_strided_slice %405 {offsets = [0, 16], sizes = [16, 1], strides = [1, 1]} : vector<16x19xf32> to vector<16x1xf32>
    %685 = vector.broadcast %684 : vector<16x1xf32> to vector<16x128xf32>
    %686 = arith.mulf %685, %651 : vector<16x128xf32>
    %687 = arith.addf %648, %686 : vector<16x128xf32>
    %688 = vector.extract_strided_slice %4 {offsets = [7, 0], sizes = [1, 128], strides = [1, 1]} : vector<9x128xf32> to vector<1x128xf32>
    %689 = vector.shape_cast %688 : vector<1x128xf32> to vector<1x128xf32>
    %690 = vector.broadcast %689 : vector<1x128xf32> to vector<16x128xf32>
    %691 = vector.extract_strided_slice %405 {offsets = [0, 1], sizes = [16, 1], strides = [1, 1]} : vector<16x19xf32> to vector<16x1xf32>
    %692 = vector.broadcast %691 : vector<16x1xf32> to vector<16x128xf32>
    %693 = arith.mulf %692, %690 : vector<16x128xf32>
    %694 = arith.addf %655, %693 : vector<16x128xf32>
    %695 = vector.extract_strided_slice %405 {offsets = [0, 3], sizes = [16, 1], strides = [1, 1]} : vector<16x19xf32> to vector<16x1xf32>
    %696 = vector.broadcast %695 : vector<16x1xf32> to vector<16x128xf32>
    %697 = arith.mulf %696, %690 : vector<16x128xf32>
    %698 = arith.addf %659, %697 : vector<16x128xf32>
    %699 = vector.extract_strided_slice %405 {offsets = [0, 5], sizes = [16, 1], strides = [1, 1]} : vector<16x19xf32> to vector<16x1xf32>
    %700 = vector.broadcast %699 : vector<16x1xf32> to vector<16x128xf32>
    %701 = arith.mulf %700, %690 : vector<16x128xf32>
    %702 = arith.addf %663, %701 : vector<16x128xf32>
    %703 = vector.extract_strided_slice %405 {offsets = [0, 7], sizes = [16, 1], strides = [1, 1]} : vector<16x19xf32> to vector<16x1xf32>
    %704 = vector.broadcast %703 : vector<16x1xf32> to vector<16x128xf32>
    %705 = arith.mulf %704, %690 : vector<16x128xf32>
    %706 = arith.addf %667, %705 : vector<16x128xf32>
    %707 = vector.extract_strided_slice %405 {offsets = [0, 9], sizes = [16, 1], strides = [1, 1]} : vector<16x19xf32> to vector<16x1xf32>
    %708 = vector.broadcast %707 : vector<16x1xf32> to vector<16x128xf32>
    %709 = arith.mulf %708, %690 : vector<16x128xf32>
    %710 = arith.addf %671, %709 : vector<16x128xf32>
    %711 = vector.extract_strided_slice %405 {offsets = [0, 11], sizes = [16, 1], strides = [1, 1]} : vector<16x19xf32> to vector<16x1xf32>
    %712 = vector.broadcast %711 : vector<16x1xf32> to vector<16x128xf32>
    %713 = arith.mulf %712, %690 : vector<16x128xf32>
    %714 = arith.addf %675, %713 : vector<16x128xf32>
    %715 = vector.extract_strided_slice %405 {offsets = [0, 13], sizes = [16, 1], strides = [1, 1]} : vector<16x19xf32> to vector<16x1xf32>
    %716 = vector.broadcast %715 : vector<16x1xf32> to vector<16x128xf32>
    %717 = arith.mulf %716, %690 : vector<16x128xf32>
    %718 = arith.addf %679, %717 : vector<16x128xf32>
    %719 = vector.extract_strided_slice %405 {offsets = [0, 15], sizes = [16, 1], strides = [1, 1]} : vector<16x19xf32> to vector<16x1xf32>
    %720 = vector.broadcast %719 : vector<16x1xf32> to vector<16x128xf32>
    %721 = arith.mulf %720, %690 : vector<16x128xf32>
    %722 = arith.addf %683, %721 : vector<16x128xf32>
    %723 = vector.extract_strided_slice %405 {offsets = [0, 17], sizes = [16, 1], strides = [1, 1]} : vector<16x19xf32> to vector<16x1xf32>
    %724 = vector.broadcast %723 : vector<16x1xf32> to vector<16x128xf32>
    %725 = arith.mulf %724, %690 : vector<16x128xf32>
    %726 = arith.addf %687, %725 : vector<16x128xf32>
    %727 = vector.extract_strided_slice %4 {offsets = [8, 0], sizes = [1, 128], strides = [1, 1]} : vector<9x128xf32> to vector<1x128xf32>
    %728 = vector.shape_cast %727 : vector<1x128xf32> to vector<1x128xf32>
    %729 = vector.broadcast %728 : vector<1x128xf32> to vector<16x128xf32>
    %730 = vector.extract_strided_slice %405 {offsets = [0, 2], sizes = [16, 1], strides = [1, 1]} : vector<16x19xf32> to vector<16x1xf32>
    %731 = vector.broadcast %730 : vector<16x1xf32> to vector<16x128xf32>
    %732 = arith.mulf %731, %729 : vector<16x128xf32>
    %733 = arith.addf %694, %732 : vector<16x128xf32>
    %734 = vector.extract_strided_slice %405 {offsets = [0, 4], sizes = [16, 1], strides = [1, 1]} : vector<16x19xf32> to vector<16x1xf32>
    %735 = vector.broadcast %734 : vector<16x1xf32> to vector<16x128xf32>
    %736 = arith.mulf %735, %729 : vector<16x128xf32>
    %737 = arith.addf %698, %736 : vector<16x128xf32>
    %738 = vector.extract_strided_slice %405 {offsets = [0, 6], sizes = [16, 1], strides = [1, 1]} : vector<16x19xf32> to vector<16x1xf32>
    %739 = vector.broadcast %738 : vector<16x1xf32> to vector<16x128xf32>
    %740 = arith.mulf %739, %729 : vector<16x128xf32>
    %741 = arith.addf %702, %740 : vector<16x128xf32>
    %742 = vector.extract_strided_slice %405 {offsets = [0, 8], sizes = [16, 1], strides = [1, 1]} : vector<16x19xf32> to vector<16x1xf32>
    %743 = vector.broadcast %742 : vector<16x1xf32> to vector<16x128xf32>
    %744 = arith.mulf %743, %729 : vector<16x128xf32>
    %745 = arith.addf %706, %744 : vector<16x128xf32>
    %746 = vector.extract_strided_slice %405 {offsets = [0, 10], sizes = [16, 1], strides = [1, 1]} : vector<16x19xf32> to vector<16x1xf32>
    %747 = vector.broadcast %746 : vector<16x1xf32> to vector<16x128xf32>
    %748 = arith.mulf %747, %729 : vector<16x128xf32>
    %749 = arith.addf %710, %748 : vector<16x128xf32>
    %750 = vector.extract_strided_slice %405 {offsets = [0, 12], sizes = [16, 1], strides = [1, 1]} : vector<16x19xf32> to vector<16x1xf32>
    %751 = vector.broadcast %750 : vector<16x1xf32> to vector<16x128xf32>
    %752 = arith.mulf %751, %729 : vector<16x128xf32>
    %753 = arith.addf %714, %752 : vector<16x128xf32>
    %754 = vector.extract_strided_slice %405 {offsets = [0, 14], sizes = [16, 1], strides = [1, 1]} : vector<16x19xf32> to vector<16x1xf32>
    %755 = vector.broadcast %754 : vector<16x1xf32> to vector<16x128xf32>
    %756 = arith.mulf %755, %729 : vector<16x128xf32>
    %757 = arith.addf %718, %756 : vector<16x128xf32>
    %758 = vector.extract_strided_slice %405 {offsets = [0, 16], sizes = [16, 1], strides = [1, 1]} : vector<16x19xf32> to vector<16x1xf32>
    %759 = vector.broadcast %758 : vector<16x1xf32> to vector<16x128xf32>
    %760 = arith.mulf %759, %729 : vector<16x128xf32>
    %761 = arith.addf %722, %760 : vector<16x128xf32>
    %762 = vector.extract_strided_slice %405 {offsets = [0, 18], sizes = [16, 1], strides = [1, 1]} : vector<16x19xf32> to vector<16x1xf32>
    %763 = vector.broadcast %762 : vector<16x1xf32> to vector<16x128xf32>
    %764 = arith.mulf %763, %729 : vector<16x128xf32>
    %765 = arith.addf %726, %764 : vector<16x128xf32>
    %766 = vector.broadcast %5 : vector<1x128xf32> to vector<16x128xf32>
    %767 = arith.addf %733, %766 : vector<16x128xf32>
    %cst_41 = arith.constant 0.000000e+00 : f32
    %768 = vector.broadcast %cst_41 : f32 to vector<16x128xf32>
    %769 = arith.maximumf %767, %768 : vector<16x128xf32>
    %770 = vector.broadcast %5 : vector<1x128xf32> to vector<16x128xf32>
    %771 = arith.addf %737, %770 : vector<16x128xf32>
    %cst_42 = arith.constant 0.000000e+00 : f32
    %772 = vector.broadcast %cst_42 : f32 to vector<16x128xf32>
    %773 = arith.maximumf %771, %772 : vector<16x128xf32>
    %774 = vector.broadcast %5 : vector<1x128xf32> to vector<16x128xf32>
    %775 = arith.addf %741, %774 : vector<16x128xf32>
    %cst_43 = arith.constant 0.000000e+00 : f32
    %776 = vector.broadcast %cst_43 : f32 to vector<16x128xf32>
    %777 = arith.maximumf %775, %776 : vector<16x128xf32>
    %778 = vector.broadcast %5 : vector<1x128xf32> to vector<16x128xf32>
    %779 = arith.addf %745, %778 : vector<16x128xf32>
    %cst_44 = arith.constant 0.000000e+00 : f32
    %780 = vector.broadcast %cst_44 : f32 to vector<16x128xf32>
    %781 = arith.maximumf %779, %780 : vector<16x128xf32>
    %782 = vector.broadcast %5 : vector<1x128xf32> to vector<16x128xf32>
    %783 = arith.addf %749, %782 : vector<16x128xf32>
    %cst_45 = arith.constant 0.000000e+00 : f32
    %784 = vector.broadcast %cst_45 : f32 to vector<16x128xf32>
    %785 = arith.maximumf %783, %784 : vector<16x128xf32>
    %786 = vector.broadcast %5 : vector<1x128xf32> to vector<16x128xf32>
    %787 = arith.addf %753, %786 : vector<16x128xf32>
    %cst_46 = arith.constant 0.000000e+00 : f32
    %788 = vector.broadcast %cst_46 : f32 to vector<16x128xf32>
    %789 = arith.maximumf %787, %788 : vector<16x128xf32>
    %790 = vector.broadcast %5 : vector<1x128xf32> to vector<16x128xf32>
    %791 = arith.addf %757, %790 : vector<16x128xf32>
    %cst_47 = arith.constant 0.000000e+00 : f32
    %792 = vector.broadcast %cst_47 : f32 to vector<16x128xf32>
    %793 = arith.maximumf %791, %792 : vector<16x128xf32>
    %794 = vector.broadcast %5 : vector<1x128xf32> to vector<16x128xf32>
    %795 = arith.addf %761, %794 : vector<16x128xf32>
    %cst_48 = arith.constant 0.000000e+00 : f32
    %796 = vector.broadcast %cst_48 : f32 to vector<16x128xf32>
    %797 = arith.maximumf %795, %796 : vector<16x128xf32>
    %798 = vector.broadcast %5 : vector<1x128xf32> to vector<16x128xf32>
    %799 = arith.addf %765, %798 : vector<16x128xf32>
    %cst_49 = arith.constant 0.000000e+00 : f32
    %800 = vector.broadcast %cst_49 : f32 to vector<16x128xf32>
    %801 = arith.maximumf %799, %800 : vector<16x128xf32>
    %802 = vector.extract_strided_slice %371 {offsets = [0, 0], sizes = [16, 128], strides = [1, 1]} : vector<17x128xf32> to vector<16x128xf32>
    %803 = arith.truncf %802 : vector<16x128xf32> to vector<16x128xbf16>
    %804 = vector.extract_strided_slice %375 {offsets = [0, 0], sizes = [16, 128], strides = [1, 1]} : vector<17x128xf32> to vector<16x128xf32>
    %805 = arith.truncf %804 : vector<16x128xf32> to vector<16x128xbf16>
    %806 = vector.extract_strided_slice %379 {offsets = [0, 0], sizes = [16, 128], strides = [1, 1]} : vector<17x128xf32> to vector<16x128xf32>
    %807 = arith.truncf %806 : vector<16x128xf32> to vector<16x128xbf16>
    %808 = vector.extract_strided_slice %383 {offsets = [0, 0], sizes = [16, 128], strides = [1, 1]} : vector<17x128xf32> to vector<16x128xf32>
    %809 = arith.truncf %808 : vector<16x128xf32> to vector<16x128xbf16>
    %810 = vector.extract_strided_slice %387 {offsets = [0, 0], sizes = [16, 128], strides = [1, 1]} : vector<17x128xf32> to vector<16x128xf32>
    %811 = arith.truncf %810 : vector<16x128xf32> to vector<16x128xbf16>
    %812 = vector.extract_strided_slice %391 {offsets = [0, 0], sizes = [16, 128], strides = [1, 1]} : vector<17x128xf32> to vector<16x128xf32>
    %813 = arith.truncf %812 : vector<16x128xf32> to vector<16x128xbf16>
    %814 = vector.extract_strided_slice %395 {offsets = [0, 0], sizes = [16, 128], strides = [1, 1]} : vector<17x128xf32> to vector<16x128xf32>
    %815 = arith.truncf %814 : vector<16x128xf32> to vector<16x128xbf16>
    %816 = vector.extract_strided_slice %399 {offsets = [0, 0], sizes = [16, 128], strides = [1, 1]} : vector<17x128xf32> to vector<16x128xf32>
    %817 = arith.truncf %816 : vector<16x128xf32> to vector<16x128xbf16>
    %818 = vector.extract_strided_slice %403 {offsets = [0, 0], sizes = [16, 128], strides = [1, 1]} : vector<17x128xf32> to vector<16x128xf32>
    %819 = arith.truncf %818 : vector<16x128xf32> to vector<16x128xbf16>
    %820 = arith.truncf %769 : vector<16x128xf32> to vector<16x128xbf16>
    %821 = arith.truncf %773 : vector<16x128xf32> to vector<16x128xbf16>
    %822 = arith.truncf %777 : vector<16x128xf32> to vector<16x128xbf16>
    %823 = arith.truncf %781 : vector<16x128xf32> to vector<16x128xbf16>
    %824 = arith.truncf %785 : vector<16x128xf32> to vector<16x128xbf16>
    %825 = arith.truncf %789 : vector<16x128xf32> to vector<16x128xbf16>
    %826 = arith.truncf %793 : vector<16x128xf32> to vector<16x128xbf16>
    %827 = arith.truncf %797 : vector<16x128xf32> to vector<16x128xbf16>
    %828 = arith.truncf %801 : vector<16x128xf32> to vector<16x128xbf16>
    %829 = vector.extract_strided_slice %371 {offsets = [1, 0], sizes = [16, 128], strides = [1, 1]} : vector<17x128xf32> to vector<16x128xf32>
    %830 = arith.truncf %829 : vector<16x128xf32> to vector<16x128xbf16>
    %831 = vector.extract_strided_slice %375 {offsets = [1, 0], sizes = [16, 128], strides = [1, 1]} : vector<17x128xf32> to vector<16x128xf32>
    %832 = arith.truncf %831 : vector<16x128xf32> to vector<16x128xbf16>
    %833 = vector.extract_strided_slice %379 {offsets = [1, 0], sizes = [16, 128], strides = [1, 1]} : vector<17x128xf32> to vector<16x128xf32>
    %834 = arith.truncf %833 : vector<16x128xf32> to vector<16x128xbf16>
    %835 = vector.extract_strided_slice %383 {offsets = [1, 0], sizes = [16, 128], strides = [1, 1]} : vector<17x128xf32> to vector<16x128xf32>
    %836 = arith.truncf %835 : vector<16x128xf32> to vector<16x128xbf16>
    %837 = vector.extract_strided_slice %387 {offsets = [1, 0], sizes = [16, 128], strides = [1, 1]} : vector<17x128xf32> to vector<16x128xf32>
    %838 = arith.truncf %837 : vector<16x128xf32> to vector<16x128xbf16>
    %839 = vector.extract_strided_slice %391 {offsets = [1, 0], sizes = [16, 128], strides = [1, 1]} : vector<17x128xf32> to vector<16x128xf32>
    %840 = arith.truncf %839 : vector<16x128xf32> to vector<16x128xbf16>
    %841 = vector.extract_strided_slice %395 {offsets = [1, 0], sizes = [16, 128], strides = [1, 1]} : vector<17x128xf32> to vector<16x128xf32>
    %842 = arith.truncf %841 : vector<16x128xf32> to vector<16x128xbf16>
    %843 = vector.extract_strided_slice %399 {offsets = [1, 0], sizes = [16, 128], strides = [1, 1]} : vector<17x128xf32> to vector<16x128xf32>
    %844 = arith.truncf %843 : vector<16x128xf32> to vector<16x128xbf16>
    %845 = vector.extract_strided_slice %403 {offsets = [1, 0], sizes = [16, 128], strides = [1, 1]} : vector<17x128xf32> to vector<16x128xf32>
    %846 = arith.truncf %845 : vector<16x128xf32> to vector<16x128xbf16>
    %847 = tpu.concatenate %803, %807, %811, %815 in 0 : vector<16x128xbf16>, vector<16x128xbf16>, vector<16x128xbf16>, vector<16x128xbf16> -> vector<64x128xbf16>
    %848 = tpu.concatenate %805, %809, %813, %817 in 0 : vector<16x128xbf16>, vector<16x128xbf16>, vector<16x128xbf16>, vector<16x128xbf16> -> vector<64x128xbf16>
    %849 = tpu.concatenate %807, %811, %815, %819 in 0 : vector<16x128xbf16>, vector<16x128xbf16>, vector<16x128xbf16>, vector<16x128xbf16> -> vector<64x128xbf16>
    %850 = tpu.concatenate %820, %822, %824, %826 in 0 : vector<16x128xbf16>, vector<16x128xbf16>, vector<16x128xbf16>, vector<16x128xbf16> -> vector<64x128xbf16>
    %851 = tpu.concatenate %821, %823, %825, %827 in 0 : vector<16x128xbf16>, vector<16x128xbf16>, vector<16x128xbf16>, vector<16x128xbf16> -> vector<64x128xbf16>
    %852 = tpu.concatenate %822, %824, %826, %828 in 0 : vector<16x128xbf16>, vector<16x128xbf16>, vector<16x128xbf16>, vector<16x128xbf16> -> vector<64x128xbf16>
    %853 = tpu.concatenate %830, %834, %838, %842 in 0 : vector<16x128xbf16>, vector<16x128xbf16>, vector<16x128xbf16>, vector<16x128xbf16> -> vector<64x128xbf16>
    %854 = tpu.concatenate %832, %836, %840, %844 in 0 : vector<16x128xbf16>, vector<16x128xbf16>, vector<16x128xbf16>, vector<16x128xbf16> -> vector<64x128xbf16>
    %855 = tpu.concatenate %834, %838, %842, %846 in 0 : vector<16x128xbf16>, vector<16x128xbf16>, vector<16x128xbf16>, vector<16x128xbf16> -> vector<64x128xbf16>
    %856 = tpu.concatenate %847, %848, %849, %850, %851, %852, %853, %854, %855 in 1 : vector<64x128xbf16>, vector<64x128xbf16>, vector<64x128xbf16>, vector<64x128xbf16>, vector<64x128xbf16>, vector<64x128xbf16>, vector<64x128xbf16>, vector<64x128xbf16>, vector<64x128xbf16> -> vector<64x1152xbf16>
    %c0_50 = arith.constant 0 : index
    %c0_51 = arith.constant 0 : index
    %857 = vector.load %arg7[%c0_50, %c0_51] : memref<1152x128xbf16, #tpu.memory_space<vmem>>, vector<1152x128xbf16>
    %cst_52 = arith.constant dense<0.000000e+00> : vector<64x128xf32>
    %858 = tpu.matmul %856, %857, %cst_52 {dimension_numbers = #tpu.dot_dimension_numbers<[1], [0], [0], [1], [0, 0, 1, 1], [], []>} : vector<64x1152xbf16>, vector<1152x128xbf16>, vector<64x128xf32> -> vector<64x128xf32>
    %859 = vector.broadcast %6 : vector<1x128xf32> to vector<64x128xf32>
    %860 = arith.addf %858, %859 : vector<64x128xf32>
    %cst_53 = arith.constant 0.000000e+00 : f32
    %861 = vector.broadcast %cst_53 : f32 to vector<64x128xf32>
    %862 = arith.maximumf %860, %861 : vector<64x128xf32>
    %863 = vector.extract_strided_slice %862 {offsets = [0, 0], sizes = [16, 128], strides = [1, 1]} : vector<64x128xf32> to vector<16x128xf32>
    %864 = vector.extract_strided_slice %862 {offsets = [16, 0], sizes = [16, 128], strides = [1, 1]} : vector<64x128xf32> to vector<16x128xf32>
    %865 = vector.extract_strided_slice %862 {offsets = [32, 0], sizes = [16, 128], strides = [1, 1]} : vector<64x128xf32> to vector<16x128xf32>
    %866 = vector.extract_strided_slice %862 {offsets = [48, 0], sizes = [16, 128], strides = [1, 1]} : vector<64x128xf32> to vector<16x128xf32>
    %867 = tpu.concatenate %863, %864, %865, %866 in 1 : vector<16x128xf32>, vector<16x128xf32>, vector<16x128xf32>, vector<16x128xf32> -> vector<16x512xf32>
    %868 = arith.truncf %867 : vector<16x512xf32> to vector<16x512xbf16>
    %c0_54 = arith.constant 0 : index
    %c0_55 = arith.constant 0 : index
    %869 = vector.load %arg9[%c0_54, %c0_55] : memref<512x128xbf16, #tpu.memory_space<vmem>>, vector<512x128xbf16>
    %cst_56 = arith.constant dense<0.000000e+00> : vector<16x128xf32>
    %870 = tpu.matmul %868, %869, %cst_56 {dimension_numbers = #tpu.dot_dimension_numbers<[1], [0], [0], [1], [0, 0, 1, 1], [], []>} : vector<16x512xbf16>, vector<512x128xbf16>, vector<16x128xf32> -> vector<16x128xf32>
    %871 = vector.broadcast %7 : vector<1x128xf32> to vector<16x128xf32>
    %872 = arith.addf %870, %871 : vector<16x128xf32>
    %cst_57 = arith.constant 5.65685415 : f32
    %873 = vector.broadcast %cst_57 : f32 to vector<16x128xf32>
    %874 = arith.mulf %872, %873 : vector<16x128xf32>
    %c0_58 = arith.constant 0 : index
    %c0_59 = arith.constant 0 : index
    %875 = vector.load %arg11[%c0_58, %c0_59] : memref<16x128xf32, #tpu.memory_space<vmem>>, vector<16x128xf32>
    %876 = arith.addf %874, %875 : vector<16x128xf32>
    %c0_60 = arith.constant 0 : index
    %c0_61 = arith.constant 0 : index
    %877 = vector.load %arg12[%c0_60, %c0_61] : memref<16x128xf32, #tpu.memory_space<vmem>>, vector<16x128xf32>
    tpu.vector_store %arg12[%c0_60, %c0_61], %876 {strides = array<i32>} : memref<16x128xf32, #tpu.memory_space<vmem>>, vector<16x128xf32>,
    return
  }
  func.func @transform_0(%arg0: i32) -> (i32, i32) {
    %c0_i32 = arith.constant 0 : i32
    %c0_i32_0 = arith.constant 0 : i32
    %c0_i32_1 = arith.constant 0 : i32
    return %c0_i32, %c0_i32_0 : i32, i32
  }
  func.func @transform_1(%arg0: i32) -> (i32, i32) {
    %c0_i32 = arith.constant 0 : i32
    %c0_i32_0 = arith.constant 0 : i32
    %c0_i32_1 = arith.constant 0 : i32
    return %c0_i32, %c0_i32_0 : i32, i32
  }
  func.func @transform_2(%arg0: i32) -> (i32, i32) {
    %c0_i32 = arith.constant 0 : i32
    %c0_i32_0 = arith.constant 0 : i32
    %c0_i32_1 = arith.constant 0 : i32
    return %c0_i32, %c0_i32_0 : i32, i32
  }
  func.func @transform_3(%arg0: i32) -> (i32, i32) {
    %c0_i32 = arith.constant 0 : i32
    %c0_i32_0 = arith.constant 0 : i32
    %c0_i32_1 = arith.constant 0 : i32
    return %c0_i32, %c0_i32_0 : i32, i32
  }
  func.func @transform_4(%arg0: i32) -> (i32, i32) {
    %c0_i32 = arith.constant 0 : i32
    %c0_i32_0 = arith.constant 0 : i32
    %c0_i32_1 = arith.constant 0 : i32
    return %c0_i32, %c0_i32_0 : i32, i32
  }
  func.func @transform_5(%arg0: i32) -> (i32, i32) {
    %c0_i32 = arith.constant 0 : i32
    %c0_i32_0 = arith.constant 0 : i32
    %c0_i32_1 = arith.constant 0 : i32
    return %c0_i32, %c0_i32_0 : i32, i32
  }
  func.func @transform_6(%arg0: i32) -> (i32, i32) {
    %c0_i32 = arith.constant 0 : i32
    %c0_i32_0 = arith.constant 0 : i32
    %c0_i32_1 = arith.constant 0 : i32
    return %c0_i32, %c0_i32_0 : i32, i32
  }
  func.func @transform_7(%arg0: i32) -> (i32, i32) {
    %c0_i32 = arith.constant 0 : i32
    %c0_i32_0 = arith.constant 0 : i32
    %c0_i32_1 = arith.constant 0 : i32
    return %c0_i32, %c0_i32_0 : i32, i32
  }
  func.func @transform_8(%arg0: i32) -> (i32, i32) {
    %c0_i32 = arith.constant 0 : i32
    %c0_i32_0 = arith.constant 0 : i32
    %c0_i32_1 = arith.constant 0 : i32
    return %c0_i32, %c0_i32_0 : i32, i32
  }
  func.func @transform_9(%arg0: i32) -> (i32, i32) {
    %c0_i32 = arith.constant 0 : i32
    %c0_i32_0 = arith.constant 0 : i32
    %c0_i32_1 = arith.constant 0 : i32
    return %c0_i32, %c0_i32_0 : i32, i32
  }
  func.func @transform_10(%arg0: i32) -> (i32, i32) {
    %c0_i32 = arith.constant 0 : i32
    %c0_i32_0 = arith.constant 0 : i32
    %c0_i32_1 = arith.constant 0 : i32
    return %c0_i32, %c0_i32_0 : i32, i32
  }
  func.func @transform_11(%arg0: i32) -> (i32, i32) {
    %c0_i32 = arith.constant 0 : i32
    %c0_i32_0 = arith.constant 0 : i32
    %c0_i32_1 = arith.constant 0 : i32
    return %c0_i32, %c0_i32_0 : i32, i32
  }
}

</mosaic_0001>

<bundles_post_ra>
// kernel: conv2d_subsampling4_forward.1
= control target key start
LH: loop header
LB: loop body
LE: loop exit
PB: predicated region body
PF: predicated region fallthrough
CT: control target
= control target key end

     0   :  { %16 = vsyncpa [#allocation3], 0  ;;  %s6898_s0 = inlined_call_operand.vmem [shape: f32[17,19], index: 0, kind: input, shape index: {}]   ;;  %s6899_s1 = inlined_call_operand.vmem [shape: f32[17,19], index: 1, kind: input, shape index: {}]   ;;  %s6900_s2 = inlined_call_operand.vmem [shape: f32[17,19], index: 2, kind: input, shape index: {}]   ;;  %s6901_s3 = inlined_call_operand.vmem [shape: f32[16,19], index: 3, kind: input, shape index: {}]   ;;  %s6902_s4 = inlined_call_operand.hbm [shape: f32[9,128], index: 4, kind: input, shape index: {}]   ;;  %s6903_s5 = inlined_call_operand.hbm [shape: f32[1,128], index: 5, kind: input, shape index: {}]   ;;  %s6904_s6 = inlined_call_operand.hbm [shape: bf16[1152,128], index: 6, kind: input, shape index: {}]   ;;  %s6905_s7 = inlined_call_operand.hbm [shape: f32[1,128], index: 7, kind: input, shape index: {}]   ;;  %s6906_s8 = inlined_call_operand.hbm [shape: bf16[512,128], index: 8, kind: input, shape index: {}]   ;;  %s6907_s9 = inlined_call_operand.hbm [shape: f32[1,128], index: 9, kind: input, shape index: {}]   ;;  %s6908_s10 = inlined_call_operand.vmem [shape: f32[16,128], index: 10, kind: input, shape index: {}]   ;;  %s6909_s11 = inlined_call_operand.vmem [shape: f32[16,128], index: 11, kind: output, shape index: {}]  }
   0x1   :  { %17 = vsyncpa [#allocation5], 0 }
   0x2   :  { %18 = vsyncpa [#allocation8], 0  ;;  %s46_s19 = sshll.u32 %s6903_s5, 4  ;;  %s47_s19 = int_to_ptr.hbm [resolvable:$true] %s46_s19 }
   0x3   :  { %19 = vsyncpa [#allocation11], 0  ;;  %s4575_s20 = smov [#allocation4]   ;;  %s70_s24 = sshll.u32 %s6905_s7, 4  ;;  %s71_s24 = int_to_ptr.hbm [resolvable:$true] %s70_s24 }
   0x4   :  { %s48_s21 = sshll.u32 %s4575_s20, 4  ;;  %s4576_s25 = smov [#allocation7]   ;;  %s49_s21 = int_to_ptr.vmem [resolvable:$true] %s48_s21 }
   0x5   :  { %51 = dma.hbm_to_vmem [thread:$0]  %s47_s19, 16, %s49_s21, [#allocation5]  }
   0x6   :  { %s72_s26 = sshll.u32 %s4576_s25, 4  ;;  %s32_s29 = sshll.u32 %s6902_s4, 4  ;;  %s73_s26 = int_to_ptr.vmem [resolvable:$true] %s72_s26  ;;  %s33_s29 = int_to_ptr.hbm [resolvable:$true] %s32_s29 }
   0x7   :  { %75 = dma.hbm_to_vmem [thread:$0]  %s71_s24, 16, %s73_s26, [#allocation8]  }
   0x8   :  { %s4577_s5 = smov [#allocation2]   ;;  %s56_s14 = sshll.u32 %s6904_s6, 4  ;;  %s57_s14 = int_to_ptr.hbm [resolvable:$true] %s56_s14 }
   0x9   :  { %s34_s30 = sshll.u32 %s4577_s5, 4  ;;  %s4578_s15 = smov 128   ;;  %s35_s30 = int_to_ptr.vmem [resolvable:$true] %s34_s30 }
   0xa   :  { %s4579_s7 = smov 8   ;;  %s4580_s16 = smov [#allocation6]  }
   0xb   :  { %40 = dma.hbm_to_vmem [thread:$0]  %s33_s29, 256, %s35_s30, [#allocation3], %s4578_s15, %s4578_s15, %s4579_s7  }
   0xc   :  { %s58_s17 = sshll.u32 %s4580_s16, 4  ;;  %s4581_s18 = smov 64   ;;  %s59_s17 = int_to_ptr.vmem [resolvable:$true] %s58_s17 }
   0xd   :  { %s4582_s19 = smov 4   ;;  %s80_s21 = sshll.u32 %s6906_s8, 4  ;;  %s81_s21 = int_to_ptr.hbm [resolvable:$true] %s80_s21 }
   0xe   :  { %64 = dma.hbm_to_vmem [thread:$0]  %s57_s14, 9216, %s59_s17, [#allocation5], %s4581_s18, %s4581_s18, %s4582_s19  }
   0xf   :  { %s4583_s22 = smov [#allocation9]   ;;  %s94_s25 = sshll.u32 %s6907_s9, 4  ;;  %s95_s25 = int_to_ptr.hbm [resolvable:$true] %s94_s25 }
  0x10   :  { %s82_s23 = sshll.u32 %s4583_s22, 4  ;;  %s4584_s26 = smov [#allocation10]   ;;  %s83_s23 = int_to_ptr.vmem [resolvable:$true] %s82_s23 }
  0x11   :  { %88 = dma.hbm_to_vmem [thread:$0]  %s81_s21, 4096, %s83_s23, [#allocation8], %s4581_s18, %s4581_s18, %s4582_s19  }
  0x12   :  { %s96_s27 = sshll.u32 %s4584_s26, 4  ;;  %s97_s27 = int_to_ptr.vmem [resolvable:$true] %s96_s27 }
  0x13   :  { %99 = dma.hbm_to_vmem [thread:$0]  %s95_s25, 16, %s97_s27, [#allocation11]  }
  0x14   :  { %4567 = dma.done.wait [#allocation3], 256  }
  0x15   :  { %4568 = vsyncadd [#allocation3], 4294967040 }
  0x16   :  { %4569 = dma.done.wait [#allocation5], 9232  }
  0x17   :  { %4570 = vsyncadd [#allocation5], 4294958064 }
  0x18   :  { %4571 = dma.done.wait [#allocation8], 4112  }
  0x19   :  { %4572 = vsyncadd [#allocation8], 4294963184 }
  0x1a   :  { %4573 = dma.done.wait [#allocation11], 16  }
  0x1b   :  { %4574 = vsyncadd [#allocation11], 4294967280  ;;  %v6933_v0 = vmov 14   ;;  %v6931_v1 = vmov 2   ;;  %v6918_v2 = vmov 0   ;;  %v4693_v4 = vld [vmem:[%s6898_s0 + $0x8] sm:$0xff] }
  0x1c   :  { %4250 = vset.pattern.permute.xlu0 %v6933_v0  ;;  %4239 = vset.pattern.permute.xlu2 %v6931_v1  ;;  %v4688_v3 = vld [vmem:[%s6898_s0 + $0x10] sm:$0x1]  ;;  %v4698_v5 = vld [vmem:[%s6898_s0] sm:$0xff]  ;;  %v6914_v6 = vmov 7   ;;  %v6937_v7 = vmov 4   ;;  %v6910_v8 = vmov 17  }
  0x1d   :  { %4237 = vset.pattern.permute.xlu1 %v6918_v2  ;;  %169 = vperm.xlu2 %4239, %v4693_v4   ;;  %v6943_v9 = vmov 6   ;;  %v4718_v10 = vld [vmem:[%s6899_s1 + $0x8] sm:$0xff]  ;;  %v6946_v11 = vmov 8   ;;  %v6941_v12 = vmov 12   ;;  %v6952_v13 = vmov 10   ;;  %v4739_v15 = vld [vmem:[%s6899_s1] sm:$0xff] }
  0x1e   :  { %155 = vperm.xlu1 %4237, %v4688_v3   ;;  %273 = vperm.xlu0 %4250, %v4698_v5   ;;  %v6928_v14 = vmov 16   ;;  %v4749_v16 = vld [vmem:[%s6899_s1 + $0x10] sm:$0x1]  ;;  %v6924_v17 = vmov 1   ;;  %v6912_v18 = vmov 11   ;;  %v6922_v21 = vmov 3  }
  0x1f   :  { %v4778_v20 = vld [vmem:[%s6900_s2 + $0x10] sm:$0x1]  ;;  %v6916_v23 = vmov 5   ;;  %v4797_v25 = vld [vmem:[%s6900_s2 + $0x8] sm:$0xff]  ;;  %v4824_v32 = vld [vmem:[%s6900_s2] sm:$0xff]  ;;  %v6935_v33 = vmov 9  }
  0x20   :  { %v6939_v40 = vmov 13   ;;  %v4862_v44 = vld [vmem:[%s6901_s3 + $0x8] sm:$0xff]  ;;  %v6926_v46 = vmov 15   ;;  %v4900_v55 = vld [vmem:[%s6901_s3] sm:$0xff]  ;;  %v6920_v56 = vmov 18   ;;  %vm1763_vm0 = vcmask 1046528  }
  0x21   :  { %7125 = vst [vmem:[#allocation39_spill] sm:$0xff] %v4900_v55  ;;  %v4918_v61 = vld [vmem:[#allocation2] sm:$0xff]  ;;  %vm2355_vm1 = vsmask.f32 7424 }
  0x25   :  { %173 = vperm.xlu2 %4239, %v4688_v3  }
  0x26   :  { %4238 = vset.pattern.permute.xlu1 %v6931_v1  ;;  %4261 = vset.pattern.permute.xlu0 %v6914_v6 }
  0x27   :  { %165 = vperm.xlu1 %4238, %v4698_v5   ;;  %364 = vperm.xlu0 %4261, %v4698_v5  }
  0x2d   :  { %4241 = vset.pattern.permute.xlu2 %v6937_v7 }
  0x2e   :  { %191 = vperm.xlu2 %4241, %v4688_v3  }
  0x2f   :  { %4240 = vset.pattern.permute.xlu1 %v6937_v7  ;;  %4272 = vset.pattern.permute.xlu0 %v6910_v8 }
  0x30   :  { %187 = vperm.xlu1 %4240, %v4693_v4   ;;  %454 = vperm.xlu0 %4272, %v4698_v5  }
  0x36   :  { %4243 = vset.pattern.permute.xlu2 %v6943_v9 }
  0x37   :  { %205 = vperm.xlu2 %4243, %v4693_v4  }
  0x38   :  { %4242 = vset.pattern.permute.xlu1 %v6943_v9  ;;  %4280 = vset.pattern.permute.xlu0 %v6931_v1 }
  0x39   :  { %201 = vperm.xlu1 %4242, %v4698_v5   ;;  %565 = vperm.xlu0 %4280, %v4718_v10  }
  0x3f   :  { %4245 = vset.pattern.permute.xlu2 %v6946_v11 }
  0x40   :  { %223 = vperm.xlu2 %4245, %v4693_v4  }
  0x41   :  { %4244 = vset.pattern.permute.xlu1 %v6946_v11  ;;  %4291 = vset.pattern.permute.xlu0 %v6941_v12 }
  0x42   :  { %219 = vperm.xlu1 %4244, %v4698_v5   ;;  %655 = vperm.xlu0 %4291, %v4718_v10  }
  0x48   :  { %4246 = vset.pattern.permute.xlu2 %v6952_v13 }
  0x49   :  { %237 = vperm.xlu2 %4246, %v4698_v5  }
  0x4a   :  { %227 = vperm.xlu1 %4244, %v4688_v3   ;;  %4292 = vset.pattern.permute.xlu0 %v6928_v14 }
  0x4b   :  { %299 = vperm.xlu0 %4292, %v4688_v3  }
  0x51   :  { %4248 = vset.pattern.permute.xlu2 %v6941_v12 }
  0x52   :  { %4247 = vset.pattern.permute.xlu1 %v6952_v13  ;;  %255 = vperm.xlu2 %4248, %v4698_v5  }
  0x53   :  { %245 = vperm.xlu1 %4247, %v4688_v3   ;;  %687 = vperm.xlu0 %4292, %v4739_v15  }
  0x5a   :  { %263 = vperm.xlu2 %4248, %v4688_v3  }
  0x5b   :  { %4249 = vset.pattern.permute.xlu1 %v6941_v12  ;;  %4300 = vset.pattern.permute.xlu0 %v6924_v17 }
  0x5c   :  { %259 = vperm.xlu1 %4249, %v4693_v4   ;;  %714 = vperm.xlu0 %4300, %v4749_v16  }
  0x62   :  { %4252 = vset.pattern.permute.xlu2 %v6933_v0 }
  0x63   :  { %281 = vperm.xlu2 %4252, %v4688_v3  }
  0x64   :  { %4251 = vset.pattern.permute.xlu1 %v6933_v0  ;;  %4311 = vset.pattern.permute.xlu0 %v6912_v18 }
  0x65   :  { %277 = vperm.xlu1 %4251, %v4693_v4   ;;  %804 = vperm.xlu0 %4311, %v4749_v16  }
  0x6b   :  { %4254 = vset.pattern.permute.xlu2 %v6928_v14 }
  0x6c   :  { %295 = vperm.xlu2 %4254, %v4693_v4  }
  0x6d   :  { %4253 = vset.pattern.permute.xlu1 %v6928_v14  ;;  %4312 = vset.pattern.permute.xlu0 %v6918_v2 }
  0x6e   :  { %291 = vperm.xlu1 %4253, %v4698_v5   ;;  %145 = vperm.xlu0 %4312, %v4698_v5  }
  0x74   :  { %4256 = vset.pattern.permute.xlu2 %v6924_v17 }
  0x75   :  { %314 = vperm.xlu2 %4256, %v4693_v4  }
  0x76   :  { %4255 = vset.pattern.permute.xlu1 %v6924_v17  ;;  %150 = vperm.xlu0 %4312, %v4693_v4  }
  0x77   :  { %310 = vperm.xlu1 %4255, %v4698_v5   ;;  %v4773_v19 = vpop.permute.xlu2 %169 }
  0x78   :  { %7102 = vst [vmem:[#allocation16_spill] sm:$0xff] %v4773_v19 }
  0x7d   :  { %4257 = vset.pattern.permute.xlu2 %v6922_v21 }
  0x7e   :  { %947 = vperm.xlu0 %4312, %v4778_v20   ;;  %328 = vperm.xlu2 %4257, %v4698_v5  }
  0x7f   :  { %318 = vperm.xlu1 %4255, %v4688_v3   ;;  %v4784_v22 = vpop.permute.xlu2 %173 }
  0x80   :  { %7103 = vst [vmem:[#allocation17_spill] sm:$0xff] %v4784_v22 }
  0x86   :  { %4323 = vset.pattern.permute.xlu0 %v6937_v7  ;;  %4259 = vset.pattern.permute.xlu2 %v6916_v23 }
  0x87   :  { %183 = vperm.xlu0 %4323, %v4698_v5   ;;  %4258 = vset.pattern.permute.xlu1 %v6922_v21 }
  0x88   :  { %346 = vperm.xlu2 %4259, %v4698_v5   ;;  %336 = vperm.xlu1 %4258, %v4688_v3   ;;  %v4792_v24 = vpop.permute.xlu2 %191 }
  0x89   :  { %7104 = vst [vmem:[#allocation18_spill] sm:$0xff] %v4792_v24  ;;  %v7177_v24 = vmov 7  }
  0x8f   :  { %979 = vperm.xlu0 %4323, %v4797_v25  }
  0x90   :  { %v4800_v26 = vpop.permute.xlu1 %155  ;;  %354 = vperm.xlu2 %4259, %v4688_v3   ;;  %4260 = vset.pattern.permute.xlu1 %v6916_v23  ;;  %v4804_v27 = vpop.permute.xlu0 %273 }
  0x91   :  { %7105 = vst [vmem:[#allocation19_spill] sm:$0xff] %v4800_v26  ;;  %350 = vperm.xlu1 %4260, %v4693_v4   ;;  %v4807_v28 = vpop.permute.xlu2 %205 }
  0x92   :  { %7106 = vst [vmem:[#allocation20_spill] sm:$0xff] %v4804_v27 }
  0x97   :  { %4327 = vset.pattern.permute.xlu0 %v6946_v11 }
  0x98   :  { %623 = vperm.xlu0 %4327, %v4749_v16   ;;  %4263 = vset.pattern.permute.xlu2 %v6914_v6 }
  0x99   :  { %v4812_v29 = vpop.permute.xlu1 %165  ;;  %372 = vperm.xlu2 %4263, %v4688_v3   ;;  %4262 = vset.pattern.permute.xlu1 %v6914_v6  ;;  %v4816_v30 = vpop.permute.xlu0 %364 }
  0x9a   :  { %7107 = vst [vmem:[#allocation21_spill] sm:$0xff] %v4816_v30  ;;  %368 = vperm.xlu1 %4262, %v4693_v4   ;;  %v4819_v31 = vpop.permute.xlu2 %223 }
  0x9b   :  { %7108 = vst [vmem:[#allocation22_spill] sm:$0xff] %v4819_v31 }
  0xa0   :  { %1011 = vperm.xlu0 %4327, %v4824_v32  }
  0xa1   :  { %4265 = vset.pattern.permute.xlu2 %v6935_v33 }
  0xa2   :  { %v4828_v34 = vpop.permute.xlu1 %187  ;;  %386 = vperm.xlu2 %4265, %v4693_v4   ;;  %4264 = vset.pattern.permute.xlu1 %v6935_v33  ;;  %v4832_v35 = vpop.permute.xlu0 %454 }
  0xa3   :  { %7109 = vst [vmem:[#allocation23_spill] sm:$0xff] %v4828_v34  ;;  %382 = vperm.xlu1 %4264, %v4698_v5   ;;  %v4835_v36 = vpop.permute.xlu2 %237 }
  0xa4   :  { %7110 = vst [vmem:[#allocation24_spill] sm:$0xff] %v4832_v35 }
  0xa5   :  { %7111 = vst [vmem:[#allocation25_spill] sm:$0xff] %v4835_v36 }
  0xa8   :  { %4331 = vset.pattern.permute.xlu0 %v6922_v21 }
  0xa9   :  { %332 = vperm.xlu0 %4331, %v4693_v4  }
  0xaa   :  { %4267 = vset.pattern.permute.xlu2 %v6912_v18 }
  0xab   :  { %v4840_v37 = vpop.permute.xlu1 %201  ;;  %404 = vperm.xlu2 %4267, %v4693_v4   ;;  %4266 = vset.pattern.permute.xlu1 %v6912_v18  ;;  %v4844_v38 = vpop.permute.xlu0 %565 }
  0xac   :  { %7112 = vst [vmem:[#allocation26_spill] sm:$0xff] %v4840_v37  ;;  %400 = vperm.xlu1 %4266, %v4698_v5   ;;  %v4847_v39 = vpop.permute.xlu2 %255 }
  0xad   :  { %7113 = vst [vmem:[#allocation27_spill] sm:$0xff] %v4847_v39 }
  0xb1   :  { %1120 = vperm.xlu0 %4331, %v4824_v32  }
  0xb3   :  { %4268 = vset.pattern.permute.xlu2 %v6939_v40 }
  0xb4   :  { %v4851_v41 = vpop.permute.xlu1 %219  ;;  %418 = vperm.xlu2 %4268, %v4698_v5   ;;  %408 = vperm.xlu1 %4266, %v4688_v3   ;;  %v4855_v42 = vpop.permute.xlu0 %655 }
  0xb5   :  { %7114 = vst [vmem:[#allocation28_spill] sm:$0xff] %v4851_v41  ;;  %v4857_v43 = vpop.permute.xlu2 %263 }
  0xb6   :  { %7115 = vst [vmem:[#allocation29_spill] sm:$0xff] %v4855_v42  ;;  %v7173_v42 = vmov 18  }
  0xb7   :  { %7116 = vst [vmem:[#allocation30_spill] sm:$0xff] %v4857_v43 }
  0xb9   :  { %1622 = vperm.xlu0 %4331, %v4862_v44  }
  0xbc   :  { %v4865_v45 = vpop.permute.xlu1 %227  ;;  %4270 = vset.pattern.permute.xlu2 %v6926_v46  ;;  %4269 = vset.pattern.permute.xlu1 %v6939_v40 }
  0xbd   :  { %7117 = vst [vmem:[#allocation31_spill] sm:$0xff] %v4865_v45  ;;  %436 = vperm.xlu2 %4270, %v4698_v5   ;;  %426 = vperm.xlu1 %4269, %v4688_v3   ;;  %v4871_v47 = vpop.permute.xlu0 %299  ;;  %v4873_v48 = vpop.permute.xlu2 %281 }
  0xbe   :  { %7118 = vst [vmem:[#allocation32_spill] sm:$0xff] %v4871_v47 }
  0xbf   :  { %7119 = vst [vmem:[#allocation33_spill] sm:$0xff] %v4873_v48 }
  0xc1   :  { %4352 = vset.pattern.permute.xlu0 %v6916_v23 }
  0xc2   :  { %746 = vperm.xlu0 %4352, %v4718_v10  }
  0xc5   :  { %v4877_v49 = vpop.permute.xlu1 %245  ;;  %444 = vperm.xlu2 %4270, %v4688_v3   ;;  %4271 = vset.pattern.permute.xlu1 %v6926_v46  ;;  %v4881_v50 = vpop.permute.xlu0 %687 }
  0xc6   :  { %7120 = vst [vmem:[#allocation34_spill] sm:$0xff] %v4877_v49  ;;  %440 = vperm.xlu1 %4271, %v4693_v4   ;;  %v4884_v51 = vpop.permute.xlu2 %295 }
  0xc7   :  { %7121 = vst [vmem:[#allocation35_spill] sm:$0xff] %v4881_v50 }
  0xc8   :  { %7122 = vst [vmem:[#allocation36_spill] sm:$0xff] %v4884_v51 }
  0xca   :  { %1142 = vperm.xlu0 %4352, %v4797_v25  }
  0xcd   :  { %4274 = vset.pattern.permute.xlu2 %v6910_v8 }
  0xce   :  { %v4888_v52 = vpop.permute.xlu1 %259  ;;  %462 = vperm.xlu2 %4274, %v4688_v3   ;;  %4273 = vset.pattern.permute.xlu1 %v6910_v8  ;;  %v4892_v53 = vpop.permute.xlu0 %714 }
  0xcf   :  { %7123 = vst [vmem:[#allocation37_spill] sm:$0xff] %v4888_v52  ;;  %458 = vperm.xlu1 %4273, %v4693_v4   ;;  %v4895_v54 = vpop.permute.xlu2 %314 }
  0xd0   :  { %7124 = vst [vmem:[#allocation38_spill] sm:$0xff] %v4895_v54 }
  0xd2   :  { %1630 = vperm.xlu0 %4352, %v4900_v55  }
  0xd6   :  { %4276 = vset.pattern.permute.xlu2 %v6920_v56 }
  0xd7   :  { %v4904_v57 = vpop.permute.xlu1 %277  ;;  %525 = vperm.xlu2 %4276, %v4693_v4   ;;  %4275 = vset.pattern.permute.xlu1 %v6920_v56  ;;  %v4908_v58 = vpop.permute.xlu0 %804 }
  0xd8   :  { %7126 = vst [vmem:[#allocation40_spill] sm:$0xff] %v4904_v57  ;;  %521 = vperm.xlu1 %4275, %v4698_v5   ;;  %v4911_v59 = vpop.permute.xlu2 %328  ;;  %v4928_v5 = vperm.slane %v4918_v61, 6 }
  0xd9   :  { %7127 = vst [vmem:[#allocation41_spill] sm:$0xff] %v4908_v58 }
  0xda   :  { %7128 = vst [vmem:[#allocation42_spill] sm:$0xff] %v4911_v59  ;;  %4355 = vset.pattern.permute.xlu0 %v6943_v9 }
  0xdb   :  { %209 = vperm.xlu0 %4355, %v4688_v3  }
  0xdf   :  { %4278 = vset.pattern.permute.xlu2 %v6918_v2 }
  0xe0   :  { %v4916_v60 = vpop.permute.xlu1 %291  ;;  %v4920_v62 = vpop.permute.xlu0 %145  ;;  %546 = vperm.xlu2 %4278, %v4718_v10   ;;  %4277 = vset.pattern.permute.xlu1 %v6918_v2 }
  0xe1   :  { %7129 = vst [vmem:[#allocation43_spill] sm:$0xff] %v4916_v60  ;;  %541 = vperm.xlu1 %4277, %v4739_v15   ;;  %v1757_v8 = vmul.f32 %v4928_v5, %v4920_v62 }
  0xe2   :  { %7130 = vst [vmem:[#allocation44_spill] sm:$0xff] %v4920_v62  ;;  %v4925_v63 = vpop.permute.xlu2 %346 }
  0xe3   :  { %7131 = vst [vmem:[#allocation45_spill] sm:$0xff] %v4925_v63  ;;  %597 = vperm.xlu0 %4355, %v4739_v15   ;;  %v1764_v23 = vrot.slane %v1757_v8, 1 }
  0xe8   :  { %v4933_v18 = vpop.permute.xlu0 %150  ;;  %4279 = vset.pattern.permute.xlu2 %v6931_v1 }
  0xe9   :  { %v4936_v6 = vpop.permute.xlu1 %310  ;;  %v4940_v2 = vmul.f32 %v4928_v5, %v4933_v18  ;;  %561 = vperm.xlu2 %4279, %v4739_v15   ;;  %551 = vperm.xlu1 %4277, %v4749_v16  }
  0xea   :  { %7132 = vst [vmem:[#allocation46_spill] sm:$0xff] %v4936_v6  ;;  %v4945_v21 = vpop.permute.xlu2 %354  ;;  %v5016_v6 = vperm.slane %v4918_v61, 3 }
  0xeb   :  { %7133 = vst [vmem:[#allocation47_spill] sm:$0xff] %v4940_v2  ;;  %v6930_v56 = vrot.slane %v4940_v2, 1  ;;  %1538 = vperm.xlu0 %4355, %v4862_v44   ;;  %v5010_v2 = vperm.slane %v4918_v61, 0 }
  0xec   :  { %7134 = vst [vmem:[#allocation48_spill] sm:$0xff] %v4945_v21 }
  0xed   :  { %v4951_v17 = vsel %vm1763_vm0, %v1764_v23, %v6930_v56 }
  0xee   :  { %7135 = vst [vmem:[#allocation49_spill] sm:$0xff] %v4951_v17  ;;  %v5013_v17 = vperm.slane %v4918_v61, 1 }
  0xf0   :  { %v4953_v8 = vpop.permute.xlu0 %947  ;;  %7149 = vst [vmem:[#allocation63_spill] sm:$0xff] %v5013_v17  ;;  %v465_v27 = vmul.f32 %v4832_v35, %v5013_v17 }
  0xf1   :  { %4282 = vset.pattern.permute.xlu2 %v6937_v7  ;;  %4281 = vset.pattern.permute.xlu1 %v6931_v1  ;;  %v4957_v46 = vpop.permute.xlu1 %318 }
  0xf2   :  { %7136 = vst [vmem:[#allocation50_spill] sm:$0xff] %v4957_v46  ;;  %579 = vperm.xlu2 %4282, %v4739_v15   ;;  %569 = vperm.xlu1 %4281, %v4749_v16  }
  0xf3   :  { %4360 = vset.pattern.permute.xlu0 %v6935_v33  ;;  %v4962_v14 = vpop.permute.xlu2 %372 }
  0xf4   :  { %7137 = vst [vmem:[#allocation51_spill] sm:$0xff] %v4962_v14  ;;  %390 = vperm.xlu0 %4360, %v4688_v3  }
  0xf9   :  { %v4965_v23 = vpop.permute.xlu0 %183 }
  0xfa   :  { %7138 = vst [vmem:[#allocation52_spill] sm:$0xff] %v4965_v23  ;;  %587 = vperm.xlu2 %4282, %v4749_v16   ;;  %v4968_v56 = vpop.permute.xlu1 %336  ;;  %4283 = vset.pattern.permute.xlu1 %v6937_v7 }
  0xfb   :  { %7139 = vst [vmem:[#allocation53_spill] sm:$0xff] %v4968_v56  ;;  %583 = vperm.xlu1 %4283, %v4718_v10  }
  0xfc   :  { %778 = vperm.xlu0 %4360, %v4739_v15   ;;  %v4973_v1 = vpop.permute.xlu2 %386 }
  0xfd   :  { %7140 = vst [vmem:[#allocation54_spill] sm:$0xff] %v4973_v1  ;;  %v5021_v1 = vperm.slane %v4918_v61, 2 }
  0xff   :  { %7151 = vst [vmem:[#allocation65_spill] sm:$0xff] %v5021_v1  ;;  %v479_v36 = vmul.f32 %v5021_v1, %v4828_v34 }
 0x101   :  { %v4975_v0 = vpop.permute.xlu0 %979 }
 0x102   :  { %7141 = vst [vmem:[#allocation55_spill] sm:$0xff] %v4975_v0  ;;  %4285 = vset.pattern.permute.xlu2 %v6943_v9 }
 0x103   :  { %605 = vperm.xlu2 %4285, %v4749_v16   ;;  %v4979_v33 = vpop.permute.xlu1 %350  ;;  %4284 = vset.pattern.permute.xlu1 %v6943_v9 }
 0x104   :  { %7142 = vst [vmem:[#allocation56_spill] sm:$0xff] %v4979_v33  ;;  %1654 = vperm.xlu0 %4360, %v4900_v55   ;;  %601 = vperm.xlu1 %4284, %v4718_v10  }
 0x105   :  { %v4984_v7 = vpop.permute.xlu2 %404 }
 0x106   :  { %7143 = vst [vmem:[#allocation57_spill] sm:$0xff] %v4984_v7 }
 0x10a   :  { %v4986_v40 = vpop.permute.xlu0 %623 }
 0x10b   :  { %4287 = vset.pattern.permute.xlu2 %v6946_v11 }
 0x10c   :  { %4364 = vset.pattern.permute.xlu0 %v6952_v13  ;;  %619 = vperm.xlu2 %4287, %v4718_v10   ;;  %v4991_v12 = vpop.permute.xlu1 %368 }
 0x10d   :  { %7144 = vst [vmem:[#allocation58_spill] sm:$0xff] %v4991_v12  ;;  %4286 = vset.pattern.permute.xlu1 %v6946_v11  ;;  %241 = vperm.xlu0 %4364, %v4693_v4  }
 0x10e   :  { %615 = vperm.xlu1 %4286, %v4739_v15   ;;  %v4996_v9 = vpop.permute.xlu2 %418 }
 0x10f   :  { %7145 = vst [vmem:[#allocation59_spill] sm:$0xff] %v4996_v9  ;;  %v7156_v9 = vmov 13  }
 0x112   :  { %v4998_v58 = vpop.permute.xlu0 %1011 }
 0x113   :  { %7146 = vst [vmem:[#allocation60_spill] sm:$0xff] %v4998_v58  ;;  %v573_v58 = vmul.f32 %v4844_v38, %v5016_v6 }
 0x114   :  { %4289 = vset.pattern.permute.xlu2 %v6952_v13 }
 0x115   :  { %1033 = vperm.xlu0 %4364, %v4797_v25   ;;  %637 = vperm.xlu2 %4289, %v4718_v10   ;;  %v5003_v43 = vpop.permute.xlu1 %382 }
 0x116   :  { %7147 = vst [vmem:[#allocation61_spill] sm:$0xff] %v5003_v43  ;;  %4288 = vset.pattern.permute.xlu1 %v6952_v13  ;;  %v177_v13 = vmul.f32 %v4773_v19, %v5010_v2  ;;  %v7152_v43 = vmov 12  }
 0x117   :  { %633 = vperm.xlu1 %4288, %v4739_v15   ;;  %v5007_v11 = vpop.permute.xlu2 %436 }
 0x118   :  { %7148 = vst [vmem:[#allocation62_spill] sm:$0xff] %v5007_v11 }
 0x11b   :  { %v5018_v62 = vpop.permute.xlu0 %332 }
 0x11c   :  { %7150 = vst [vmem:[#allocation64_spill] sm:$0xff] %v5018_v62  ;;  %v340_v31 = vmul.f32 %v5018_v62, %v5013_v17 }
 0x11d   :  { %1562 = vperm.xlu0 %4364, %v4862_v44   ;;  %4290 = vset.pattern.permute.xlu2 %v7152_v43 }
 0x11e   :  { %v343_v12 = vadd.f32 %v340_v31, %v177_v13  ;;  %651 = vperm.xlu2 %4290, %v4739_v15   ;;  %v5034_v56 = vpop.permute.xlu1 %400  ;;  %v7157_v13 = vmov 14  }
 0x11f   :  { %7153 = vst [vmem:[#allocation66_spill] sm:$0xff] %v5034_v56  ;;  %641 = vperm.xlu1 %4288, %v4749_v16   ;;  %v5037_v48 = vpop.permute.xlu2 %444  ;;  %v1396_v56 = vmul.f32 %v4975_v0, %v5010_v2 }
 0x120   :  { %v482_v51 = vadd.f32 %v479_v36, %v343_v12  ;;  %7154 = vst [vmem:[#allocation67_spill] sm:$0xff] %v5037_v48 }
 0x122   :  { %v5039_v62 = vadd.f32 %v573_v58, %v482_v51 }
 0x123   :  { %v5041_v39 = vpop.permute.xlu0 %1120 }
 0x124   :  { %7155 = vst [vmem:[#allocation68_spill] sm:$0xff] %v5041_v39 }
 0x125   :  { %4369 = vset.pattern.permute.xlu0 %v7156_v9 }
 0x126   :  { %422 = vperm.xlu0 %4369, %v4693_v4   ;;  %4294 = vset.pattern.permute.xlu2 %v7157_v13  ;;  %v5046_v31 = vpop.permute.xlu1 %408 }
 0x127   :  { %7158 = vst [vmem:[#allocation69_spill] sm:$0xff] %v5046_v31  ;;  %4293 = vset.pattern.permute.xlu1 %v7152_v43  ;;  %669 = vperm.xlu2 %4294, %v4739_v15   ;;  %v7163_v31 = vmov 16  }
 0x128   :  { %659 = vperm.xlu1 %4293, %v4749_v16   ;;  %v5051_v12 = vpop.permute.xlu2 %462 }
 0x129   :  { %7159 = vst [vmem:[#allocation70_spill] sm:$0xff] %v5051_v12 }
 0x12b   :  { %v5053_v36 = vpop.permute.xlu0 %1622 }
 0x12c   :  { %7160 = vst [vmem:[#allocation71_spill] sm:$0xff] %v5053_v36 }
 0x12e   :  { %1210 = vperm.xlu0 %4369, %v4824_v32  }
 0x12f   :  { %677 = vperm.xlu2 %4294, %v4749_v16   ;;  %v5057_v51 = vpop.permute.xlu1 %426 }
 0x130   :  { %7161 = vst [vmem:[#allocation72_spill] sm:$0xff] %v5057_v51  ;;  %4295 = vset.pattern.permute.xlu1 %v7157_v13 }
 0x131   :  { %673 = vperm.xlu1 %4295, %v4718_v10   ;;  %v5061_v4 = vpop.permute.xlu2 %525 }
 0x132   :  { %7162 = vst [vmem:[#allocation73_spill] sm:$0xff] %v5061_v4  ;;  %v7165_v4 = vmov 15  }
 0x134   :  { %v5063_v58 = vpop.permute.xlu0 %746 }
 0x136   :  { %1678 = vperm.xlu0 %4369, %v4900_v55  }
 0x137   :  { %4297 = vset.pattern.permute.xlu2 %v7163_v31 }
 0x138   :  { %695 = vperm.xlu2 %4297, %v4749_v16   ;;  %v5068_v36 = vpop.permute.xlu1 %440 }
 0x139   :  { %7164 = vst [vmem:[#allocation74_spill] sm:$0xff] %v5068_v36  ;;  %4296 = vset.pattern.permute.xlu1 %v7163_v31  ;;  %v7167_v36 = vmov 1  }
 0x13a   :  { %691 = vperm.xlu1 %4296, %v4718_v10   ;;  %v5072_v51 = vpop.permute.xlu2 %546 }
 0x13c   :  { %v5076_v39 = vpop.permute.xlu0 %1142 }
 0x13d   :  { %v1432_v55 = vmul.f32 %v5076_v39, %v5013_v17 }
 0x13e   :  { %4373 = vset.pattern.permute.xlu0 %v7165_v4 }
 0x13f   :  { %836 = vperm.xlu0 %4373, %v4718_v10   ;;  %v5082_v48 = vadd.f32 %v1432_v55, %v1396_v56  ;;  %v302_v55 = vmul.f32 %v4916_v60, %v5010_v2  ;;  %v7170_v56 = vmov 3  }
 0x140   :  { %4299 = vset.pattern.permute.xlu2 %v7167_v36 }
 0x141   :  { %7166 = vst [vmem:[#allocation75_spill] sm:$0xff] %v5082_v48  ;;  %710 = vperm.xlu2 %4299, %v4718_v10   ;;  %v5086_v13 = vpop.permute.xlu1 %458 }
 0x142   :  { %7168 = vst [vmem:[#allocation76_spill] sm:$0xff] %v5086_v13  ;;  %4298 = vset.pattern.permute.xlu1 %v7167_v36  ;;  %v698_v13 = vmul.f32 %v4881_v50, %v5016_v6  ;;  %v375_v50 = vmul.f32 %v4816_v30, %v5013_v17 }
 0x143   :  { %706 = vperm.xlu1 %4298, %v4739_v15   ;;  %v5090_v43 = vpop.permute.xlu2 %561 }
 0x144   :  { %v5092_v11 = vpop.permute.xlu0 %1630 }
 0x145   :  { %7169 = vst [vmem:[#allocation77_spill] sm:$0xff] %v5092_v11  ;;  %v468_v11 = vadd.f32 %v465_v27, %v302_v55  ;;  %v212_v27 = vmul.f32 %v4840_v37, %v5010_v2  ;;  %v7175_v55 = vmov 5  }
 0x147   :  { %1232 = vperm.xlu0 %4373, %v4797_v25  }
 0x149   :  { %4302 = vset.pattern.permute.xlu2 %v7170_v56 }
 0x14a   :  { %728 = vperm.xlu2 %4302, %v4718_v10   ;;  %v5101_v48 = vpop.permute.xlu1 %521 }
 0x14b   :  { %7171 = vst [vmem:[#allocation78_spill] sm:$0xff] %v5101_v48  ;;  %4301 = vset.pattern.permute.xlu1 %v7170_v56  ;;  %v532_v35 = vmul.f32 %v5101_v48, %v5021_v1  ;;  %v490_v48 = vmul.f32 %v5021_v1, %v4851_v41  ;;  %v323_v56 = vmul.f32 %v4957_v46, %v5013_v17 }
 0x14c   :  { %724 = vperm.xlu1 %4301, %v4739_v15   ;;  %v5109_v36 = vpop.permute.xlu2 %579 }
 0x14d   :  { %v535_v60 = vadd.f32 %v532_v35, %v468_v11  ;;  %v5111_v57 = vpop.permute.xlu0 %209 }
 0x14e   :  { %7172 = vst [vmem:[#allocation79_spill] sm:$0xff] %v5111_v57 }
 0x14f   :  { %4378 = vset.pattern.permute.xlu0 %v7173_v42  ;;  %v5114_v52 = vadd.f32 %v698_v13, %v535_v60  ;;  %v378_v60 = vadd.f32 %v375_v50, %v212_v27 }
 0x150   :  { %529 = vperm.xlu0 %4378, %v4688_v3  }
 0x151   :  { %7174 = vst [vmem:[#allocation80_spill] sm:$0xff] %v5114_v52  ;;  %v493_v30 = vadd.f32 %v490_v48, %v378_v60  ;;  %v5145_v48 = vperm.slane %v4918_v61, 4 }
 0x152   :  { %4303 = vset.pattern.permute.xlu2 %v7175_v55 }
 0x153   :  { %742 = vperm.xlu2 %4303, %v4739_v15   ;;  %v5125_v11 = vpop.permute.xlu1 %541 }
 0x154   :  { %7176 = vst [vmem:[#allocation81_spill] sm:$0xff] %v5125_v11  ;;  %732 = vperm.xlu1 %4301, %v4749_v16   ;;  %v5128_v35 = vpop.permute.xlu2 %587  ;;  %v160_v11 = vmul.f32 %v4800_v26, %v5010_v2  ;;  %v5159_v26 = vperm.slane %v4918_v61, 5 }
 0x155   :  { %v5130_v13 = vpop.permute.xlu0 %597 }
 0x156   :  { %v608_v3 = vmul.f32 %v5130_v13, %v5016_v6  ;;  %v326_v41 = vadd.f32 %v323_v56, %v160_v11 }
 0x158   :  { %v5136_v52 = vadd.f32 %v608_v3, %v493_v30  ;;  %917 = vperm.xlu0 %4378, %v4739_v15   ;;  %v474_v30 = vmul.f32 %v5021_v1, %v4784_v22  ;;  %v719_v3 = vmul.f32 %v4892_v53, %v5145_v48 }
 0x15a   :  { %v477_v11 = vadd.f32 %v474_v30, %v326_v41 }
 0x15b   :  { %4305 = vset.pattern.permute.xlu2 %v7177_v24  ;;  %v552_v50 = vpop.permute.xlu1 %551 }
 0x15c   :  { %4304 = vset.pattern.permute.xlu1 %v7175_v55  ;;  %760 = vperm.xlu2 %4305, %v4739_v15   ;;  %v556_v27 = vmul.f32 %v552_v50, %v5016_v6  ;;  %v952_v50 = vmul.f32 %v4953_v8, %v4928_v5 }
 0x15d   :  { %750 = vperm.xlu1 %4304, %v4749_v16   ;;  %v5151_v60 = vpop.permute.xlu0 %1538  ;;  %v5153_v56 = vpop.permute.xlu2 %605 }
 0x15e   :  { %7178 = vst [vmem:[#allocation82_spill] sm:$0xff] %v5151_v60  ;;  %v559_v46 = vadd.f32 %v556_v27, %v477_v11  ;;  %v232_v11 = vmul.f32 %v4865_v45, %v5010_v2 }
 0x160   :  { %1313 = vperm.xlu0 %4378, %v4824_v32   ;;  %v722_v60 = vadd.f32 %v719_v3, %v559_v46  ;;  %v628_v46 = vmul.f32 %v4986_v40, %v5016_v6  ;;  %v498_v3 = vmul.f32 %v5021_v1, %v4877_v49 }
 0x164   :  { %768 = vperm.xlu2 %4305, %v4749_v16   ;;  %v5162_v22 = vpop.permute.xlu1 %569 }
 0x165   :  { %7179 = vst [vmem:[#allocation83_spill] sm:$0xff] %v5162_v22  ;;  %4306 = vset.pattern.permute.xlu1 %v7177_v24  ;;  %v870_v41 = vmul.f32 %v5159_v26, %v5162_v22 }
 0x166   :  { %764 = vperm.xlu1 %4306, %v4718_v10   ;;  %v5170_v53 = vpop.permute.xlu0 %390  ;;  %v5172_v30 = vpop.permute.xlu2 %619 }
 0x167   :  { %7180 = vst [vmem:[#allocation84_spill] sm:$0xff] %v5170_v53  ;;  %v873_v27 = vadd.f32 %v870_v41, %v722_v60  ;;  %v395_v55 = vmul.f32 %v5170_v53, %v5013_v17  ;;  %v358_v60 = vmul.f32 %v4979_v33, %v5013_v17  ;;  %v195_v53 = vmul.f32 %v4828_v34, %v5010_v2 }
 0x168   :  { %7181 = vst [vmem:[#allocation85_spill] sm:$0xff] %v5172_v30  ;;  %4387 = vset.pattern.permute.xlu0 %v7163_v31  ;;  %v7183_v30 = vmov 9   ;;  %v5218_v34 = vperm.slane %v4918_v61, 7 }
 0x169   :  { %v398_v8 = vadd.f32 %v395_v55, %v232_v11  ;;  %1598 = vperm.xlu0 %4387, %v4862_v44   ;;  %v5184_v24 = vadd.f32 %v952_v50, %v873_v27  ;;  %v361_v55 = vadd.f32 %v358_v60, %v195_v53  ;;  %v754_v53 = vmul.f32 %v5063_v58, %v5145_v48 }
 0x16b   :  { %7182 = vst [vmem:[#allocation86_spill] sm:$0xff] %v5184_v24  ;;  %v501_v41 = vadd.f32 %v498_v3, %v398_v8  ;;  %v485_v8 = vmul.f32 %v5021_v1, %v4807_v28  ;;  %v7185_v24 = vmov 8  }
 0x16c   :  { %4308 = vset.pattern.permute.xlu2 %v7183_v30 }
 0x16d   :  { %786 = vperm.xlu2 %4308, %v4749_v16   ;;  %v5192_v22 = vadd.f32 %v628_v46, %v501_v41  ;;  %v5195_v11 = vpop.permute.xlu1 %583  ;;  %v488_v46 = vadd.f32 %v485_v8, %v361_v55  ;;  %v7186_v41 = vmov 11   ;;  %v987_v55 = vmul.f32 %v4975_v0, %v4928_v5 }
 0x16e   :  { %4307 = vset.pattern.permute.xlu1 %v7183_v30  ;;  %v5197_v50 = vpop.permute.xlu0 %778  ;;  %v591_v3 = vmul.f32 %v5195_v11, %v5016_v6  ;;  %v322_v0 = vmul.f32 %v4895_v54, %v5013_v17 }
 0x16f   :  { %7184 = vst [vmem:[#allocation87_spill] sm:$0xff] %v5197_v50  ;;  %782 = vperm.xlu1 %4307, %v4718_v10   ;;  %v5200_v27 = vpop.permute.xlu2 %637 }
 0x170   :  { %v594_v60 = vadd.f32 %v591_v3, %v488_v46  ;;  %v1150_v46 = vmul.f32 %v5076_v39, %v5218_v34 }
 0x171   :  { %4392 = vset.pattern.permute.xlu0 %v7185_v24 }
 0x172   :  { %1019 = vperm.xlu0 %4392, %v4778_v20   ;;  %v757_v8 = vadd.f32 %v754_v53, %v594_v60 }
 0x175   :  { %4310 = vset.pattern.permute.xlu2 %v7186_v41 }
 0x176   :  { %800 = vperm.xlu2 %4310, %v4718_v10   ;;  %v5212_v49 = vpop.permute.xlu0 %1654  ;;  %v5215_v33 = vpop.permute.xlu1 %601 }
 0x177   :  { %7187 = vst [vmem:[#allocation88_spill] sm:$0xff] %v5212_v49  ;;  %4309 = vset.pattern.permute.xlu1 %v7186_v41  ;;  %v881_v58 = vmul.f32 %v5159_v26, %v5215_v33 }
 0x178   :  { %7188 = vst [vmem:[#allocation89_spill] sm:$0xff] %v5215_v33  ;;  %796 = vperm.xlu1 %4309, %v4739_v15   ;;  %v5225_v3 = vpop.permute.xlu2 %651 }
 0x179   :  { %v884_v49 = vadd.f32 %v881_v58, %v757_v8 }
 0x17a   :  { %4397 = vset.pattern.permute.xlu0 %v7156_v9 }
 0x17b   :  { %1218 = vperm.xlu0 %4397, %v4778_v20   ;;  %v990_v61 = vadd.f32 %v987_v55, %v884_v49 }
 0x17d   :  { %v5231_v41 = vadd.f32 %v1150_v46, %v990_v61  ;;  %v7195_v46 = vmov 17  }
 0x17e   :  { %4314 = vset.pattern.permute.xlu2 %v7156_v9 }
 0x17f   :  { %7189 = vst [vmem:[#allocation90_spill] sm:$0xff] %v5231_v41  ;;  %v5234_v53 = vpop.permute.xlu0 %241  ;;  %818 = vperm.xlu2 %4314, %v4718_v10  }
 0x180   :  { %7190 = vst [vmem:[#allocation91_spill] sm:$0xff] %v5234_v53  ;;  %4313 = vset.pattern.permute.xlu1 %v7156_v9  ;;  %v5238_v60 = vpop.permute.xlu1 %615 }
 0x181   :  { %814 = vperm.xlu1 %4313, %v4739_v15   ;;  %v5241_v39 = vpop.permute.xlu2 %669 }
 0x182   :  { %7191 = vst [vmem:[#allocation92_spill] sm:$0xff] %v5241_v39 }
 0x183   :  { %4402 = vset.pattern.permute.xlu0 %v7163_v31  ;;  %v159_v31 = vmul.f32 %v4933_v18, %v5010_v2 }
 0x184   :  { %1091 = vperm.xlu0 %4402, %v4778_v20  }
 0x187   :  { %4315 = vset.pattern.permute.xlu2 %v7165_v4  ;;  %v5246_v49 = vpop.permute.xlu0 %1033 }
 0x188   :  { %7192 = vst [vmem:[#allocation93_spill] sm:$0xff] %v5246_v49  ;;  %832 = vperm.xlu2 %4315, %v4739_v15   ;;  %v325_v49 = vadd.f32 %v322_v0, %v159_v31  ;;  %v869_v0 = vmul.f32 %v5159_v26, %v4844_v38  ;;  %v194_v38 = vmul.f32 %v4965_v23, %v5010_v2 }
 0x189   :  { %822 = vperm.xlu1 %4313, %v4749_v16   ;;  %v5250_v55 = vpop.permute.xlu1 %633  ;;  %v5252_v8 = vpop.permute.xlu2 %677 }
 0x18a   :  { %7193 = vst [vmem:[#allocation94_spill] sm:$0xff] %v5252_v8 }
 0x18c   :  { %4406 = vset.pattern.permute.xlu0 %v7173_v42 }
 0x18f   :  { %v5255_v58 = vpop.permute.xlu0 %1562 }
 0x190   :  { %7194 = vst [vmem:[#allocation95_spill] sm:$0xff] %v5255_v58  ;;  %4317 = vset.pattern.permute.xlu2 %v7195_v46  ;;  %v473_v58 = vmul.f32 %v5021_v1, %v4773_v19 }
 0x191   :  { %4316 = vset.pattern.permute.xlu1 %v7165_v4  ;;  %v5259_v61 = vpop.permute.xlu1 %641  ;;  %850 = vperm.xlu2 %4317, %v4739_v15   ;;  %v555_v4 = vmul.f32 %v5072_v51, %v5016_v6 }
 0x192   :  { %7196 = vst [vmem:[#allocation96_spill] sm:$0xff] %v5259_v61  ;;  %840 = vperm.xlu1 %4316, %v4749_v16   ;;  %v5267_v41 = vpop.permute.xlu2 %695  ;;  %v476_v15 = vadd.f32 %v473_v58, %v325_v49  ;;  %v357_v58 = vmul.f32 %v4925_v63, %v5013_v17  ;;  %v7207_v63 = vmov 2  }
 0x193   :  { %7197 = vst [vmem:[#allocation97_spill] sm:$0xff] %v5267_v41 }
 0x194   :  { %v558_v31 = vadd.f32 %v555_v4, %v476_v15  ;;  %v360_v15 = vadd.f32 %v357_v58, %v194_v38  ;;  %v880_v58 = vmul.f32 %v5159_v26, %v5130_v13 }
 0x198   :  { %v5273_v61 = vpop.permute.xlu0 %422 }
 0x199   :  { %7198 = vst [vmem:[#allocation98_spill] sm:$0xff] %v5273_v61  ;;  %858 = vperm.xlu2 %4317, %v4749_v16  }
 0x19a   :  { %4318 = vset.pattern.permute.xlu1 %v7195_v46  ;;  %v5277_v54 = vpop.permute.xlu1 %659 }
 0x19b   :  { %7199 = vst [vmem:[#allocation99_spill] sm:$0xff] %v5277_v54  ;;  %854 = vperm.xlu1 %4318, %v4718_v10   ;;  %v711_v18 = vpop.permute.xlu2 %710 }
 0x19c   :  { %v718_v19 = vmul.f32 %v711_v18, %v5145_v48  ;;  %v590_v18 = vmul.f32 %v5109_v36, %v5016_v6 }
 0x19e   :  { %v721_v50 = vadd.f32 %v718_v19, %v558_v31  ;;  %v484_v31 = vmul.f32 %v5021_v1, %v4840_v37  ;;  %v7209_v37 = vmov 4  }
 0x1a0   :  { %v5283_v51 = vpop.permute.xlu0 %1210  ;;  %v5285_v33 = vadd.f32 %v869_v0, %v721_v50  ;;  %v7203_v0 = vmov 0  }
 0x1a1   :  { %7200 = vst [vmem:[#allocation100_spill] sm:$0xff] %v5283_v51  ;;  %4320 = vset.pattern.permute.xlu2 %v7173_v42 }
 0x1a2   :  { %925 = vperm.xlu2 %4320, %v4749_v16  }
 0x1a3   :  { %4319 = vset.pattern.permute.xlu1 %v7173_v42  ;;  %v5290_v49 = vpop.permute.xlu1 %673 }
 0x1a4   :  { %7201 = vst [vmem:[#allocation101_spill] sm:$0xff] %v5290_v49  ;;  %921 = vperm.xlu1 %4319, %v4718_v10   ;;  %v729_v19 = vpop.permute.xlu2 %728 }
 0x1a5   :  { %v736_v4 = vmul.f32 %v729_v19, %v5145_v48  ;;  %v487_v19 = vadd.f32 %v484_v31, %v360_v15  ;;  %v214_v15 = vmul.f32 %v5111_v57, %v5010_v2 }
 0x1a7   :  { %v5299_v50 = vadd.f32 %v736_v4, %v5039_v62  ;;  %v593_v38 = vadd.f32 %v590_v18, %v487_v19  ;;  %v339_v18 = vmul.f32 %v4911_v59, %v5013_v17  ;;  %v572_v59 = vmul.f32 %v5090_v43, %v5016_v6 }
 0x1a8   :  { %v5301_v16 = vpop.permute.xlu0 %1678 }
 0x1a9   :  { %7202 = vst [vmem:[#allocation102_spill] sm:$0xff] %v5301_v16 }
 0x1aa   :  { %4322 = vset.pattern.permute.xlu2 %v7203_v0 }
 0x1ab   :  { %942 = vperm.xlu2 %4322, %v4797_v25  }
 0x1ac   :  { %4321 = vset.pattern.permute.xlu1 %v7203_v0  ;;  %v5310_v10 = vpop.permute.xlu1 %691 }
 0x1ad   :  { %7204 = vst [vmem:[#allocation103_spill] sm:$0xff] %v5310_v10  ;;  %937 = vperm.xlu1 %4321, %v4824_v32   ;;  %v743_v62 = vpop.permute.xlu2 %742 }
 0x1ae   :  { %v753_v4 = vmul.f32 %v743_v62, %v5145_v48  ;;  %v176_v62 = vmul.f32 %v4812_v29, %v5010_v2 }
 0x1b0   :  { %v756_v54 = vadd.f32 %v753_v4, %v593_v38  ;;  %v342_v46 = vadd.f32 %v339_v18, %v176_v62  ;;  %v888_v18 = vmul.f32 %v5159_v26, %v4986_v40 }
 0x1b1   :  { %v5316_v16 = vpop.permute.xlu0 %836 }
 0x1b2   :  { %7205 = vst [vmem:[#allocation104_spill] sm:$0xff] %v5316_v16  ;;  %v5318_v42 = vadd.f32 %v880_v58, %v756_v54  ;;  %v377_v54 = vmul.f32 %v4962_v14, %v5013_v17  ;;  %v478_v58 = vmul.f32 %v5021_v1, %v4965_v23  ;;  %v610_v14 = vmul.f32 %v5153_v56, %v5016_v6 }
 0x1b3   :  { %4325 = vset.pattern.permute.xlu2 %v7207_v63 }
 0x1b4   :  { %7206 = vst [vmem:[#allocation105_spill] sm:$0xff] %v5318_v42  ;;  %961 = vperm.xlu2 %4325, %v4797_v25   ;;  %v380_v38 = vadd.f32 %v377_v54, %v214_v15  ;;  %v481_v15 = vadd.f32 %v478_v58, %v342_v46  ;;  %v249_v42 = vmul.f32 %v5234_v53, %v5010_v2 }
 0x1b5   :  { %4324 = vset.pattern.permute.xlu1 %v7207_v63  ;;  %v5325_v31 = vpop.permute.xlu1 %706 }
 0x1b6   :  { %957 = vperm.xlu1 %4324, %v4824_v32   ;;  %v761_v13 = vpop.permute.xlu2 %760 }
 0x1b7   :  { %v771_v19 = vmul.f32 %v761_v13, %v5145_v48  ;;  %v492_v13 = vmul.f32 %v5021_v1, %v4865_v45  ;;  %v575_v45 = vadd.f32 %v572_v59, %v481_v15  ;;  %v7211_v15 = vmov 6  }
 0x1b9   :  { %v5338_v4 = vadd.f32 %v771_v19, %v5136_v52  ;;  %v5340_v16 = vpop.permute.xlu0 %1232  ;;  %v495_v54 = vadd.f32 %v492_v13, %v380_v38  ;;  %v304_v52 = vmul.f32 %v4871_v47, %v5010_v2  ;;  %v467_v19 = vmul.f32 %v5051_v12, %v5013_v17 }
 0x1ba   :  { %7208 = vst [vmem:[#allocation106_spill] sm:$0xff] %v5340_v16 }
 0x1bb   :  { %v613_v49 = vadd.f32 %v610_v14, %v495_v54  ;;  %v470_v51 = vadd.f32 %v467_v19, %v304_v52  ;;  %v486_v52 = vmul.f32 %v5021_v1, %v5111_v57  ;;  %v7214_v19 = vld [vmem:[#allocation37_spill] sm:$0xff]  ;;  %v7216_v57 = vld [vmem:[#allocation40_spill] sm:$0xff] }
 0x1bc   :  { %4326 = vset.pattern.permute.xlu2 %v7209_v37 }
 0x1bd   :  { %975 = vperm.xlu2 %4326, %v4824_v32  }
 0x1be   :  { %965 = vperm.xlu1 %4324, %v4778_v20   ;;  %v725_v62 = vpop.permute.xlu1 %724  ;;  %v769_v16 = vpop.permute.xlu2 %768 }
 0x1bf   :  { %v735_v23 = vmul.f32 %v725_v62, %v5145_v48  ;;  %v773_v46 = vmul.f32 %v769_v16, %v5145_v48  ;;  %v7212_v16 = vld [vmem:[#allocation18_spill] sm:$0xff]  ;;  %v503_v62 = vmul.f32 %v5021_v1, %v7214_v19 }
 0x1c0   :  { %v196_v54 = vmul.f32 %v7212_v16, %v5010_v2 }
 0x1c1   :  { %v5359_v58 = vadd.f32 %v735_v23, %v575_v45  ;;  %v776_v38 = vadd.f32 %v773_v46, %v613_v49  ;;  %v412_v45 = vmul.f32 %v4984_v7, %v5013_v17  ;;  %v359_v49 = vmul.f32 %v4945_v21, %v5013_v17  ;;  %v7215_v7 = vld [vmem:[#allocation29_spill] sm:$0xff] }
 0x1c2   :  { %v5361_v13 = vpop.permute.xlu0 %529  ;;  %v509_v21 = vmul.f32 %v5021_v1, %v7216_v57  ;;  %v7225_v57 = vld [vmem:[#allocation59_spill] sm:$0xff] }
 0x1c3   :  { %7210 = vst [vmem:[#allocation107_spill] sm:$0xff] %v5361_v13  ;;  %v5363_v40 = vadd.f32 %v888_v18, %v776_v38  ;;  %v534_v12 = vmul.f32 %v5361_v13, %v5021_v1  ;;  %v362_v46 = vadd.f32 %v359_v49, %v196_v54  ;;  %v592_v38 = vmul.f32 %v5128_v35, %v5016_v6 }
 0x1c5   :  { %v5369_v59 = vadd.f32 %v534_v12, %v470_v51  ;;  %4329 = vset.pattern.permute.xlu2 %v7211_v15  ;;  %v415_v51 = vadd.f32 %v412_v45, %v249_v42  ;;  %v430_v45 = vmul.f32 %v5273_v61, %v5013_v17  ;;  %v489_v13 = vadd.f32 %v486_v52, %v362_v46 }
 0x1c6   :  { %4328 = vset.pattern.permute.xlu1 %v7209_v37  ;;  %v5373_v14 = vpop.permute.xlu1 %732  ;;  %993 = vperm.xlu2 %4329, %v4824_v32  }
 0x1c7   :  { %983 = vperm.xlu1 %4328, %v4778_v20   ;;  %v787_v23 = vpop.permute.xlu2 %786  ;;  %v506_v42 = vadd.f32 %v503_v62, %v415_v51  ;;  %v595_v49 = vadd.f32 %v592_v38, %v489_v13  ;;  %v899_v51 = vmul.f32 %v5159_v26, %v7215_v7  ;;  %v663_v13 = vmul.f32 %v7215_v7, %v5016_v6 }
 0x1c8   :  { %v791_v12 = vmul.f32 %v787_v23, %v5145_v48  ;;  %v645_v23 = vmul.f32 %v5200_v27, %v5016_v6 }
 0x1ca   :  { %v5387_v18 = vadd.f32 %v791_v12, %v5192_v22  ;;  %v267_v12 = vmul.f32 %v7214_v19, %v5010_v2  ;;  %v648_v62 = vadd.f32 %v645_v23, %v506_v42  ;;  %v7218_v23 = vld [vmem:[#allocation20_spill] sm:$0xff]  ;;  %v7219_v42 = vld [vmem:[#allocation62_spill] sm:$0xff] }
 0x1cc   :  { %7213 = vst [vmem:[#allocation108_spill] sm:$0xff] %v5387_v18 }
 0x1ce   :  { %1001 = vperm.xlu2 %4329, %v4778_v20   ;;  %v433_v20 = vadd.f32 %v430_v45, %v267_v12  ;;  %v447_v45 = vmul.f32 %v7219_v42, %v5013_v17 }
 0x1cf   :  { %4330 = vset.pattern.permute.xlu1 %v7211_v15  ;;  %v751_v22 = vpop.permute.xlu1 %750 }
 0x1d0   :  { %v755_v54 = vmul.f32 %v751_v22, %v5145_v48  ;;  %997 = vperm.xlu1 %4330, %v4797_v25   ;;  %v801_v18 = vpop.permute.xlu2 %800  ;;  %v512_v38 = vadd.f32 %v509_v21, %v433_v20 }
 0x1d1   :  { %v808_v61 = vmul.f32 %v801_v18, %v5145_v48 }
 0x1d2   :  { %v5406_v52 = vadd.f32 %v755_v54, %v595_v49  ;;  %v666_v12 = vadd.f32 %v663_v13, %v512_v38  ;;  %v680_v54 = vmul.f32 %v5241_v39, %v5016_v6 }
 0x1d3   :  { %v811_v46 = vadd.f32 %v808_v61, %v648_v62  ;;  %v284_v61 = vmul.f32 %v7218_v23, %v5010_v2  ;;  %v7222_v62 = vld [vmem:[#allocation43_spill] sm:$0xff] }
 0x1d4   :  { %v514_v20 = vmul.f32 %v5021_v1, %v7222_v62  ;;  %v7224_v62 = vmov 1  }
 0x1d5   :  { %v5410_v19 = vadd.f32 %v899_v51, %v811_v46  ;;  %v450_v49 = vadd.f32 %v447_v45, %v284_v61  ;;  %v7221_v51 = vmov 10  }
 0x1d6   :  { %4333 = vset.pattern.permute.xlu2 %v7183_v30 }
 0x1d7   :  { %7217 = vst [vmem:[#allocation29_spill] sm:$0xff] %v5410_v19  ;;  %1174 = vperm.xlu2 %4333, %v4824_v32   ;;  %v517_v13 = vadd.f32 %v514_v20, %v450_v49  ;;  %v429_v19 = vmul.f32 %v7225_v57, %v5013_v17  ;;  %v7229_v57 = vmov 12  }
 0x1d8   :  { %4332 = vset.pattern.permute.xlu1 %v7185_v24  ;;  %v5417_v18 = vpop.permute.xlu1 %764 }
 0x1d9   :  { %1015 = vperm.xlu1 %4332, %v4797_v25   ;;  %v819_v22 = vpop.permute.xlu2 %818  ;;  %v683_v45 = vadd.f32 %v680_v54, %v517_v13  ;;  %v7226_v54 = vld [vmem:[#allocation27_spill] sm:$0xff] }
 0x1da   :  { %v826_v7 = vmul.f32 %v819_v22, %v5145_v48  ;;  %v7223_v22 = vld [vmem:[#allocation35_spill] sm:$0xff]  ;;  %v266_v13 = vmul.f32 %v7226_v54, %v5010_v2 }
 0x1db   :  { %v910_v61 = vmul.f32 %v5159_v26, %v7223_v22  ;;  %v508_v22 = vmul.f32 %v5021_v1, %v7218_v23 }
 0x1dc   :  { %v5425_v21 = vadd.f32 %v826_v7, %v666_v12 }
 0x1de   :  { %7220 = vst [vmem:[#allocation109_spill] sm:$0xff] %v5425_v21  ;;  %v700_v21 = vmul.f32 %v5267_v41, %v5016_v6  ;;  %v7231_v41 = vmov 14  }
 0x1df   :  { %4335 = vset.pattern.permute.xlu2 %v7221_v51 }
 0x1e0   :  { %1029 = vperm.xlu2 %4335, %v4824_v32  }
 0x1e1   :  { %4334 = vset.pattern.permute.xlu1 %v7183_v30  ;;  %v5434_v46 = vpop.permute.xlu1 %782 }
 0x1e2   :  { %1178 = vperm.xlu1 %4334, %v4797_v25   ;;  %v833_v38 = vpop.permute.xlu2 %832 }
 0x1e3   :  { %v843_v12 = vmul.f32 %v833_v38, %v5145_v48 }
 0x1e5   :  { %v846_v7 = vadd.f32 %v843_v12, %v683_v45  ;;  %v7227_v45 = vld [vmem:[#allocation80_spill] sm:$0xff] }
 0x1e7   :  { %v5440_v42 = vadd.f32 %v910_v61, %v846_v7  ;;  %v432_v61 = vadd.f32 %v429_v19, %v266_v13  ;;  %v662_v7 = vmul.f32 %v5225_v3, %v5016_v6  ;;  %v703_v13 = vadd.f32 %v700_v21, %v5369_v59  ;;  %v7234_v59 = vld [vmem:[#allocation33_spill] sm:$0xff] }
 0x1e8   :  { %4337 = vset.pattern.permute.xlu2 %v7224_v62 }
 0x1e9   :  { %1106 = vperm.xlu2 %4337, %v4797_v25   ;;  %v511_v51 = vadd.f32 %v508_v22, %v432_v61 }
 0x1ea   :  { %4336 = vset.pattern.permute.xlu1 %v7224_v62  ;;  %v5447_v49 = vpop.permute.xlu1 %796 }
 0x1eb   :  { %1102 = vperm.xlu1 %4336, %v4824_v32   ;;  %v851_v20 = vpop.permute.xlu2 %850  ;;  %v665_v23 = vadd.f32 %v662_v7, %v511_v51  ;;  %v516_v7 = vmul.f32 %v5021_v1, %v4871_v47 }
 0x1ec   :  { %v861_v38 = vmul.f32 %v851_v20, %v5145_v48 }
 0x1ee   :  { %v5456_v12 = vadd.f32 %v861_v38, %v7227_v45 }
 0x1f0   :  { %7228 = vst [vmem:[#allocation35_spill] sm:$0xff] %v5456_v12 }
 0x1f1   :  { %4339 = vset.pattern.permute.xlu2 %v7229_v57 }
 0x1f2   :  { %1051 = vperm.xlu2 %4339, %v4797_v25   ;;  %v7232_v25 = vld [vmem:[#allocation67_spill] sm:$0xff] }
 0x1f3   :  { %4338 = vset.pattern.permute.xlu1 %v7229_v57  ;;  %v815_v20 = vpop.permute.xlu1 %814  ;;  %v859_v39 = vpop.permute.xlu2 %858  ;;  %v449_v22 = vmul.f32 %v7232_v25, %v5013_v17  ;;  %v4101_v57 = vld [vmem:[#allocation6 + $0x28] sm:$0xff] }
 0x1f4   :  { %v825_v19 = vmul.f32 %v815_v20, %v5145_v48  ;;  %v863_v38 = vmul.f32 %v859_v39, %v5145_v48  ;;  %1047 = vperm.xlu1 %4338, %v4824_v32   ;;  %v286_v39 = vmul.f32 %v7234_v59, %v5010_v2 }
 0x1f6   :  { %v5469_v45 = vadd.f32 %v825_v19, %v665_v23  ;;  %v866_v12 = vadd.f32 %v863_v38, %v703_v13  ;;  %v5484_v23 = vld [vmem:[%s6900_s2 + $0x8] sm:$0xff]  ;;  %v452_v20 = vadd.f32 %v449_v22, %v286_v39  ;;  %v682_v13 = vmul.f32 %v5252_v8, %v5016_v6  ;;  %v7238_v22 = vld [vmem:[#allocation76_spill] sm:$0xff] }
 0x1f7   :  { %v7236_v38 = vmov 5   ;;  %v466_v39 = vmul.f32 %v7238_v22, %v5013_v17 }
 0x1f8   :  { %7230 = vst [vmem:[#allocation80_spill] sm:$0xff] %v5469_v45 }
 0x1fa   :  { %4341 = vset.pattern.permute.xlu2 %v7231_v41 }
 0x1fb   :  { %v5474_v61 = vpop.permute.xlu1 %822  ;;  %1065 = vperm.xlu2 %4341, %v4824_v32  }
 0x1fc   :  { %7233 = vst [vmem:[#allocation110_spill] sm:$0xff] %v5474_v61  ;;  %4340 = vset.pattern.permute.xlu1 %v7156_v9  ;;  %v926_v51 = vpop.permute.xlu2 %925  ;;  %v519_v61 = vadd.f32 %v516_v7, %v452_v20 }
 0x1fd   :  { %v930_v21 = vmul.f32 %v926_v51, %v5159_v26  ;;  %1214 = vperm.xlu1 %4340, %v5484_v23  }
 0x1fe   :  { %v685_v25 = vadd.f32 %v682_v13, %v519_v61 }
 0x1ff   :  { %v5489_v19 = vadd.f32 %v930_v21, %v866_v12  ;;  %v7239_v21 = vld [vmem:[#allocation36_spill] sm:$0xff] }
 0x200   :  { %v303_v7 = vmul.f32 %v7239_v21, %v5010_v2  ;;  %v7250_v21 = vld [vmem:[#allocation83_spill] sm:$0xff] }
 0x201   :  { %7235 = vst [vmem:[#allocation111_spill] sm:$0xff] %v5489_v19 }
 0x202   :  { %v469_v13 = vadd.f32 %v466_v39, %v303_v7 }
 0x203   :  { %4343 = vset.pattern.permute.xlu2 %v7236_v38 }
 0x204   :  { %v841_v51 = vpop.permute.xlu1 %840  ;;  %1138 = vperm.xlu2 %4343, %v4824_v32   ;;  %v875_v32 = vmul.f32 %v5159_v26, %v5195_v11  ;;  %v699_v11 = vmul.f32 %v5310_v10, %v5016_v6  ;;  %v480_v10 = vmul.f32 %v5021_v1, %v7212_v16 }
 0x205   :  { %v845_v59 = vmul.f32 %v841_v51, %v5145_v48  ;;  %4342 = vset.pattern.permute.xlu1 %v7231_v41  ;;  %v5497_v9 = vpop.permute.xlu2 %942 }
 0x206   :  { %1069 = vperm.xlu1 %4342, %v5484_v23   ;;  %v878_v51 = vadd.f32 %v875_v32, %v5299_v50 }
 0x207   :  { %v5500_v12 = vadd.f32 %v845_v59, %v685_v25  ;;  %v7240_v25 = vld [vmem:[#allocation73_spill] sm:$0xff] }
 0x208   :  { %v533_v59 = vmul.f32 %v7240_v25, %v5021_v1 }
 0x209   :  { %7237 = vst [vmem:[#allocation112_spill] sm:$0xff] %v5500_v12  ;;  %v7241_v12 = vld [vmem:[#allocation39_spill] sm:$0xff] }
 0x20a   :  { %v536_v22 = vadd.f32 %v533_v59, %v469_v13 }
 0x20c   :  { %4345 = vset.pattern.permute.xlu2 %v7203_v0  ;;  %v702_v47 = vadd.f32 %v699_v11, %v536_v22  ;;  %v886_v22 = vmul.f32 %v5159_v26, %v5238_v60 }
 0x20d   :  { %v855_v61 = vpop.permute.xlu1 %854  ;;  %1502 = vperm.xlu2 %4345, %v4862_v44  }
 0x20e   :  { %4344 = vset.pattern.permute.xlu1 %v7203_v0  ;;  %v5511_v20 = vpop.permute.xlu2 %961  ;;  %v862_v0 = vmul.f32 %v855_v61, %v5145_v48  ;;  %v7245_v61 = vmov 3   ;;  %v889_v59 = vadd.f32 %v886_v22, %v5338_v4  ;;  %v7249_v4 = vld [vmem:[#allocation68_spill] sm:$0xff] }
 0x20f   :  { %v969_v19 = vmul.f32 %v5511_v20, %v4928_v5  ;;  %1497 = vperm.xlu1 %4344, %v7241_v12   ;;  %v1427_v22 = vmul.f32 %v7249_v4, %v5013_v17 }
 0x210   :  { %v865_v50 = vadd.f32 %v862_v0, %v702_v47 }
 0x211   :  { %v5521_v8 = vadd.f32 %v969_v19, %v878_v51  ;;  %v7247_v51 = vld [vmem:[#allocation17_spill] sm:$0xff] }
 0x212   :  { %v178_v11 = vmul.f32 %v7247_v51, %v5010_v2 }
 0x213   :  { %7242 = vst [vmem:[#allocation39_spill] sm:$0xff] %v5521_v8 }
 0x215   :  { %4347 = vset.pattern.permute.xlu2 %v7224_v62 }
 0x216   :  { %v922_v25 = vpop.permute.xlu1 %921  ;;  %1610 = vperm.xlu2 %4347, %v4862_v44   ;;  %v7244_v44 = vld [vmem:[#allocation53_spill] sm:$0xff] }
 0x217   :  { %v929_v39 = vmul.f32 %v922_v25, %v5159_v26  ;;  %4346 = vset.pattern.permute.xlu1 %v7224_v62  ;;  %v5528_v7 = vpop.permute.xlu2 %975  ;;  %v341_v47 = vmul.f32 %v7244_v44, %v5013_v17  ;;  %v574_v62 = vmul.f32 %v7250_v21, %v5016_v6  ;;  %v737_v21 = vmul.f32 %v5373_v14, %v5145_v48  ;;  %v5587_v14 = vld [vmem:[%s6901_s3 + $0x8] sm:$0xff] }
 0x218   :  { %1606 = vperm.xlu1 %4346, %v7241_v12  }
 0x219   :  { %v5531_v19 = vadd.f32 %v929_v39, %v865_v50  ;;  %v344_v50 = vadd.f32 %v341_v47, %v178_v11  ;;  %v4103_v39 = vld [vmem:[#allocation6 + $0x38] sm:$0xff] }
 0x21a   :  { %4200 = vmatpush.bf16.msra.mxu2 %v4103_v39  ;;  %3076 = vmatpush.bf16.msra.mxu0 %v4103_v39 }
 0x21b   :  { %7243 = vst [vmem:[#allocation113_spill] sm:$0xff] %v5531_v19  ;;  %v874_v19 = vmul.f32 %v5159_v26, %v5109_v36 }
 0x21d   :  { %v877_v47 = vadd.f32 %v874_v19, %v5359_v58  ;;  %v4102_v58 = vld [vmem:[#allocation6 + $0x30] sm:$0xff] }
 0x21e   :  { %4349 = vset.pattern.permute.xlu2 %v7207_v63  ;;  %4201 = vmatpush.bf16.msra.mxu2 %v4102_v58 }
 0x21f   :  { %v5536_v32 = vpop.permute.xlu1 %937  ;;  %1510 = vperm.xlu2 %4349, %v7241_v12   ;;  %3077 = vmatpush.bf16.msra.mxu0 %v4102_v58 }
 0x220   :  { %4348 = vset.pattern.permute.xlu1 %v7245_v61  ;;  %v5542_v25 = vpop.permute.xlu2 %993 }
 0x221   :  { %7246 = vst [vmem:[#allocation114_spill] sm:$0xff] %v5542_v25  ;;  %v1004_v13 = vmul.f32 %v5542_v25, %v4928_v5  ;;  %1124 = vperm.xlu1 %4348, %v5484_v23  }
 0x222   :  { %4202 = vmatpush.bf16.msra.mxu2 %v4101_v57 }
 0x223   :  { %v5550_v0 = vadd.f32 %v1004_v13, %v889_v59  ;;  %v1131_v59 = vmul.f32 %v7249_v4, %v5218_v34  ;;  %v483_v13 = vadd.f32 %v480_v10, %v344_v50  ;;  %3078 = vmatpush.bf16.msra.mxu0 %v4101_v57 }
 0x225   :  { %7248 = vst [vmem:[#allocation115_spill] sm:$0xff] %v5550_v0  ;;  %v5569_v0 = vld [vmem:[#allocation2 + $0x8] ss:$0 sm:$0xff]  ;;  %v577_v39 = vadd.f32 %v574_v62, %v483_v13  ;;  %v876_v62 = vmul.f32 %v5159_v26, %v5128_v35 }
 0x226   :  { %v1270_v44 = vmul.f32 %v5569_v0, %v5528_v7 }
 0x227   :  { %4351 = vset.pattern.permute.xlu2 %v7245_v61  ;;  %v1463_v61 = vmul.f32 %v5528_v7, %v5021_v1  ;;  %v740_v16 = vadd.f32 %v737_v21, %v577_v39  ;;  %v807_v21 = vmul.f32 %v5447_v49, %v5145_v48  ;;  %v7260_v39 = vld [vmem:[#allocation61_spill] sm:$0xff] }
 0x228   :  { %v5564_v11 = vpop.permute.xlu1 %957  ;;  %1618 = vperm.xlu2 %4351, %v7241_v12   ;;  %v5567_v36 = vpop.permute.xlu2 %1001  ;;  %v7253_v12 = vld [vmem:[#allocation66_spill] sm:$0xff] }
 0x229   :  { %7251 = vst [vmem:[#allocation68_spill] sm:$0xff] %v5564_v11  ;;  %v968_v4 = vmul.f32 %v5564_v11, %v4928_v5  ;;  %v1391_v10 = vmul.f32 %v5564_v11, %v5010_v2  ;;  %4350 = vset.pattern.permute.xlu1 %v7207_v63  ;;  %v411_v19 = vmul.f32 %v7253_v12, %v5013_v17 }
 0x22a   :  { %7252 = vst [vmem:[#allocation83_spill] sm:$0xff] %v5567_v36  ;;  %v1006_v50 = vmul.f32 %v5567_v36, %v4928_v5  ;;  %1514 = vperm.xlu1 %4350, %v5587_v14   ;;  %v7255_v36 = vld [vmem:[#allocation25_spill] sm:$0xff] }
 0x22b   :  { %v971_v8 = vadd.f32 %v968_v4, %v877_v47  ;;  %v1429_v63 = vadd.f32 %v1427_v22, %v1391_v10  ;;  %v248_v12 = vmul.f32 %v7255_v36, %v5010_v2  ;;  %v4100_v47 = vld [vmem:[#allocation6 + $0x20] sm:$0xff]  ;;  %v5625_v4 = vld [vmem:[%s6901_s3] sm:$0xff]  ;;  %v213_v10 = vmul.f32 %v4807_v28, %v5010_v2 }
 0x22c   :  { %v5593_v41 = vadd.f32 %v1006_v50, %v5363_v40  ;;  %v644_v40 = vmul.f32 %v5250_v55, %v5016_v6  ;;  %4203 = vmatpush.bf16.msra.mxu2 %v4100_v47  ;;  %3079 = vmatpush.bf16.msra.mxu0 %v4100_v47 }
 0x22d   :  { %v1134_v51 = vadd.f32 %v1131_v59, %v971_v8  ;;  %v5597_v45 = vadd.f32 %v1463_v61, %v1429_v63  ;;  %v414_v11 = vadd.f32 %v411_v19, %v248_v12  ;;  %v879_v8 = vadd.f32 %v876_v62, %v740_v16  ;;  %v4099_v12 = vld [vmem:[#allocation6 + $0x18] sm:$0xff] }
 0x22e   :  { %7254 = vst [vmem:[#allocation116_spill] sm:$0xff] %v5593_v41  ;;  %v502_v61 = vmul.f32 %v5021_v1, %v7226_v54  ;;  %v393_v63 = vmul.f32 %v7260_v39, %v5013_v17  ;;  %v882_v62 = vmul.f32 %v5159_v26, %v5153_v56  ;;  %v626_v54 = vmul.f32 %v5238_v60, %v5016_v6 }
 0x22f   :  { %v5601_v13 = vadd.f32 %v1270_v44, %v1134_v51  ;;  %v7257_v44 = vld [vmem:[#allocation58_spill] sm:$0xff] }
 0x230   :  { %v5603_v22 = vpop.permute.xlu1 %965  ;;  %4354 = vset.pattern.permute.xlu2 %v7209_v37  ;;  %v376_v51 = vmul.f32 %v7257_v44, %v5013_v17  ;;  %v505_v57 = vadd.f32 %v502_v61, %v414_v11  ;;  %4204 = vmatpush.bf16.msra.mxu2 %v4099_v12  ;;  %v885_v56 = vadd.f32 %v882_v62, %v5406_v52 }
 0x231   :  { %7256 = vst [vmem:[#allocation117_spill] sm:$0xff] %v5603_v22  ;;  %v970_v59 = vmul.f32 %v5603_v22, %v4928_v5  ;;  %1526 = vperm.xlu2 %4354, %v5587_v14   ;;  %v5613_v35 = vpop.permute.xlu2 %1174  ;;  %3080 = vmatpush.bf16.msra.mxu0 %v4099_v12  ;;  %v4098_v22 = vld [vmem:[#allocation6 + $0x10] sm:$0xff]  ;;  %v772_v12 = vmul.f32 %v5417_v18, %v5145_v48 }
 0x232   :  { %4353 = vset.pattern.permute.xlu1 %v7209_v37  ;;  %v647_v58 = vadd.f32 %v644_v40, %v505_v57  ;;  %v7259_v37 = vld [vmem:[#allocation60_spill] sm:$0xff]  ;;  %v1439_v49 = vmul.f32 %v5613_v35, %v5013_v17  ;;  %v379_v19 = vadd.f32 %v376_v51, %v213_v10  ;;  %v898_v51 = vmul.f32 %v5159_v26, %v5225_v3 }
 0x233   :  { %v5620_v16 = vadd.f32 %v970_v59, %v879_v8  ;;  %1522 = vperm.xlu1 %4353, %v5625_v4   ;;  %v1403_v11 = vmul.f32 %v7259_v37, %v5010_v2  ;;  %v7261_v8 = vld [vmem:[#allocation22_spill] sm:$0xff]  ;;  %v7262_v40 = vld [vmem:[#allocation28_spill] sm:$0xff]  ;;  %v7263_v59 = vld [vmem:[#allocation89_spill] sm:$0xff] }
 0x234   :  { %v810_v50 = vadd.f32 %v807_v21, %v647_v58  ;;  %v491_v47 = vmul.f32 %v5021_v1, %v7261_v8  ;;  %v230_v61 = vmul.f32 %v7262_v40, %v5010_v2  ;;  %v609_v57 = vmul.f32 %v7263_v59, %v5016_v6  ;;  %v5657_v59 = vld [vmem:[%s6900_s2] sm:$0xff]  ;;  %4205 = vmatpush.bf16.msra.mxu2 %v4098_v22 }
 0x235   :  { %7258 = vst [vmem:[#allocation58_spill] sm:$0xff] %v5620_v16  ;;  %v1441_v21 = vadd.f32 %v1439_v49, %v1403_v11  ;;  %v7265_v58 = vmov 7   ;;  %3081 = vmatpush.bf16.msra.mxu0 %v4098_v22  ;;  %v4096_v22 = vld [vmem:[#allocation6] sm:$0xff] }
 0x236   :  { %v494_v41 = vadd.f32 %v491_v47, %v379_v19  ;;  %v901_v11 = vadd.f32 %v898_v51, %v810_v50  ;;  %v396_v18 = vadd.f32 %v393_v63, %v230_v61  ;;  %v4097_v47 = vld [vmem:[#allocation6 + $0x8] sm:$0xff]  ;;  %v496_v51 = vmul.f32 %v5021_v1, %v7255_v36 }
 0x238   :  { %v612_v62 = vadd.f32 %v609_v57, %v494_v41  ;;  %4206 = vmatpush.bf16.msra.mxu2 %v4097_v47  ;;  %v499_v63 = vadd.f32 %v496_v51, %v396_v18  ;;  %v7270_v41 = vld [vmem:[#allocation54_spill] sm:$0xff]  ;;  %v7273_v51 = vld [vmem:[#allocation75_spill] sm:$0xff] }
 0x239   :  { %v5646_v10 = vpop.permute.xlu1 %983  ;;  %4357 = vset.pattern.permute.xlu2 %v7265_v58  ;;  %3082 = vmatpush.bf16.msra.mxu0 %v4097_v47  ;;  %v394_v57 = vmul.f32 %v7270_v41, %v5013_v17 }
 0x23a   :  { %7264 = vst [vmem:[#allocation60_spill] sm:$0xff] %v5646_v10  ;;  %v988_v16 = vmul.f32 %v5646_v10, %v4928_v5  ;;  %1156 = vperm.xlu2 %4357, %v5657_v59   ;;  %v5660_v3 = vpop.permute.xlu2 %1029  ;;  %v775_v39 = vadd.f32 %v772_v12, %v612_v62  ;;  %v892_v62 = vmul.f32 %v5159_v26, %v5250_v55 }
 0x23b   :  { %v1040_v52 = vmul.f32 %v5660_v3, %v4928_v5  ;;  %v1475_v49 = vmul.f32 %v5660_v3, %v5021_v1  ;;  %4356 = vset.pattern.permute.xlu1 %v7236_v38 }
 0x23c   :  { %v5667_v19 = vadd.f32 %v988_v16, %v885_v56  ;;  %1634 = vperm.xlu1 %4356, %v5587_v14   ;;  %v7269_v16 = vld [vmem:[#allocation85_spill] sm:$0xff]  ;;  %4207 = vmatpush.bf16.msra.mxu2 %v4096_v22 }
 0x23d   :  { %v5670_v10 = vadd.f32 %v1040_v52, %v901_v11  ;;  %v5672_v50 = vadd.f32 %v1475_v49, %v1441_v21  ;;  %v887_v61 = vmul.f32 %v5159_v26, %v7269_v16  ;;  %v7271_v21 = vld [vmem:[#allocation87_spill] sm:$0xff]  ;;  %v629_v11 = vadd.f32 %v626_v54, %v499_v63  ;;  %3083 = vmatpush.bf16.msra.mxu0 %v4096_v22 }
 0x23e   :  { %7266 = vst [vmem:[#allocation89_spill] sm:$0xff] %v5667_v19  ;;  %v789_v56 = vmul.f32 %v7271_v21, %v5145_v48  ;;  %v1388_v54 = vmul.f32 %v5497_v9, %v5010_v2  ;;  %v1460_v21 = vmul.f32 %v5511_v20, %v5021_v1  ;;  %v1022_v22 = vmul.f32 %v7259_v37, %v4928_v5 }
 0x23f   :  { %7267 = vst [vmem:[#allocation118_spill] sm:$0xff] %v5670_v10  ;;  %v890_v60 = vadd.f32 %v887_v61, %v775_v39  ;;  %v497_v39 = vmul.f32 %v5021_v1, %v5234_v53  ;;  %v7275_v53 = vld [vmem:[#allocation44_spill] sm:$0xff] }
 0x240   :  { %7268 = vst [vmem:[#allocation119_spill] sm:$0xff] %v5672_v50  ;;  %v792_v61 = vadd.f32 %v789_v56, %v629_v11  ;;  %v158_v40 = vmul.f32 %v7275_v53, %v5010_v2  ;;  %v627_v56 = vmul.f32 %v7269_v16, %v5016_v6  ;;  %v1288_v53 = vmul.f32 %v5569_v0, %v5660_v3 }
 0x242   :  { %v5684_v52 = vpop.permute.xlu1 %997  ;;  %4359 = vset.pattern.permute.xlu2 %v7211_v15  ;;  %v231_v15 = vmul.f32 %v7261_v8, %v5010_v2  ;;  %v895_v50 = vadd.f32 %v892_v62, %v792_v61  ;;  %v4116_v8 = vld [vmem:[#allocation6 + $0xa0] sm:$0xff] }
 0x243   :  { %7272 = vst [vmem:[#allocation85_spill] sm:$0xff] %v5684_v52  ;;  %v1005_v12 = vmul.f32 %v5684_v52, %v4928_v5  ;;  %v1468_v49 = vmul.f32 %v5684_v52, %v5021_v1  ;;  %1534 = vperm.xlu2 %4359, %v5625_v4   ;;  %v1107_v18 = vpop.permute.xlu2 %1106 }
 0x244   :  { %v1424_v47 = vmul.f32 %v1107_v18, %v5013_v17  ;;  %4358 = vset.pattern.permute.xlu1 %v7265_v58  ;;  %v397_v36 = vadd.f32 %v394_v57, %v231_v15  ;;  %v790_v57 = vmul.f32 %v5434_v46, %v5145_v48  ;;  %v472_v46 = vmul.f32 %v5021_v1, %v4812_v29 }
 0x245   :  { %1160 = vperm.xlu1 %4358, %v5484_v23   ;;  %v5704_v63 = vadd.f32 %v1468_v49, %v7273_v51  ;;  %v5706_v55 = vadd.f32 %v1005_v12, %v890_v60  ;;  %v7276_v49 = vld [vmem:[#allocation46_spill] sm:$0xff]  ;;  %v1185_v60 = vmul.f32 %v5613_v35, %v5218_v34 }
 0x246   :  { %v1426_v19 = vadd.f32 %v1424_v47, %v1388_v54  ;;  %v321_v51 = vmul.f32 %v7276_v49, %v5013_v17  ;;  %v500_v11 = vadd.f32 %v497_v39, %v397_v36  ;;  %v7278_v54 = vld [vmem:[#allocation81_spill] sm:$0xff] }
 0x247   :  { %7274 = vst [vmem:[#allocation87_spill] sm:$0xff] %v5706_v55  ;;  %v554_v47 = vmul.f32 %v7278_v54, %v5016_v6  ;;  %v7313_v55 = vld [vmem:[#allocation39_spill] sm:$0xff] }
 0x248   :  { %v5712_v41 = vadd.f32 %v1460_v21, %v1426_v19  ;;  %v1025_v19 = vadd.f32 %v1022_v22, %v895_v50  ;;  %v324_v16 = vadd.f32 %v321_v51, %v158_v40  ;;  %v630_v36 = vadd.f32 %v627_v56, %v500_v11  ;;  %v5743_v22 = vld [vmem:[#allocation4] ss:$0 sm:$0xff]  ;;  %v7279_v11 = vld [vmem:[#allocation93_spill] sm:$0xff] }
 0x249   :  { %v951_v50 = vmul.f32 %v5497_v9, %v4928_v5  ;;  %v893_v21 = vmul.f32 %v5159_v26, %v5200_v27  ;;  %v1114_v51 = vmul.f32 %v1107_v18, %v5218_v34 }
 0x24a   :  { %v1188_v35 = vadd.f32 %v1185_v60, %v1025_v19  ;;  %v793_v15 = vadd.f32 %v790_v57, %v630_v36  ;;  %v475_v61 = vadd.f32 %v472_v46, %v324_v16  ;;  %v1289_v60 = vmul.f32 %v5569_v0, %v7279_v11  ;;  %v4119_v19 = vld [vmem:[#allocation6 + $0xb8] sm:$0xff] }
 0x24b   :  { %v5724_v12 = vpop.permute.xlu1 %1015  ;;  %4361 = vset.pattern.permute.xlu2 %v7265_v58  ;;  %v717_v57 = vmul.f32 %v5325_v31, %v5145_v48  ;;  %v1277_v16 = vmul.f32 %v5569_v0, %v5684_v52  ;;  %3134 = vmatpush.bf16.msrb.mxu2 %v4119_v19 }
 0x24c   :  { %1646 = vperm.xlu2 %4361, %v5587_v14   ;;  %v5730_v62 = vpop.permute.xlu2 %1051  ;;  %v1291_v39 = vadd.f32 %v1288_v53, %v1188_v35  ;;  %v1023_v40 = vmul.f32 %v5724_v12, %v4928_v5  ;;  %v557_v56 = vadd.f32 %v554_v47, %v475_v61  ;;  %v896_v9 = vadd.f32 %v893_v21, %v793_v15 }
 0x24d   :  { %7277 = vst [vmem:[#allocation75_spill] sm:$0xff] %v5730_v62  ;;  %1642 = vperm.xlu1 %4358, %v5625_v4   ;;  %v954_v53 = vadd.f32 %v951_v50, %v5285_v33  ;;  %v1404_v36 = vmul.f32 %v5724_v12, %v5010_v2  ;;  %v868_v61 = vmul.f32 %v5159_v26, %v5090_v43 }
 0x24e   :  { %v1357_v27 = vadd.f32 %v5743_v22, %v1291_v39  ;;  %v1026_v35 = vadd.f32 %v1023_v40, %v896_v9  ;;  %v720_v15 = vadd.f32 %v717_v57, %v557_v56  ;;  %v986_v21 = vmul.f32 %v5528_v7, %v4928_v5  ;;  %v7283_v56 = vld [vmem:[#allocation90_spill] sm:$0xff] }
 0x24f   :  { %v1117_v54 = vadd.f32 %v1114_v51, %v954_v53  ;;  %v950_v51 = vmul.f32 %v5536_v32, %v4928_v5  ;;  %v1280_v57 = vadd.f32 %v1277_v16, %v7283_v56 }
 0x250   :  { %v1360_v9 = vmax.f32 %v1357_v27, 0.0 }
 0x251   :  { %v1346_v16 = vadd.f32 %v5743_v22, %v1280_v57  ;;  %v4117_v57 = vld [vmem:[#allocation6 + $0xa8] sm:$0xff] }
 0x254   :  { %v1179_v18 = vpop.permute.xlu1 %1178  ;;  %4363 = vset.pattern.permute.xlu2 %v7185_v24 }
 0x255   :  { %v1186_v46 = vmul.f32 %v1179_v18, %v5218_v34  ;;  %v1440_v31 = vmul.f32 %v1179_v18, %v5013_v17  ;;  %4362 = vset.pattern.permute.xlu1 %v7185_v24  ;;  %1550 = vperm.xlu2 %4363, %v5587_v14   ;;  %v5761_v33 = vpop.permute.xlu2 %1065  ;;  %v1265_v24 = vmul.f32 %v5569_v0, %v5511_v20  ;;  %v4118_v18 = vld [vmem:[#allocation6 + $0xb0] sm:$0xff] }
 0x256   :  { %7280 = vst [vmem:[#allocation44_spill] sm:$0xff] %v5761_v33  ;;  %v1076_v47 = vmul.f32 %v5761_v33, %v4928_v5  ;;  %1546 = vperm.xlu1 %4362, %v5625_v4   ;;  %3135 = vmatpush.bf16.msrb.mxu2 %v4118_v18 }
 0x257   :  { %v1189_v50 = vadd.f32 %v1186_v46, %v1026_v35  ;;  %v5766_v39 = vadd.f32 %v1440_v31, %v1404_v36  ;;  %v1268_v53 = vadd.f32 %v1265_v24, %v1117_v54  ;;  %v871_v36 = vadd.f32 %v868_v61, %v720_v15  ;;  %v7284_v31 = vld [vmem:[#allocation105_spill] sm:$0xff] }
 0x258   :  { %v5775_v40 = vadd.f32 %v1076_v47, %v5440_v42  ;;  %v1387_v35 = vmul.f32 %v5536_v32, %v5010_v2  ;;  %v1276_v46 = vmul.f32 %v5569_v0, %v5542_v25  ;;  %v1395_v42 = vmul.f32 %v5528_v7, %v5010_v2 }
 0x259   :  { %7281 = vst [vmem:[#allocation46_spill] sm:$0xff] %v5766_v39  ;;  %v1292_v19 = vadd.f32 %v1289_v60, %v1189_v50  ;;  %v989_v47 = vadd.f32 %v986_v21, %v7284_v31  ;;  %v953_v27 = vadd.f32 %v950_v51, %v871_v36  ;;  %v7285_v15 = vmov 11  }
 0x25a   :  { %7282 = vst [vmem:[#allocation81_spill] sm:$0xff] %v5775_v40  ;;  %v2207_v50 = vpack.c.bf16 %v1360_v9, %v1360_v9  ;;  %v1334_v24 = vadd.f32 %v5743_v22, %v1268_v53  ;;  %v1467_v21 = vmul.f32 %v5542_v25, %v5021_v1  ;;  %3136 = vmatpush.bf16.msrb.mxu2 %v4117_v57 }
 0x25b   :  { %v1358_v43 = vadd.f32 %v5743_v22, %v1292_v19  ;;  %v7286_v19 = vld [vmem:[#allocation68_spill] sm:$0xff] }
 0x25c   :  { %v1264_v36 = vmul.f32 %v5569_v0, %v7286_v19  ;;  %v2258_v39 = vunpack.c.l.b16 %v2207_v50 }
 0x25d   :  { %v1361_v60 = vmax.f32 %v1358_v43, 0.0  ;;  %v1103_v54 = vpop.permute.xlu1 %1102  ;;  %4366 = vset.pattern.permute.xlu2 %v7285_v15  ;;  %v1459_v43 = vmul.f32 %v7286_v19, %v5021_v1 }
 0x25e   :  { %v1113_v61 = vmul.f32 %v1103_v54, %v5218_v34  ;;  %v1423_v32 = vmul.f32 %v1103_v54, %v5013_v17  ;;  %4365 = vset.pattern.permute.xlu1 %v7183_v30  ;;  %1192 = vperm.xlu2 %4366, %v5657_v59   ;;  %v1139_v7 = vpop.permute.xlu2 %1138  ;;  %v1337_v30 = vmax.f32 %v1334_v24, 0.0 }
 0x25f   :  { %v2208_v51 = vpack.c.bf16 %v1361_v60, %v1361_v60  ;;  %v1149_v56 = vmul.f32 %v1139_v7, %v5218_v34  ;;  %v1431_v9 = vmul.f32 %v1139_v7, %v5013_v17  ;;  %1658 = vperm.xlu1 %4365, %v5587_v14   ;;  %v1349_v60 = vmax.f32 %v1346_v16, 0.0  ;;  %v7288_v16 = vld [vmem:[#allocation92_spill] sm:$0xff]  ;;  %3137 = vmatpush.bf16.msrb.mxu2 %v4116_v8  ;;  %v4110_v8 = vld [vmem:[#allocation6 + $0x70] sm:$0xff] }
 0x260   :  { %v1116_v18 = vadd.f32 %v1113_v61, %v953_v27  ;;  %v1425_v31 = vadd.f32 %v1423_v32, %v1387_v35  ;;  %v4111_v27 = vld [vmem:[#allocation6 + $0x78] sm:$0xff]  ;;  %v7287_v35 = vld [vmem:[#allocation100_spill] sm:$0xff]  ;;  %v904_v50 = vmul.f32 %v5159_v26, %v7288_v16 }
 0x261   :  { %v2259_v53 = vunpack.c.l.b16 %v2208_v51  ;;  %v1152_v54 = vadd.f32 %v1149_v56, %v989_v47  ;;  %v1433_v40 = vadd.f32 %v1431_v9, %v1395_v42  ;;  %v1447_v47 = vmul.f32 %v7287_v35, %v5013_v17  ;;  %v4115_v56 = vld [vmem:[#allocation6 + $0x98] sm:$0xff]  ;;  %3105 = vmatpush.bf16.msra.mxu1 %v4111_v27  ;;  %v7291_v9 = vld [vmem:[#allocation80_spill] sm:$0xff] }
 0x262   :  { %v1267_v11 = vadd.f32 %v1264_v36, %v1116_v18  ;;  %v5804_v7 = vadd.f32 %v1459_v43, %v1425_v31  ;;  %v2204_v32 = vpack.c.bf16 %v1349_v60, %v1349_v60  ;;  %v907_v57 = vadd.f32 %v904_v50, %v7291_v9  ;;  %v4109_v50 = vld [vmem:[#allocation6 + $0x68] sm:$0xff] }
 0x263   :  { %v1279_v58 = vadd.f32 %v1276_v46, %v1152_v54  ;;  %v5806_v38 = vpack.c.b16 %v2259_v53, %v2258_v39  ;;  %v5808_v25 = vadd.f32 %v1467_v21, %v1433_v40  ;;  %v7290_v39 = vmov 10   ;;  %3138 = vmatpush.bf16.msrb.mxu2 %v4115_v56 }
 0x264   :  { %v1333_v19 = vadd.f32 %v5743_v22, %v1267_v11  ;;  %v2200_v40 = vpack.c.bf16 %v1337_v30, %v1337_v30  ;;  %v1483_v11 = vmul.f32 %v5761_v33, %v5021_v1  ;;  %v1221_v18 = vmul.f32 %v7287_v35, %v5218_v34 }
 0x265   :  { %v1345_v42 = vadd.f32 %v5743_v22, %v1279_v58  ;;  %3094 = vmatmul.bf16.vlgmr.msra.gmra.mxu2 %v5806_v38  ;;  %3106 = vmatpush.bf16.msra.mxu1 %v4110_v8  ;;  %v1300_v35 = vmul.f32 %v5569_v0, %v5761_v33  ;;  %v1059_v9 = vmul.f32 %v5730_v62, %v4928_v5 }
 0x266   :  { %v5817_v61 = vpop.permute.xlu1 %1047  ;;  %4368 = vset.pattern.permute.xlu2 %v7290_v39  ;;  %v1336_v46 = vmax.f32 %v1333_v19, 0.0  ;;  %v2247_v53 = vunpack.c.l.b16 %v2200_v40  ;;  %v2253_v19 = vunpack.c.l.b16 %v2204_v32  ;;  %v4113_v40 = vld [vmem:[#allocation6 + $0x88] sm:$0xff]  ;;  %v1412_v32 = vmul.f32 %v5730_v62, %v5010_v2  ;;  %v7307_v62 = vld [vmem:[#allocation18_spill] sm:$0xff] }
 0x267   :  { %7289 = vst [vmem:[#allocation90_spill] sm:$0xff] %v5817_v61  ;;  %v1348_v24 = vmax.f32 %v1345_v42, 0.0  ;;  %v1058_v58 = vmul.f32 %v5817_v61, %v4928_v5  ;;  %v1411_v21 = vmul.f32 %v5817_v61, %v5010_v2  ;;  %4367 = vset.pattern.permute.xlu1 %v7285_v15  ;;  %1558 = vperm.xlu2 %4368, %v5625_v4   ;;  %v5828_v51 = vpop.permute.xlu2 %1502  ;;  %v4114_v42 = vld [vmem:[#allocation6 + $0x90] sm:$0xff]  ;;  %v4128_v61 = vld [vmem:[#allocation6 + $0x100] sm:$0xff] }
 0x268   :  { %1196 = vperm.xlu1 %4367, %v5484_v23   ;;  %v2199_v30 = vpack.c.bf16 %v1336_v46, %v1336_v46  ;;  %3139 = vmatpush.bf16.msrb.mxu2 %v4114_v42  ;;  %v7297_v42 = vmov 12  }
 0x269   :  { %v2203_v36 = vpack.c.bf16 %v1348_v24, %v1348_v24  ;;  %v1449_v43 = vadd.f32 %v1447_v47, %v1411_v21  ;;  %v1061_v60 = vadd.f32 %v1058_v58, %v907_v57  ;;  %3107 = vmatpush.bf16.msra.mxu1 %v4109_v50  ;;  %v4108_v58 = vld [vmem:[#allocation6 + $0x60] sm:$0xff]  ;;  %v4127_v21 = vld [vmem:[#allocation6 + $0xf8] sm:$0xff] }
 0x26a   :  { %v2246_v31 = vunpack.c.l.b16 %v2199_v30  ;;  %v7295_v30 = vld [vmem:[#allocation101_spill] sm:$0xff]  ;;  %3163 = vmatpush.bf16.msra.mxu3 %v4127_v21 }
 0x26b   :  { %v2252_v54 = vunpack.c.l.b16 %v2203_v36  ;;  %v5834_v16 = vadd.f32 %v1483_v11, %v1449_v43  ;;  %v1224_v47 = vadd.f32 %v1221_v18, %v1061_v60  ;;  %v905_v8 = vmul.f32 %v5159_v26, %v7295_v30  ;;  %v4112_v36 = vld [vmem:[#allocation6 + $0x80] sm:$0xff]  ;;  %v7296_v43 = vld [vmem:[#allocation109_spill] sm:$0xff] }
 0x26c   :  { %v5836_v39 = vpack.c.b16 %v2247_v53, %v2246_v31  ;;  %3140 = vmatpush.bf16.msrb.mxu2 %v4113_v40  ;;  %v4126_v53 = vld [vmem:[#allocation6 + $0xf0] sm:$0xff] }
 0x26d   :  { %7292 = vst [vmem:[#allocation105_spill] sm:$0xff] %v5834_v16  ;;  %v5838_v27 = vpack.c.b16 %v2253_v19, %v2252_v54  ;;  %v1303_v57 = vadd.f32 %v1300_v35, %v1224_v47  ;;  %v908_v18 = vadd.f32 %v905_v8, %v7296_v43  ;;  %3108 = vmatpush.bf16.msra.mxu1 %v4108_v58  ;;  %v4107_v54 = vld [vmem:[#allocation6 + $0x58] sm:$0xff]  ;;  %v4106_v58 = vld [vmem:[#allocation6 + $0x50] sm:$0xff] }
 0x26e   :  { %7293 = vst [vmem:[#allocation68_spill] sm:$0xff] %v5836_v39  ;;  %3084 = vmatmul.bf16.vlgmr.msra.gmra.mxu0 %v5836_v39  ;;  %3164 = vmatpush.bf16.msra.mxu3 %v4126_v53  ;;  %v4134_v43 = vld [vmem:[#allocation6 + $0x130] sm:$0xff]  ;;  %v4105_v53 = vld [vmem:[#allocation6 + $0x48] sm:$0xff] }
 0x26f   :  { %7294 = vst [vmem:[#allocation100_spill] sm:$0xff] %v5838_v27  ;;  %v1215_v46 = vpop.permute.xlu1 %1214  ;;  %4370 = vset.pattern.permute.xlu2 %v7285_v15  ;;  %v1062_v60 = vadd.f32 %v1059_v9, %v908_v18  ;;  %v1369_v19 = vadd.f32 %v5743_v22, %v1303_v57 }
 0x270   :  { %v1448_v11 = vmul.f32 %v1215_v46, %v5013_v17  ;;  %1666 = vperm.xlu1 %4367, %v5625_v4   ;;  %1670 = vperm.xlu2 %4370, %v5587_v14   ;;  %v5849_v24 = vpop.permute.xlu2 %1610  ;;  %v1222_v31 = vmul.f32 %v1215_v46, %v5218_v34 }
 0x271   :  { %3141 = vmatpush.bf16.msrb.mxu2 %v4112_v36  ;;  %3109 = vmatpush.bf16.msra.mxu1 %v4107_v54  ;;  %v1372_v8 = vmax.f32 %v1369_v19, 0.0  ;;  %v4124_v36 = vld [vmem:[#allocation6 + $0xe0] sm:$0xff]  ;;  %v7300_v54 = vmov 13  }
 0x272   :  { %v1450_v56 = vadd.f32 %v1448_v11, %v1412_v32  ;;  %v1225_v35 = vadd.f32 %v1222_v31, %v1062_v60  ;;  %v4125_v32 = vld [vmem:[#allocation6 + $0xe8] sm:$0xff]  ;;  %v4135_v11 = vld [vmem:[#allocation6 + $0x138] sm:$0xff] }
 0x273   :  { %3165 = vmatpush.bf16.msra.mxu3 %v4125_v32  ;;  %3192 = vmatpush.bf16.msrb.mxu0 %v4135_v11  ;;  %v2211_v31 = vpack.c.bf16 %v1372_v8, %v1372_v8  ;;  %v4122_v8 = vld [vmem:[#allocation6 + $0xd0] sm:$0xff] }
 0x275   :  { %3110 = vmatpush.bf16.msra.mxu1 %v4106_v58  ;;  %v2264_v32 = vunpack.c.l.b16 %v2211_v31  ;;  %v4104_v58 = vld [vmem:[#allocation6 + $0x40] sm:$0xff] }
 0x277   :  { %3166 = vmatpush.bf16.msra.mxu3 %v4124_v36  ;;  %3193 = vmatpush.bf16.msrb.mxu0 %v4134_v43  ;;  %v4121_v43 = vld [vmem:[#allocation6 + $0xc8] sm:$0xff] }
 0x278   :  { %4371 = vset.pattern.permute.xlu1 %v7297_v42  ;;  %v5859_v50 = vpop.permute.xlu1 %1069  ;;  %4372 = vset.pattern.permute.xlu2 %v7297_v42 }
 0x279   :  { %7298 = vst [vmem:[#allocation92_spill] sm:$0xff] %v5859_v50  ;;  %v1301_v47 = vmul.f32 %v5569_v0, %v5859_v50  ;;  %v1484_v46 = vmul.f32 %v5859_v50, %v5021_v1  ;;  %1570 = vperm.xlu1 %4371, %v5625_v4   ;;  %v5867_v40 = vpop.permute.xlu2 %1510  ;;  %1574 = vperm.xlu2 %4372, %v5587_v14  }
 0x27a   :  { %3111 = vmatpush.bf16.msra.mxu1 %v4105_v53  ;;  %v1893_v50 = vmul.f32 %v5218_v34, %v7276_v49  ;;  %v2028_v49 = vmul.f32 %v5569_v0, %v4812_v29 }
 0x27b   :  { %v1304_v21 = vadd.f32 %v1301_v47, %v1225_v35  ;;  %v5870_v9 = vadd.f32 %v1484_v46, %v1450_v56  ;;  %v4123_v35 = vld [vmem:[#allocation6 + $0xd8] sm:$0xff]  ;;  %v7301_v47 = vmov 16   ;;  %v4133_v46 = vld [vmem:[#allocation6 + $0x128] sm:$0xff] }
 0x27c   :  { %3167 = vmatpush.bf16.msra.mxu3 %v4123_v35  ;;  %3194 = vmatpush.bf16.msrb.mxu0 %v4133_v46  ;;  %v4131_v46 = vld [vmem:[#allocation6 + $0x118] sm:$0xff] }
 0x27d   :  { %7299 = vst [vmem:[#allocation80_spill] sm:$0xff] %v5870_v9  ;;  %v1370_v57 = vadd.f32 %v5743_v22, %v1304_v21 }
 0x27e   :  { %3089 = vmatmul.bf16.gmra.mxu0 %v5838_v27  ;;  %3112 = vmatpush.bf16.msra.mxu1 %v4104_v58 }
 0x27f   :  { %v1373_v18 = vmax.f32 %v1370_v57, 0.0  ;;  %v4132_v57 = vld [vmem:[#allocation6 + $0x120] sm:$0xff] }
 0x280   :  { %3168 = vmatpush.bf16.msra.mxu3 %v4122_v8  ;;  %3195 = vmatpush.bf16.msrb.mxu0 %v4132_v57  ;;  %v7305_v8 = vmov 15  }
 0x281   :  { %4374 = vset.pattern.permute.xlu1 %v7300_v54  ;;  %v1498_v60 = vpop.permute.xlu1 %1497  ;;  %v2212_v19 = vpack.c.bf16 %v1373_v18, %v1373_v18  ;;  %4375 = vset.pattern.permute.xlu2 %v7301_v47  ;;  %v7303_v18 = vld [vmem:[#allocation16_spill] sm:$0xff]  ;;  %v7304_v54 = vld [vmem:[#allocation17_spill] sm:$0xff] }
 0x282   :  { %1682 = vperm.xlu1 %4374, %v5587_v14   ;;  %v5877_v56 = vpop.permute.xlu2 %1618  ;;  %1083 = vperm.xlu2 %4375, %v5657_v59   ;;  %v1505_v36 = vmul.f32 %v1498_v60, %v5016_v6  ;;  %v5886_v31 = vmul.f32 %v4928_v5, %v7303_v18  ;;  %v5890_v53 = vmul.f32 %v5569_v0, %v7303_v18 }
 0x283   :  { %v2265_v11 = vunpack.c.l.b16 %v2212_v19  ;;  %v1775_v19 = vmul.f32 %v4928_v5, %v7304_v54  ;;  %v2030_v60 = vmul.f32 %v5569_v0, %v7304_v54  ;;  %v4120_v54 = vld [vmem:[#allocation6 + $0xc0] sm:$0xff] }
 0x284   :  { %3169 = vmatpush.bf16.msra.mxu3 %v4121_v43  ;;  %3196 = vmatpush.bf16.msrb.mxu0 %v4131_v46  ;;  %v1780_v39 = vrot.slane %v5886_v31, 1  ;;  %v7078_v16 = vrot.slane %v5890_v53, 1  ;;  %v5916_v43 = vmul.f32 %v4928_v5, %v7307_v62  ;;  %v2045_v31 = vmul.f32 %v5569_v0, %v7307_v62 }
 0x285   :  { %v5880_v21 = vpack.c.b16 %v2265_v11, %v2264_v32  ;;  %v1713_v32 = vmul.f32 %v5867_v40, %v5159_v26  ;;  %v1507_v11 = vadd.f32 %v1505_v36, %v5804_v7  ;;  %v1782_v33 = vrot.slane %v1775_v19, 1  ;;  %v4130_v36 = vld [vmem:[#allocation6 + $0x110] sm:$0xff] }
 0x286   :  { %v2037_v7 = vrot.slane %v2030_v60, 1  ;;  %v1773_v19 = vmul.f32 %v4928_v5, %v4812_v29  ;;  %v7308_v60 = vld [vmem:[#allocation49_spill] sm:$0xff]  ;;  %v1392_v29 = vmul.f32 %v5511_v20, %v5010_v2  ;;  %v5956_v20 = vmul.f32 %v5569_v0, %v4807_v28 }
 0x287   :  { %7302 = vst [vmem:[#allocation109_spill] sm:$0xff] %v5880_v21  ;;  %3099 = vmatmul.bf16.gmra.mxu2 %v5880_v21  ;;  %v2034_v21 = vrot.slane %v2028_v49, 1 }
 0x288   :  { %3170 = vmatpush.bf16.msra.mxu3 %v4120_v54  ;;  %3197 = vmatpush.bf16.msrb.mxu0 %v4130_v36  ;;  %v5935_v62 = vsel %vm1763_vm0, %v7078_v16, %v2037_v7  ;;  %v7310_v54 = vld [vmem:[#allocation23_spill] sm:$0xff]  ;;  %v2052_v36 = vrot.slane %v2045_v31, 1  ;;  %v1779_v15 = vrot.slane %v1773_v19, 1 }
 0x28a   :  { %4376 = vset.pattern.permute.xlu1 %v7301_v47  ;;  %v1607_v35 = vpop.permute.xlu1 %1606  ;;  %4377 = vset.pattern.permute.xlu2 %v7305_v8 }
 0x28b   :  { %v1613_v58 = vmul.f32 %v1607_v35, %v5145_v48  ;;  %1087 = vperm.xlu1 %4376, %v5484_v23   ;;  %v5903_v57 = vpop.permute.xlu2 %1526  ;;  %1228 = vperm.xlu2 %4377, %v5657_v59   ;;  %v7306_v35 = vld [vmem:[#allocation38_spill] sm:$0xff] }
 0x28c   :  { %v5910_v9 = vmul.f32 %v5218_v34, %v7306_v35  ;;  %v1899_v35 = vrot.slane %v1893_v50, 1  ;;  %v1339_v50 = vadd.f32 %v5743_v22, %v5601_v13 }
 0x28d   :  { %v1615_v18 = vadd.f32 %v1613_v58, %v1507_v11  ;;  %v7309_v11 = vld [vmem:[#allocation19_spill] sm:$0xff] }
 0x28e   :  { %v5925_v58 = vmul.f32 %v4928_v5, %v7309_v11  ;;  %v7312_v11 = vld [vmem:[#allocation55_spill] sm:$0xff]  ;;  %v7314_v52 = vrot.slane %v5910_v9, 1 }
 0x28f   :  { %v1715_v30 = vadd.f32 %v1713_v32, %v1615_v18  ;;  %v5930_v32 = vsel %vm1763_vm0, %v1780_v39, %v1782_v33  ;;  %v4129_v18 = vld [vmem:[#allocation6 + $0x108] sm:$0xff]  ;;  %v1271_v10 = vmul.f32 %v5569_v0, %v7312_v11 }
 0x290   :  { %3198 = vmatpush.bf16.msrb.mxu0 %v4129_v18  ;;  %v1614_v18 = vmul.f32 %v5849_v24, %v5145_v48 }
 0x291   :  { %v1771_v46 = vadd.f32 %v7308_v60, %v1715_v30  ;;  %v5939_v30 = vmul.f32 %v5569_v0, %v7310_v54  ;;  %v7311_v60 = vmov 14  }
 0x293   :  { %4379 = vset.pattern.permute.xlu1 %v7311_v60  ;;  %v1125_v33 = vpop.permute.xlu1 %1124  ;;  %4380 = vset.pattern.permute.xlu2 %v7311_v60  ;;  %v1506_v60 = vmul.f32 %v5828_v51, %v5016_v6  ;;  %v7090_v19 = vrot.slane %v5939_v30, 1 }
 0x294   :  { %v1132_v42 = vmul.f32 %v1125_v33, %v5218_v34  ;;  %v1428_v7 = vmul.f32 %v1125_v33, %v5013_v17  ;;  %1582 = vperm.xlu1 %4379, %v5625_v4   ;;  %v5950_v16 = vpop.permute.xlu2 %1156  ;;  %1586 = vperm.xlu2 %4380, %v5587_v14   ;;  %v1464_v33 = vmul.f32 %v7312_v11, %v5021_v1  ;;  %v1767_v17 = vrot.slane %v5925_v58, 1 }
 0x295   :  { %v1901_v14 = vsel %vm1763_vm0, %v1899_v35, %v7314_v52  ;;  %v1342_v1 = vmax.f32 %v1339_v50, 0.0  ;;  %v5981_v58 = vmul.f32 %v4928_v5, %v7310_v54  ;;  %3199 = vmatpush.bf16.msrb.mxu0 %v4128_v61  ;;  %v7315_v52 = vld [vmem:[#allocation50_spill] sm:$0xff]  ;;  %v1508_v24 = vadd.f32 %v1506_v60, %v5712_v41  ;;  %v7319_v60 = vld [vmem:[#allocation64_spill] sm:$0xff] }
 0x296   :  { %v1135_v13 = vadd.f32 %v1132_v42, %v7313_v55  ;;  %v1430_v31 = vadd.f32 %v1428_v7, %v1392_v29  ;;  %v5976_v55 = vmul.f32 %v4928_v5, %v4807_v28  ;;  %v1906_v49 = vadd.f32 %v1901_v14, %v1771_v46  ;;  %v7316_v28 = vld [vmem:[#allocation26_spill] sm:$0xff] }
 0x297   :  { %3142 = vmatmul.bf16.vlgmr.msrb.gmra.mxu2 %v5838_v27  ;;  %v1895_v35 = vmul.f32 %v5218_v34, %v7315_v52  ;;  %v5988_v29 = vsel %vm1763_vm0, %v1779_v15, %v1780_v39  ;;  %v5992_v7 = vmul.f32 %v5569_v0, %v7316_v28  ;;  %v7317_v50 = vld [vmem:[#allocation42_spill] sm:$0xff]  ;;  %v7318_v61 = vrot.slane %v5890_v53, 1  ;;  %v7321_v52 = vld [vmem:[#allocation45_spill] sm:$0xff] }
 0x298   :  { %v1274_v11 = vadd.f32 %v1271_v10, %v1135_v13  ;;  %v1466_v51 = vadd.f32 %v1464_v33, %v1430_v31  ;;  %v5996_v54 = vmul.f32 %v5218_v34, %v7317_v50  ;;  %v6004_v41 = vsel %vm1763_vm0, %v7090_v19, %v2052_v36 }
 0x299   :  { %v2036_v46 = vsel %vm1763_vm0, %v2034_v21, %v7318_v61  ;;  %v6008_v15 = vmul.f32 %v5218_v34, %v7319_v60  ;;  %v1616_v39 = vadd.f32 %v1614_v18, %v1508_v24  ;;  %v7320_v33 = vmov 17   ;;  %v7322_v24 = vld [vmem:[#allocation53_spill] sm:$0xff]  ;;  %v7323_v60 = vld [vmem:[#allocation71_spill] sm:$0xff] }
 0x29a   :  { %v1340_v10 = vadd.f32 %v5743_v22, %v1274_v11  ;;  %v2201_v14 = vpack.c.bf16 %v1342_v1, %v1342_v1  ;;  %v2041_v36 = vadd.f32 %v2036_v46, %v1906_v49  ;;  %v6018_v50 = vmul.f32 %v5218_v34, %v7321_v52 }
 0x29b   :  { %v1902_v18 = vrot.slane %v1895_v35, 1  ;;  %v1517_v52 = vmul.f32 %v5867_v40, %v5016_v6  ;;  %v7324_v35 = vld [vmem:[#allocation47_spill] sm:$0xff]  ;;  %v1915_v11 = vrot.slane %v6008_v15, 1  ;;  %v1625_v40 = vmul.f32 %v5877_v56, %v5145_v48 }
 0x29c   :  { %4381 = vset.pattern.permute.xlu1 %v7320_v33  ;;  %v1515_v13 = vpop.permute.xlu1 %1514  ;;  %v1343_v31 = vmax.f32 %v1340_v10, 0.0  ;;  %4382 = vset.pattern.permute.xlu2 %v7320_v33  ;;  %v1910_v10 = vmul.f32 %v5218_v34, %v7322_v24  ;;  %v7325_v42 = vrot.slane %v7324_v35, 1  ;;  %v2270_v19 = vunpack.c.l.b16 %v2201_v14 }
 0x29d   :  { %v1518_v53 = vmul.f32 %v1515_v13, %v5016_v6  ;;  %v1714_v21 = vmul.f32 %v1515_v13, %v5159_v26  ;;  %1246 = vperm.xlu1 %4381, %v5657_v59   ;;  %1250 = vperm.xlu2 %4382, %v5484_v23   ;;  %v6023_v1 = vpop.permute.xlu2 %1534  ;;  %v1626_v13 = vmul.f32 %v7323_v60, %v5145_v48  ;;  %v7326_v33 = vrot.slane %v5910_v9, 1 }
 0x29e   :  { %v2202_v61 = vpack.c.bf16 %v1343_v31, %v1343_v31  ;;  %v1718_v59 = vmul.f32 %v5903_v57, %v5159_v26  ;;  %v1768_v24 = vsel %vm1763_vm0, %v7325_v42, %v1767_v17  ;;  %v2163_v60 = vadd.f32 %v5743_v22, %v2041_v36 }
 0x29f   :  { %v1520_v49 = vadd.f32 %v1518_v53, %v1466_v51  ;;  %v1716_v46 = vadd.f32 %v1714_v21, %v1616_v39  ;;  %v1903_v51 = vsel %vm1763_vm0, %v7326_v33, %v1902_v18  ;;  %v7327_v39 = vld [vmem:[#allocation52_spill] sm:$0xff]  ;;  %v1917_v42 = vrot.slane %v1910_v10, 1 }
 0x2a0   :  { %v2271_v23 = vunpack.c.l.b16 %v2202_v61  ;;  %v1788_v53 = vmul.f32 %v4928_v5, %v7327_v39  ;;  %v2043_v17 = vmul.f32 %v5569_v0, %v7327_v39  ;;  %v2064_v36 = vrot.slane %v5992_v7, 1  ;;  %v7328_v61 = vld [vmem:[#allocation56_spill] sm:$0xff] }
 0x2a1   :  { %v1628_v31 = vadd.f32 %v1626_v13, %v1520_v49  ;;  %v1772_v27 = vadd.f32 %v1768_v24, %v1716_v46  ;;  %v1914_v9 = vrot.slane %v5996_v54, 1  ;;  %v6051_v33 = vmul.f32 %v5218_v34, %v7328_v61 }
 0x2a2   :  { %v6043_v21 = vpack.c.b16 %v2271_v23, %v2270_v19  ;;  %v1519_v18 = vadd.f32 %v1517_v52, %v5597_v45  ;;  %v1918_v56 = vsel %vm1763_vm0, %v1915_v11, %v1917_v42  ;;  %v7329_v13 = vmov 18   ;;  %v4415_v45 = vld [vmem:[%s6900_s2 + $0x8] sm:$0xff]  ;;  %v7330_v23 = vld [vmem:[#allocation77_spill] sm:$0xff] }
 0x2a3   :  { %v1720_v15 = vadd.f32 %v1718_v59, %v1628_v31  ;;  %v1907_v14 = vadd.f32 %v1903_v51, %v1772_v27  ;;  %v2165_v59 = vmax.f32 %v2163_v60, 0.0  ;;  %v1929_v54 = vrot.slane %v6018_v50, 1 }
 0x2a4   :  { %3113 = vmatmul.bf16.vlgmr.msra.gmra.mxu1 %v6043_v21  ;;  %v1627_v49 = vadd.f32 %v1625_v40, %v1519_v18  ;;  %v1794_v52 = vrot.slane %v1788_v53, 1  ;;  %v2049_v24 = vrot.slane %v2043_v17, 1  ;;  %v1637_v31 = vmul.f32 %v7330_v23, %v5145_v48 }
 0x2a5   :  { %v1787_v19 = vadd.f32 %v5930_v32, %v1720_v15  ;;  %4383 = vset.pattern.permute.xlu1 %v7329_v13  ;;  %v1523_v10 = vpop.permute.xlu1 %1522  ;;  %v2042_v27 = vadd.f32 %v5935_v62, %v1907_v14  ;;  %4384 = vset.pattern.permute.xlu2 %v7305_v8  ;;  %v1721_v60 = vmul.f32 %v6023_v1, %v5159_v26  ;;  %v1930_v40 = vrot.slane %v6051_v33, 1  ;;  %v7331_v15 = vld [vmem:[#allocation48_spill] sm:$0xff] }
 0x2a6   :  { %v1529_v46 = vmul.f32 %v1523_v10, %v5016_v6  ;;  %v1717_v35 = vmul.f32 %v1523_v10, %v5159_v26  ;;  %1317 = vperm.xlu1 %4383, %v4415_v45   ;;  %v6066_v32 = vpop.permute.xlu2 %1646  ;;  %1690 = vperm.xlu2 %4384, %v5625_v4   ;;  %v2217_v17 = vpack.c.bf16 %v2165_v59, %v2165_v59  ;;  %v7333_v59 = vrot.slane %v5981_v58, 1 }
 0x2a7   :  { %3147 = vmatmul.bf16.gmra.mxu2 %v5806_v38  ;;  %v2164_v62 = vadd.f32 %v5743_v22, %v2042_v27  ;;  %v1922_v50 = vadd.f32 %v1918_v56, %v1787_v19  ;;  %v1925_v14 = vmul.f32 %v5218_v34, %v7331_v15  ;;  %v1530_v61 = vmul.f32 %v5903_v57, %v5016_v6  ;;  %v7332_v27 = vld [vmem:[#allocation79_spill] sm:$0xff]  ;;  %v6116_v15 = vld [vmem:[#allocation2 + $0x8] ss:$0 sm:$0xff] }
 0x2a8   :  { %v1531_v51 = vadd.f32 %v1529_v46, %v5808_v25  ;;  %v1719_v39 = vadd.f32 %v1717_v35, %v1627_v49  ;;  %v1916_v19 = vsel %vm1763_vm0, %v1914_v9, %v1915_v11  ;;  %v1167_v25 = vmul.f32 %v5950_v16, %v5218_v34 }
 0x2a9   :  { %v2166_v53 = vmax.f32 %v2164_v62, 0.0  ;;  %v2057_v42 = vadd.f32 %v6004_v41, %v1922_v50  ;;  %v2060_v41 = vmul.f32 %v5569_v0, %v7332_v27  ;;  %v1796_v49 = vsel %vm1763_vm0, %v1794_v52, %v7333_v59 }
 0x2aa   :  { %v1639_v18 = vadd.f32 %v1637_v31, %v1531_v51  ;;  %v1786_v56 = vadd.f32 %v5988_v29, %v1719_v39  ;;  %v1931_v35 = vsel %vm1763_vm0, %v1929_v54, %v1930_v40  ;;  %v2300_v29 = vunpack.c.l.b16 %v2217_v17  ;;  %v7335_v51 = vld [vmem:[#allocation115_spill] sm:$0xff] }
 0x2ab   :  { %v2218_v10 = vpack.c.bf16 %v2166_v53, %v2166_v53  ;;  %v2168_v33 = vadd.f32 %v5743_v22, %v2057_v42  ;;  %v7334_v11 = vrot.slane %v5939_v30, 1  ;;  %v1532_v62 = vadd.f32 %v1530_v61, %v5704_v63  ;;  %v6104_v30 = vld [vmem:[%s6901_s3 + $0x8] sm:$0xff] }
 0x2ac   :  { %v1723_v46 = vadd.f32 %v1721_v60, %v1639_v18  ;;  %v1921_v57 = vadd.f32 %v1916_v19, %v1786_v56  ;;  %v1170_v52 = vadd.f32 %v1167_v25, %v7335_v51  ;;  %v7336_v17 = vrot.slane %v5956_v20, 1  ;;  %v7337_v18 = vld [vmem:[#allocation82_spill] sm:$0xff]  ;;  %v7343_v20 = vld [vmem:[#allocation65_spill] sm:$0xff] }
 0x2ad   :  { %v2301_v45 = vunpack.c.l.b16 %v2218_v10  ;;  %v2051_v9 = vsel %vm1763_vm0, %v2049_v24, %v7334_v11  ;;  %v2170_v31 = vmax.f32 %v2168_v33, 0.0  ;;  %v2067_v24 = vrot.slane %v2060_v41, 1 }
 0x2ae   :  { %v1801_v50 = vadd.f32 %v1796_v49, %v1723_v46  ;;  %4385 = vset.pattern.permute.xlu1 %v7305_v8  ;;  %v1635_v0 = vpop.permute.xlu1 %1634  ;;  %v2056_v23 = vadd.f32 %v2051_v9, %v1921_v57  ;;  %4386 = vset.pattern.permute.xlu2 %v7301_v47  ;;  %v2066_v47 = vsel %vm1763_vm0, %v2064_v36, %v7336_v17  ;;  %v1932_v42 = vrot.slane %v1925_v14, 1  ;;  %v7340_v14 = vld [vmem:[#allocation51_spill] sm:$0xff] }
 0x2af   :  { %v1638_v60 = vmul.f32 %v1635_v0, %v5145_v48  ;;  %1694 = vperm.xlu1 %4385, %v6104_v30   ;;  %v6107_v63 = vpop.permute.xlu2 %1550  ;;  %v2302_v54 = vpack.c.b16 %v2301_v45, %v2300_v29  ;;  %1594 = vperm.xlu2 %4386, %v5625_v4   ;;  %v1282_v61 = vmul.f32 %v6116_v15, %v7259_v37  ;;  %v7338_v4 = vrot.slane %v5916_v43, 1 }
 0x2b0   :  { %v2167_v39 = vadd.f32 %v5743_v22, %v2056_v23  ;;  %v1936_v53 = vadd.f32 %v1931_v35, %v1801_v50  ;;  %v1722_v56 = vmul.f32 %v7337_v18, %v5159_v26  ;;  %v7339_v25 = vmov %v7333_v59 }
 0x2b1   :  { %v1640_v19 = vadd.f32 %v1638_v60, %v1532_v62  ;;  %3171 = vmatmul.bf16.vlgmr.msra.gmra.mxu3 %v2302_v54  ;;  %v1798_v10 = vsel %vm1763_vm0, %v7339_v25, %v7338_v4  ;;  %v2220_v33 = vpack.c.bf16 %v2170_v31, %v2170_v31  ;;  %v6129_v41 = vmul.f32 %v5218_v34, %v7340_v14  ;;  %v7348_v4 = vld [vmem:[#allocation90_spill] sm:$0xff] }
 0x2b2   :  { %v2169_v7 = vmax.f32 %v2167_v39, 0.0  ;;  %v2071_v36 = vadd.f32 %v2066_v47, %v1936_v53  ;;  %v1933_v59 = vsel %vm1763_vm0, %v1930_v40, %v1932_v42  ;;  %v1285_v49 = vadd.f32 %v1282_v61, %v1170_v52  ;;  %v7345_v52 = vld [vmem:[#allocation109_spill] sm:$0xff]  ;;  %v7346_v39 = vld [vmem:[#allocation63_spill] sm:$0xff] }
 0x2b3   :  { %v1724_v46 = vadd.f32 %v1722_v56, %v1640_v19  ;;  %v6134_v57 = vmul.f32 %v5218_v34, %v7257_v44  ;;  %v6138_v43 = vmul.f32 %v4928_v5, %v7332_v27  ;;  %v7341_v35 = vmov %v7336_v17  ;;  %v7342_v27 = vld [vmem:[#allocation85_spill] sm:$0xff] }
 0x2b4   :  { %v2219_v58 = vpack.c.bf16 %v2169_v7, %v2169_v7  ;;  %v2068_v29 = vsel %vm1763_vm0, %v7341_v35, %v2067_v24  ;;  %v1542_v45 = vmul.f32 %v7337_v18, %v5016_v6  ;;  %v1407_v40 = vmul.f32 %v5660_v3, %v5010_v2  ;;  %v7349_v7 = vld [vmem:[#allocation87_spill] sm:$0xff] }
 0x2b5   :  { %v1802_v11 = vadd.f32 %v1798_v10, %v1724_v46  ;;  %v2171_v9 = vadd.f32 %v5743_v22, %v2071_v36  ;;  %v1283_v44 = vmul.f32 %v6116_v15, %v5724_v12  ;;  %v1400_v62 = vmul.f32 %v7342_v27, %v5010_v2 }
 0x2b6   :  { %v2324_v50 = vunpack.c.l.b16 %v2219_v58  ;;  %v2325_v0 = vunpack.c.l.b16 %v2220_v33  ;;  %v1472_v23 = vmul.f32 %v5724_v12, %v7343_v20  ;;  %v7344_v51 = vmov 1   ;;  %v6164_v12 = vld [vmem:[%s6900_s2 + $0x10] sm:$0x1] }
 0x2b7   :  { %v1937_v31 = vadd.f32 %v1933_v59, %v1802_v11  ;;  %4388 = vset.pattern.permute.xlu1 %v7344_v51  ;;  %3152 = vmatmul.bf16.gmra.mxu2 %v7345_v52  ;;  %v1161_v60 = vpop.permute.xlu1 %1160  ;;  %v1351_v3 = vadd.f32 %v5743_v22, %v1285_v49  ;;  %v1810_v54 = vrot.slane %v5976_v55, 1  ;;  %v7347_v17 = vmov 3   ;;  %v7350_v59 = vld [vmem:[#allocation118_spill] sm:$0xff] }
 0x2b8   :  { %v1168_v24 = vmul.f32 %v1161_v60, %v5218_v34  ;;  %v1436_v53 = vmul.f32 %v1161_v60, %v7346_v39  ;;  %4389 = vset.pattern.permute.xlu2 %v7347_v17  ;;  %1110 = vperm.xlu1 %4388, %v6164_v12   ;;  %v1193_v47 = vpop.permute.xlu2 %1192  ;;  %v2326_v42 = vpack.c.b16 %v2325_v0, %v2324_v50  ;;  %v2173_v19 = vmax.f32 %v2171_v9, 0.0 }
 0x2b9   :  { %1128 = vperm.xlu2 %4389, %v6164_v12   ;;  %v1203_v61 = vmul.f32 %v1193_v47, %v5218_v34  ;;  %v1443_v18 = vmul.f32 %v1193_v47, %v7346_v39  ;;  %v2072_v56 = vadd.f32 %v2068_v29, %v1937_v31  ;;  %v1294_v25 = vmul.f32 %v6116_v15, %v7348_v4  ;;  %v7351_v31 = vld [vmem:[#allocation114_spill] sm:$0xff] }
 0x2ba   :  { %v1479_v10 = vmul.f32 %v7348_v4, %v7343_v20  ;;  %v1171_v33 = vadd.f32 %v1168_v24, %v7349_v7  ;;  %v1438_v36 = vadd.f32 %v1436_v53, %v1400_v62  ;;  %3200 = vmatmul.bf16.vlgmr.msrb.gmra.mxu0 %v2326_v42  ;;  %v1435_v14 = vmul.f32 %v5950_v16, %v7346_v39  ;;  %v7352_v24 = vld [vmem:[#allocation22_spill] sm:$0xff] }
 0x2bb   :  { %v1206_v49 = vadd.f32 %v1203_v61, %v7350_v59  ;;  %v1445_v46 = vadd.f32 %v1443_v18, %v1407_v40  ;;  %v2172_v58 = vadd.f32 %v5743_v22, %v2072_v56  ;;  %v1650_v35 = vmul.f32 %v6066_v32, %v5145_v48 }
 0x2bc   :  { %v1286_v29 = vadd.f32 %v1283_v44, %v1171_v33  ;;  %v1474_v11 = vadd.f32 %v1472_v23, %v1438_v36  ;;  %v1354_v9 = vmax.f32 %v1351_v3, 0.0  ;;  %v2221_v0 = vpack.c.bf16 %v2173_v19, %v2173_v19  ;;  %v7353_v44 = vld [vmem:[#allocation31_spill] sm:$0xff]  ;;  %v7356_v36 = vld [vmem:[#allocation21_spill] sm:$0xff] }
 0x2bd   :  { %v6181_v27 = vadd.f32 %v1294_v25, %v1206_v49  ;;  %v6183_v50 = vadd.f32 %v1479_v10, %v1445_v46  ;;  %v2174_v62 = vmax.f32 %v2172_v58, 0.0  ;;  %v1399_v16 = vmul.f32 %v7351_v31, %v5010_v2 }
 0x2be   :  { %v1726_v40 = vmul.f32 %v6107_v63, %v5159_v26  ;;  %v1544_v51 = vadd.f32 %v1542_v45, %v1474_v11  ;;  %v1352_v60 = vadd.f32 %v5743_v22, %v1286_v29  ;;  %v6192_v32 = vmul.f32 %v6116_v15, %v7352_v24 }
 0x2bf   :  { %v2075_v23 = vmul.f32 %v6116_v15, %v7353_v44  ;;  %v1812_v3 = vrot.slane %v6138_v43, 1  ;;  %v1643_v53 = vpop.permute.xlu1 %1642  ;;  %v2222_v17 = vpack.c.bf16 %v2174_v62, %v2174_v62  ;;  %v1947_v47 = vrot.slane %v6129_v41, 1 }
 0x2c0   :  { %v1437_v42 = vadd.f32 %v1435_v14, %v1399_v16  ;;  %v1652_v61 = vadd.f32 %v1650_v35, %v1544_v51  ;;  %v7354_v18 = vmov 5   ;;  %v1355_v45 = vmax.f32 %v1352_v60, 0.0  ;;  %v7357_v51 = vld [vmem:[#allocation28_spill] sm:$0xff] }
 0x2c1   :  { %4390 = vset.pattern.permute.xlu1 %v7354_v18  ;;  %v1945_v22 = vrot.slane %v6134_v57, 1  ;;  %v7355_v56 = vmov 7   ;;  %v2306_v19 = vunpack.c.l.b16 %v2221_v0  ;;  %v2307_v4 = vunpack.c.l.b16 %v2222_v17  ;;  %v6209_v33 = vpop.permute.xlu2 %1558 }
 0x2c2   :  { %4391 = vset.pattern.permute.xlu2 %v7355_v56  ;;  %1146 = vperm.xlu1 %4390, %v6164_v12   ;;  %v2205_v25 = vpack.c.bf16 %v1354_v9, %v1354_v9  ;;  %v1803_v43 = vmul.f32 %v4928_v5, %v7316_v28  ;;  %v1471_v41 = vmul.f32 %v7259_v37, %v7343_v20  ;;  %v2082_v46 = vrot.slane %v2075_v23, 1 }
 0x2c3   :  { %v1541_v10 = vmul.f32 %v6023_v1, %v5016_v6  ;;  %v1728_v7 = vadd.f32 %v1726_v40, %v1652_v61  ;;  %1164 = vperm.xlu2 %4391, %v6164_v12   ;;  %v1938_v14 = vmul.f32 %v5218_v34, %v7356_v36  ;;  %v1813_v59 = vsel %vm1763_vm0, %v1810_v54, %v1812_v3 }
 0x2c4   :  { %v6216_v49 = vpack.c.b16 %v2307_v4, %v2306_v19  ;;  %v2206_v28 = vpack.c.bf16 %v1355_v45, %v1355_v45  ;;  %v1473_v37 = vadd.f32 %v1471_v41, %v1437_v42  ;;  %v1649_v58 = vmul.f32 %v1643_v53, %v5145_v48  ;;  %v7359_v45 = vld [vmem:[#allocation54_spill] sm:$0xff]  ;;  %v7360_v19 = vld [vmem:[#allocation61_spill] sm:$0xff] }
 0x2c5   :  { %v1817_v1 = vadd.f32 %v1813_v59, %v1728_v7  ;;  %v6221_v35 = vmul.f32 %v4928_v5, %v7352_v24  ;;  %v1948_v29 = vsel %vm1763_vm0, %v1945_v22, %v1947_v47  ;;  %v2276_v11 = vunpack.c.l.b16 %v2205_v25 }
 0x2c6   :  { %3176 = vmatmul.bf16.gmra.mxu3 %v6216_v49  ;;  %v2277_v9 = vunpack.c.l.b16 %v2206_v28  ;;  %v2080_v62 = vrot.slane %v6192_v32, 1  ;;  %v1809_v0 = vrot.slane %v1803_v43, 1  ;;  %v1543_v31 = vadd.f32 %v1541_v10, %v1473_v37  ;;  %v7362_v10 = vld [vmem:[#allocation88_spill] sm:$0xff] }
 0x2c7   :  { %v1952_v16 = vadd.f32 %v1948_v29, %v1817_v1  ;;  %v1818_v60 = vmul.f32 %v4928_v5, %v7357_v51  ;;  %v2073_v24 = vmul.f32 %v6116_v15, %v7357_v51  ;;  %v1944_v17 = vrot.slane %v1938_v14, 1  ;;  %v7363_v14 = vld [vmem:[#allocation119_spill] sm:$0xff] }
 0x2c8   :  { %v6228_v40 = vpack.c.b16 %v2277_v9, %v2276_v11  ;;  %v1651_v23 = vadd.f32 %v1649_v58, %v1543_v31  ;;  %v1547_v3 = vpop.permute.xlu1 %1546  ;;  %v2083_v53 = vsel %vm1763_vm0, %v2080_v62, %v2082_v46  ;;  %v7358_v42 = vmov 9   ;;  %v7365_v58 = vld [vmem:[#allocation93_spill] sm:$0xff] }
 0x2c9   :  { %v1553_v32 = vmul.f32 %v1547_v3, %v5016_v6  ;;  %v1725_v47 = vmul.f32 %v1547_v3, %v5159_v26  ;;  %v2087_v61 = vadd.f32 %v2083_v53, %v1952_v16  ;;  %v1825_v18 = vrot.slane %v6221_v35, 1  ;;  %v7366_v35 = vld [vmem:[#allocation25_spill] sm:$0xff] }
 0x2ca   :  { %3118 = vmatmul.bf16.gmra.mxu1 %v6228_v40  ;;  %4393 = vset.pattern.permute.xlu1 %v7358_v42  ;;  %v6242_v56 = vmul.f32 %v5218_v34, %v7359_v45  ;;  %v1953_v4 = vmul.f32 %v5218_v34, %v7360_v19  ;;  %v1811_v25 = vsel %vm1763_vm0, %v1809_v0, %v1810_v54  ;;  %v7361_v43 = vmov 10   ;;  %v6251_v41 = vpop.permute.xlu2 %1670  ;;  %v7364_v54 = vld [vmem:[#allocation91_spill] sm:$0xff] }
 0x2cb   :  { %4394 = vset.pattern.permute.xlu2 %v7361_v43  ;;  %1182 = vperm.xlu1 %4393, %v6164_v12   ;;  %v1661_v7 = vmul.f32 %v7362_v10, %v5145_v48  ;;  %v1729_v36 = vmul.f32 %v6209_v33, %v5159_v26  ;;  %v1555_v59 = vadd.f32 %v1553_v32, %v7363_v14  ;;  %v1824_v55 = vrot.slane %v1818_v60, 1  ;;  %v6265_v0 = vld [vmem:[#allocation4] ss:$0 sm:$0xff] }
 0x2cc   :  { %v1727_v28 = vadd.f32 %v1725_v47, %v1651_v23  ;;  %1037 = vperm.xlu2 %4394, %v6164_v12   ;;  %v2079_v46 = vrot.slane %v2073_v24, 1  ;;  %v2089_v37 = vmul.f32 %v6116_v15, %v7364_v54  ;;  %v1476_v1 = vmul.f32 %v7365_v58, %v7343_v20  ;;  %v7367_v47 = vld [vmem:[#allocation46_spill] sm:$0xff] }
 0x2cd   :  { %v2088_v29 = vmul.f32 %v6116_v15, %v7366_v35  ;;  %v1663_v11 = vadd.f32 %v1661_v7, %v1555_v59  ;;  %v2176_v31 = vadd.f32 %v6265_v0, %v2087_v61  ;;  %v1960_v16 = vrot.slane %v6242_v56, 1  ;;  %v7368_v56 = vld [vmem:[#allocation84_spill] sm:$0xff]  ;;  %v7371_v59 = vld [vmem:[#allocation34_spill] sm:$0xff] }
 0x2ce   :  { %v1816_v9 = vadd.f32 %v1811_v25, %v1727_v28  ;;  %v1946_v51 = vsel %vm1763_vm0, %v1944_v17, %v1945_v22  ;;  %v1959_v60 = vrot.slane %v1953_v4, 1  ;;  %v1554_v24 = vmul.f32 %v6107_v63, %v5016_v6 }
 0x2cf   :  { %v1820_v23 = vmul.f32 %v4928_v5, %v7353_v44  ;;  %v1731_v3 = vadd.f32 %v1729_v36, %v1663_v11  ;;  %v2095_v32 = vrot.slane %v2089_v37, 1  ;;  %v1478_v42 = vadd.f32 %v1476_v1, %v7367_v47 }
 0x2d0   :  { %v1951_v53 = vadd.f32 %v1946_v51, %v1816_v9  ;;  %v1826_v61 = vsel %vm1763_vm0, %v1824_v55, %v1825_v18  ;;  %v2081_v45 = vsel %vm1763_vm0, %v2079_v46, %v2080_v62  ;;  %v1955_v57 = vmul.f32 %v5218_v34, %v7368_v56  ;;  %v7372_v55 = vld [vmem:[#allocation95_spill] sm:$0xff] }
 0x2d1   :  { %v1831_v22 = vadd.f32 %v1826_v61, %v1731_v3  ;;  %v1659_v17 = vpop.permute.xlu1 %1658  ;;  %v2178_v4 = vmax.f32 %v2176_v31, 0.0  ;;  %v2094_v63 = vrot.slane %v2088_v29, 1  ;;  %v1961_v25 = vsel %vm1763_vm0, %v1959_v60, %v1960_v16 }
 0x2d2   :  { %v2086_v19 = vadd.f32 %v2081_v45, %v1951_v53  ;;  %v1556_v44 = vadd.f32 %v1554_v24, %v1478_v42  ;;  %v1662_v43 = vmul.f32 %v1659_v17, %v5145_v48  ;;  %v7369_v10 = vmov 11  }
 0x2d3   :  { %4395 = vset.pattern.permute.xlu1 %v7369_v10  ;;  %v1827_v7 = vrot.slane %v1820_v23, 1  ;;  %v7370_v36 = vmov 12   ;;  %v1966_v14 = vadd.f32 %v1961_v25, %v1831_v22  ;;  %v2090_v28 = vmul.f32 %v6116_v15, %v7371_v59  ;;  %v6292_v1 = vpop.permute.xlu2 %1574  ;;  %v7375_v10 = vld [vmem:[#allocation75_spill] sm:$0xff] }
 0x2d4   :  { %4396 = vset.pattern.permute.xlu2 %v7370_v36  ;;  %1200 = vperm.xlu1 %4395, %v6164_v12   ;;  %v2175_v62 = vadd.f32 %v6265_v0, %v2086_v19  ;;  %v1730_v46 = vmul.f32 %v7372_v55, %v5159_v26  ;;  %v1664_v37 = vadd.f32 %v1662_v43, %v1556_v44  ;;  %v1962_v11 = vrot.slane %v1955_v57, 1  ;;  %v7373_v57 = vld [vmem:[#allocation29_spill] sm:$0xff] }
 0x2d5   :  { %1055 = vperm.xlu2 %4396, %v6164_v12   ;;  %v2096_v29 = vsel %vm1763_vm0, %v2094_v63, %v2095_v32  ;;  %v2224_v31 = vpack.c.bf16 %v2178_v4, %v2178_v4  ;;  %v1041_v60 = vmul.f32 %v7365_v58, %v4928_v5  ;;  %v1828_v23 = vsel %vm1763_vm0, %v1825_v18, %v1827_v7 }
 0x2d6   :  { %v2177_v9 = vmax.f32 %v2175_v62, 0.0  ;;  %v2101_v51 = vadd.f32 %v2096_v29, %v1966_v14  ;;  %v1732_v24 = vadd.f32 %v1730_v46, %v1664_v37  ;;  %v2097_v53 = vrot.slane %v2090_v28, 1 }
 0x2d7   :  { %v1963_v61 = vsel %vm1763_vm0, %v1960_v16, %v1962_v11  ;;  %v2331_v56 = vunpack.c.l.b16 %v2224_v31  ;;  %v1044_v17 = vadd.f32 %v1041_v60, %v7373_v57  ;;  %v1408_v19 = vmul.f32 %v7365_v58, %v5010_v2 }
 0x2d8   :  { %v2223_v3 = vpack.c.bf16 %v2177_v9, %v2177_v9  ;;  %v1832_v47 = vadd.f32 %v1828_v23, %v1732_v24  ;;  %v2179_v42 = vadd.f32 %v6265_v0, %v2101_v51  ;;  %v2098_v63 = vsel %vm1763_vm0, %v2095_v32, %v2097_v53  ;;  %v7376_v23 = vld [vmem:[#allocation69_spill] sm:$0xff] }
 0x2d9   :  { %v7374_v44 = vmov 14   ;;  %v1363_v16 = vadd.f32 %v6265_v0, %v6181_v27  ;;  %v1295_v7 = vmul.f32 %v6116_v15, %v7375_v10  ;;  %v1480_v32 = vmul.f32 %v7375_v10, %v7343_v20  ;;  %v4143_v27 = vld [vmem:[#allocation6 + $0x178] sm:$0xff] }
 0x2da   :  { %v2330_v45 = vunpack.c.l.b16 %v2223_v3  ;;  %v1967_v22 = vadd.f32 %v1963_v61, %v1832_v47  ;;  %v1197_v4 = vpop.permute.xlu1 %1196  ;;  %v2181_v36 = vmax.f32 %v2179_v42, 0.0  ;;  %v6320_v46 = vmul.f32 %v4928_v5, %v7364_v54  ;;  %3221 = vmatpush.bf16.msrb.mxu1 %v4143_v27  ;;  %v4142_v47 = vld [vmem:[#allocation6 + $0x170] sm:$0xff]  ;;  %v4151_v10 = vld [vmem:[#allocation6 + $0x1b8] sm:$0xff] }
 0x2db   :  { %v1204_v18 = vmul.f32 %v1197_v4, %v5218_v34  ;;  %v1444_v25 = vmul.f32 %v1197_v4, %v7346_v39  ;;  %v1674_v29 = vmul.f32 %v6251_v41, %v5145_v48  ;;  %v1366_v31 = vmax.f32 %v1363_v16, 0.0  ;;  %v7377_v41 = vld [vmem:[#allocation57_spill] sm:$0xff]  ;;  %3250 = vmatpush.bf16.msra.mxu2 %v4151_v10 }
 0x2dc   :  { %4398 = vset.pattern.permute.xlu1 %v7374_v44  ;;  %v2332_v43 = vpack.c.b16 %v2331_v56, %v2330_v45  ;;  %v2102_v58 = vadd.f32 %v2098_v63, %v1967_v22  ;;  %v6316_v28 = vpop.permute.xlu2 %1083  ;;  %v1835_v51 = vmul.f32 %v4928_v5, %v7371_v59  ;;  %v2225_v24 = vpack.c.bf16 %v2181_v36, %v2181_v36  ;;  %v7378_v63 = vld [vmem:[#allocation37_spill] sm:$0xff] }
 0x2dd   :  { %4399 = vset.pattern.permute.xlu2 %v7305_v8  ;;  %1073 = vperm.xlu1 %4398, %v6164_v12   ;;  %v1207_v62 = vadd.f32 %v1204_v18, %v1044_v17  ;;  %v1446_v14 = vadd.f32 %v1444_v25, %v1408_v19  ;;  %v1566_v8 = vmul.f32 %v7372_v55, %v5016_v6  ;;  %v1840_v61 = vrot.slane %v6320_v46, 1  ;;  %v4141_v16 = vld [vmem:[#allocation6 + $0x168] sm:$0xff] }
 0x2de   :  { %1236 = vperm.xlu2 %4399, %v6164_v12   ;;  %3205 = vmatmul.bf16.gmra.mxu0 %v2332_v43  ;;  %v2180_v37 = vadd.f32 %v6265_v0, %v2102_v58  ;;  %v1970_v54 = vmul.f32 %v5218_v34, %v7376_v23  ;;  %v1734_v55 = vmul.f32 %v6292_v1, %v5159_v26  ;;  %v1842_v4 = vrot.slane %v1835_v51, 1 }
 0x2df   :  { %v1298_v11 = vadd.f32 %v1295_v7, %v1207_v62  ;;  %v1482_v9 = vadd.f32 %v1480_v32, %v1446_v14  ;;  %v6336_v42 = vmul.f32 %v5218_v34, %v7377_v41  ;;  %v6341_v22 = vmul.f32 %v4928_v5, %v7366_v35  ;;  %3222 = vmatpush.bf16.msrb.mxu1 %v4142_v47  ;;  %v7380_v7 = vld [vmem:[#allocation30_spill] sm:$0xff] }
 0x2e0   :  { %v2182_v60 = vmax.f32 %v2180_v37, 0.0  ;;  %v2209_v19 = vpack.c.bf16 %v1366_v31, %v1366_v31  ;;  %v6345_v18 = vmul.f32 %v6116_v15, %v7378_v63  ;;  %v7379_v25 = vmov 17   ;;  %v4420_v32 = vld [vmem:[%s6901_s3] sm:$0xff] }
 0x2e1   :  { %v1568_v3 = vadd.f32 %v1566_v8, %v1482_v9  ;;  %v1364_v53 = vadd.f32 %v6265_v0, %v1298_v11  ;;  %v2312_v44 = vunpack.c.l.b16 %v2225_v24  ;;  %v2105_v58 = vmul.f32 %v6116_v15, %v7380_v7 }
 0x2e2   :  { %v1667_v45 = vpop.permute.xlu1 %1666  ;;  %v2226_v56 = vpack.c.bf16 %v2182_v60, %v2182_v60  ;;  %v1977_v35 = vrot.slane %v1970_v54, 1  ;;  %v1975_v14 = vrot.slane %v6336_v42, 1  ;;  %v1843_v27 = vsel %vm1763_vm0, %v1840_v61, %v1842_v4  ;;  %v4140_v42 = vld [vmem:[#allocation6 + $0x160] sm:$0xff] }
 0x2e3   :  { %v1676_v57 = vadd.f32 %v1674_v29, %v1568_v3  ;;  %v1367_v17 = vmax.f32 %v1364_v53, 0.0  ;;  %v1565_v8 = vmul.f32 %v6209_v33, %v5016_v6  ;;  %v7381_v29 = vld [vmem:[#allocation74_spill] sm:$0xff]  ;;  %v2282_v31 = vunpack.c.l.b16 %v2209_v19  ;;  %3223 = vmatpush.bf16.msrb.mxu1 %v4141_v16  ;;  %v7383_v53 = vld [vmem:[#allocation40_spill] sm:$0xff] }
 0x2e4   :  { %v2313_v43 = vunpack.c.l.b16 %v2226_v56  ;;  %v448_v11 = vmul.f32 %v7381_v29, %v7346_v39  ;;  %v2110_v24 = vrot.slane %v6345_v18, 1  ;;  %v1673_v54 = vmul.f32 %v1667_v45, %v5145_v48  ;;  %v7382_v33 = vld [vmem:[#allocation66_spill] sm:$0xff]  ;;  %v7385_v18 = vld [vmem:[#allocation27_spill] sm:$0xff] }
 0x2e5   :  { %4400 = vset.pattern.permute.xlu1 %v7379_v25  ;;  %v1736_v36 = vadd.f32 %v1734_v55, %v1676_v57  ;;  %v2210_v62 = vpack.c.bf16 %v1367_v17, %v1367_v17  ;;  %v6365_v9 = vpop.permute.xlu2 %1228  ;;  %v1968_v55 = vmul.f32 %v5218_v34, %v7382_v33  ;;  %v1978_v3 = vsel %vm1763_vm0, %v1975_v14, %v1977_v35  ;;  %v7386_v35 = vld [vmem:[#allocation101_spill] sm:$0xff] }
 0x2e6   :  { %4401 = vset.pattern.permute.xlu2 %v7379_v25  ;;  %1702 = vperm.xlu1 %4400, %v4420_v32   ;;  %v6361_v37 = vpack.c.b16 %v2313_v43, %v2312_v44  ;;  %v285_v47 = vmul.f32 %v7383_v53, %v5010_v2  ;;  %v2112_v56 = vrot.slane %v2105_v58, 1  ;;  %v1567_v57 = vadd.f32 %v1565_v8, %v6183_v50  ;;  %v4159_v58 = vld [vmem:[#allocation6 + $0x1f8] sm:$0xff] }
 0x2e7   :  { %1706 = vperm.xlu2 %4401, %v6104_v30   ;;  %v2283_v51 = vunpack.c.l.b16 %v2210_v62  ;;  %v1847_v60 = vadd.f32 %v1843_v27, %v1736_v36  ;;  %v1839_v19 = vrot.slane %v6341_v22, 1  ;;  %v2103_v44 = vmul.f32 %v6116_v15, %v7385_v18  ;;  %3224 = vmatpush.bf16.msrb.mxu1 %v4140_v42  ;;  %v7387_v36 = vld [vmem:[#allocation36_spill] sm:$0xff]  ;;  %v4139_v8 = vld [vmem:[#allocation6 + $0x158] sm:$0xff] }
 0x2e8   :  { %3181 = vmatmul.bf16.gmra.mxu3 %v6361_v37  ;;  %v451_v45 = vadd.f32 %v448_v11, %v285_v47  ;;  %v1675_v43 = vadd.f32 %v1673_v54, %v1567_v57  ;;  %v2113_v10 = vsel %vm1763_vm0, %v2110_v24, %v2112_v56  ;;  %v1974_v50 = vrot.slane %v1968_v55, 1  ;;  %v4158_v47 = vld [vmem:[#allocation6 + $0x1f0] sm:$0xff]  ;;  %v4167_v57 = vld [vmem:[#allocation6 + $0x238] sm:$0xff] }
 0x2e9   :  { %v6375_v41 = vpack.c.b16 %v2283_v51, %v2282_v31  ;;  %v1982_v17 = vadd.f32 %v1978_v3, %v1847_v60  ;;  %v681_v22 = vmul.f32 %v7386_v35, %v5016_v6  ;;  %v515_v62 = vmul.f32 %v7343_v20, %v7387_v36  ;;  %v7388_v51 = vld [vmem:[#allocation104_spill] sm:$0xff]  ;;  %3279 = vmatpush.bf16.msrb.mxu3 %v4159_v58  ;;  %v4150_v56 = vld [vmem:[#allocation6 + $0x1b0] sm:$0xff] }
 0x2ea   :  { %v844_v60 = vmul.f32 %v7388_v51, %v5145_v48  ;;  %v1841_v54 = vsel %vm1763_vm0, %v1839_v19, %v1840_v61  ;;  %v2109_v55 = vrot.slane %v2103_v44, 1  ;;  %v1850_v3 = vmul.f32 %v4928_v5, %v7380_v7  ;;  %v7391_v58 = vld [vmem:[#allocation92_spill] sm:$0xff]  ;;  %3251 = vmatpush.bf16.msra.mxu2 %v4150_v56  ;;  %v7392_v35 = vld [vmem:[#allocation81_spill] sm:$0xff]  ;;  %3308 = vmatpush.bf16.msra.mxu0 %v4167_v57 }
 0x2eb   :  { %7384 = vst [vmem:[#allocation16_spill] sm:$0xff] %v6375_v41  ;;  %3123 = vmatmul.bf16.gmra.mxu1 %v6375_v41  ;;  %v6380_v4 = vpop.permute.xlu1 %1570  ;;  %v2117_v27 = vadd.f32 %v2113_v10, %v1982_v17  ;;  %v518_v31 = vadd.f32 %v515_v62, %v451_v45  ;;  %v1976_v42 = vsel %vm1763_vm0, %v1974_v50, %v1975_v14  ;;  %v4138_v17 = vld [vmem:[#allocation6 + $0x150] sm:$0xff] }
 0x2ec   :  { %v1733_v16 = vmul.f32 %v6380_v4, %v5159_v26  ;;  %3225 = vmatpush.bf16.msrb.mxu1 %v4139_v8  ;;  %v1578_v61 = vmul.f32 %v6292_v1, %v5016_v6  ;;  %v6411_v19 = vmul.f32 %v4928_v5, %v7378_v63  ;;  %v7389_v45 = vld [vmem:[#allocation98_spill] sm:$0xff]  ;;  %v2111_v14 = vsel %vm1763_vm0, %v2109_v55, %v2110_v24  ;;  %v4157_v8 = vld [vmem:[#allocation6 + $0x1e8] sm:$0xff] }
 0x2ed   :  { %v684_v46 = vadd.f32 %v681_v22, %v518_v31  ;;  %v6415_v44 = vmul.f32 %v5218_v34, %v7389_v45  ;;  %v1077_v50 = vmul.f32 %v7391_v58, %v4928_v5  ;;  %3280 = vmatpush.bf16.msrb.mxu3 %v4158_v47  ;;  %v1306_v63 = vmul.f32 %v6116_v15, %v6316_v28  ;;  %v7393_v24 = vld [vmem:[#allocation80_spill] sm:$0xff] }
 0x2ee   :  { %4403 = vset.pattern.permute.xlu1 %v7329_v13  ;;  %v1735_v11 = vadd.f32 %v1733_v16, %v1675_v43  ;;  %v6399_v33 = vpop.permute.xlu2 %1586  ;;  %v7390_v16 = vld [vmem:[#allocation103_spill] sm:$0xff]  ;;  %v7095_v55 = vrot.slane %v6411_v19, 1 }
 0x2ef   :  { %4404 = vset.pattern.permute.xlu2 %v7329_v13  ;;  %1746 = vperm.xlu1 %4403, %v4420_v32   ;;  %v1239_v13 = vmul.f32 %v6365_v9, %v5218_v34  ;;  %v911_v10 = vmul.f32 %v5159_v26, %v7390_v16  ;;  %v847_v1 = vadd.f32 %v844_v60, %v684_v46  ;;  %v7094_v56 = vrot.slane %v6415_v44, 1  ;;  %v4156_v45 = vld [vmem:[#allocation6 + $0x1e0] sm:$0xff] }
 0x2f0   :  { %1750 = vperm.xlu2 %4404, %v6104_v30   ;;  %v1846_v32 = vadd.f32 %v1841_v54, %v1735_v11  ;;  %v2184_v30 = vadd.f32 %v6265_v0, %v2117_v27  ;;  %3226 = vmatpush.bf16.msrb.mxu1 %v4138_v17  ;;  %v1580_v11 = vadd.f32 %v1578_v61, %v7393_v24  ;;  %v4137_v54 = vld [vmem:[#allocation6 + $0x148] sm:$0xff]  ;;  %v1857_v61 = vrot.slane %v1850_v3, 1 }
 0x2f1   :  { %v1242_v22 = vadd.f32 %v1239_v13, %v7392_v35  ;;  %v1738_v31 = vmul.f32 %v6399_v33, %v5159_v26  ;;  %3281 = vmatpush.bf16.msrb.mxu3 %v4157_v8 }
 0x2f2   :  { %v1981_v43 = vadd.f32 %v1976_v42, %v1846_v32  ;;  %v2186_v60 = vmax.f32 %v2184_v30, 0.0  ;;  %v7394_v32 = vld [vmem:[#allocation72_spill] sm:$0xff]  ;;  %v914_v42 = vadd.f32 %v911_v10, %v847_v1 }
 0x2f3   :  { %v1985_v47 = vmul.f32 %v5218_v34, %v7394_v32  ;;  %v1309_v30 = vadd.f32 %v1306_v63, %v1242_v22  ;;  %v4136_v1 = vld [vmem:[#allocation6 + $0x140] sm:$0xff]  ;;  %v7396_v63 = vld [vmem:[#allocation33_spill] sm:$0xff] }
 0x2f4   :  { %v1683_v62 = vpop.permute.xlu1 %1682  ;;  %v2116_v27 = vadd.f32 %v2111_v14, %v1981_v43  ;;  %3227 = vmatpush.bf16.msrb.mxu1 %v4137_v54  ;;  %v1080_v14 = vadd.f32 %v1077_v50, %v914_v42  ;;  %v2228_v10 = vpack.c.bf16 %v2186_v60, %v2186_v60  ;;  %v2120_v22 = vmul.f32 %v6116_v15, %v7396_v63  ;;  %v918_v42 = vpop.permute.xlu0 %917 }
 0x2f5   :  { %v1686_v51 = vmul.f32 %v1683_v62, %v5145_v48  ;;  %v1992_v35 = vrot.slane %v1985_v47, 1  ;;  %v1375_v24 = vadd.f32 %v6265_v0, %v1309_v30  ;;  %3282 = vmatpush.bf16.msrb.mxu3 %v4156_v45  ;;  %v4149_v45 = vld [vmem:[#allocation6 + $0x1a8] sm:$0xff] }
 0x2f6   :  { %v2183_v13 = vadd.f32 %v6265_v0, %v2116_v27  ;;  %v2337_v47 = vunpack.c.l.b16 %v2228_v10  ;;  %3252 = vmatpush.bf16.msra.mxu2 %v4149_v45 }
 0x2f7   :  { %4405 = vset.pattern.permute.xlu1 %v7379_v25  ;;  %v1688_v46 = vadd.f32 %v1686_v51, %v1580_v11  ;;  %v6437_v57 = vpop.permute.xlu2 %1250  ;;  %v7395_v25 = vld [vmem:[#allocation106_spill] sm:$0xff]  ;;  %v1993_v27 = vsel %vm1763_vm0, %v7094_v56, %v1992_v35  ;;  %v6454_v11 = vmul.f32 %v6116_v15, %v7383_v53  ;;  %v1378_v35 = vmax.f32 %v1375_v24, 0.0 }
 0x2f8   :  { %1254 = vperm.xlu1 %4405, %v6164_v12   ;;  %1321 = vperm.xlu2 %4404, %v6164_v12   ;;  %v2185_v17 = vmax.f32 %v2183_v13, 0.0  ;;  %v1240_v43 = vmul.f32 %v7395_v25, %v5218_v34  ;;  %v1858_v12 = vsel %vm1763_vm0, %v7095_v55, %v1857_v61  ;;  %v1456_v50 = vmul.f32 %v6437_v57, %v7346_v39  ;;  %v4155_v13 = vld [vmem:[#allocation6 + $0x1d8] sm:$0xff] }
 0x2f9   :  { %v1740_v16 = vadd.f32 %v1738_v31, %v1688_v46  ;;  %3228 = vmatpush.bf16.msrb.mxu1 %v4136_v1  ;;  %v6456_v31 = vpop.f32.mrf.mxu2  ;;  %v1451_v46 = vmul.f32 %v6365_v9, %v7346_v39  ;;  %v1577_v61 = vmul.f32 %v6380_v4, %v5016_v6  ;;  %v7096_v4 = vrot.slane %v6454_v11, 1  ;;  %3283 = vmatpush.bf16.msrb.mxu3 %v4155_v13 }
 0x2fa   :  { %v2227_v3 = vpack.c.bf16 %v2185_v17, %v2185_v17  ;;  %7397 = vst [vmem:[#allocation17_spill] sm:$0xff] %v6456_v31  ;;  %v1243_v60 = vadd.f32 %v1240_v43, %v1080_v14  ;;  %v7398_v14 = vld [vmem:[#allocation44_spill] sm:$0xff]  ;;  %v1848_v24 = vmul.f32 %v4928_v5, %v7385_v18  ;;  %v2213_v13 = vpack.c.bf16 %v1378_v35, %v1378_v35 }
 0x2fb   :  { %v1862_v62 = vadd.f32 %v1858_v12, %v1740_v16  ;;  %v4166_v16 = vld [vmem:[#allocation6 + $0x230] sm:$0xff]  ;;  %v1415_v10 = vmul.f32 %v7398_v14, %v5010_v2  ;;  %v2127_v12 = vrot.slane %v2120_v22, 1  ;;  %v4148_v14 = vld [vmem:[#allocation6 + $0x1a0] sm:$0xff] }
 0x2fc   :  { %v2336_v8 = vunpack.c.l.b16 %v2227_v3  ;;  %3309 = vmatpush.bf16.msra.mxu0 %v4166_v16  ;;  %v1854_v55 = vrot.slane %v1848_v24, 1  ;;  %3253 = vmatpush.bf16.msra.mxu2 %v4148_v14 }
 0x2fd   :  { %v1997_v51 = vadd.f32 %v1993_v27, %v1862_v62  ;;  %v6458_v54 = vpop.permute.xlu1 %1087  ;;  %v4154_v62 = vld [vmem:[#allocation6 + $0x1d0] sm:$0xff]  ;;  %v1487_v27 = vmul.f32 %v6316_v28, %v7343_v20  ;;  %v2128_v18 = vsel %vm1763_vm0, %v7096_v4, %v2127_v12  ;;  %v1314_v4 = vpop.permute.xlu0 %1313 }
 0x2fe   :  { %v1307_v30 = vmul.f32 %v6116_v15, %v6458_v54  ;;  %v1420_v17 = vmul.f32 %v6458_v54, %v5010_v2  ;;  %v2338_v43 = vpack.c.b16 %v2337_v47, %v2336_v8  ;;  %v1453_v8 = vadd.f32 %v1451_v46, %v1415_v10  ;;  %v7399_v47 = vld [vmem:[#allocation105_spill] sm:$0xff]  ;;  %3284 = vmatpush.bf16.msrb.mxu3 %v4154_v62 }
 0x2ff   :  { %v1579_v56 = vadd.f32 %v1577_v61, %v7399_v47  ;;  %v6487_v46 = vmul.f32 %v4928_v5, %v7383_v53  ;;  %v7402_v61 = vld [vmem:[#allocation59_spill] sm:$0xff]  ;;  %v4165_v10 = vld [vmem:[#allocation6 + $0x228] sm:$0xff]  ;;  %v2288_v62 = vunpack.c.l.b16 %v2213_v13 }
 0x300   :  { %v1310_v1 = vadd.f32 %v1307_v30, %v1243_v60  ;;  %v6470_v9 = vadd.f32 %v1456_v50, %v1420_v17  ;;  %3210 = vmatmul.bf16.gmra.mxu0 %v2338_v43  ;;  %v1691_v3 = vpop.permute.xlu2 %1690  ;;  %v7400_v50 = vld [vmem:[#allocation20_spill] sm:$0xff]  ;;  %v7401_v30 = vld [vmem:[#allocation102_spill] sm:$0xff]  ;;  %v1983_v43 = vmul.f32 %v5218_v34, %v7402_v61  ;;  %v1489_v47 = vadd.f32 %v1487_v27, %v1453_v8 }
 0x301   :  { %v1863_v22 = vmul.f32 %v4928_v5, %v7400_v50  ;;  %v1685_v17 = vmul.f32 %v7401_v30, %v5145_v48  ;;  %v2118_v16 = vmul.f32 %v6116_v15, %v7400_v50  ;;  %v2132_v50 = vadd.f32 %v2128_v18, %v1997_v51  ;;  %v6494_v31 = vpop.f32.mrf.mxu2  ;;  %3310 = vmatpush.bf16.msra.mxu0 %v4165_v10  ;;  %v4164_v13 = vld [vmem:[#allocation6 + $0x220] sm:$0xff] }
 0x302   :  { %v1376_v60 = vadd.f32 %v6265_v0, %v1310_v1  ;;  %v4153_v1 = vld [vmem:[#allocation6 + $0x1c8] sm:$0xff]  ;;  %7403 = vst [vmem:[#allocation38_spill] sm:$0xff] %v6494_v31  ;;  %v1697_v53 = vmul.f32 %v1691_v3, %v5145_v48  ;;  %v7099_v3 = vrot.slane %v6487_v46, 1  ;;  %v928_v18 = vmul.f32 %v918_v42, %v5159_v26 }
 0x303   :  { %v1687_v35 = vadd.f32 %v1685_v17, %v1579_v56  ;;  %v1869_v12 = vrot.slane %v1863_v22, 1  ;;  %v2124_v27 = vrot.slane %v2118_v16, 1  ;;  %v7404_v56 = vrot.slane %v6411_v19, 1  ;;  %3285 = vmatpush.bf16.msrb.mxu3 %v4153_v1  ;;  %v4152_v17 = vld [vmem:[#allocation6 + $0x1c0] sm:$0xff]  ;;  %v4147_v22 = vld [vmem:[#allocation6 + $0x198] sm:$0xff] }
 0x304   :  { %v1379_v45 = vmax.f32 %v1376_v60, 0.0  ;;  %3254 = vmatpush.bf16.msra.mxu2 %v4147_v22 }
 0x305   :  { %v1856_v51 = vsel %vm1763_vm0, %v1854_v55, %v7404_v56  ;;  %v2188_v55 = vadd.f32 %v6265_v0, %v2132_v50  ;;  %3311 = vmatpush.bf16.msra.mxu0 %v4164_v13  ;;  %v7407_v50 = vrot.slane %v6454_v11, 1  ;;  %v6531_v11 = vpop.f32.mrf.mxu0  ;;  %v6536_v22 = vpop.permute.xlu0 %1598 }
 0x306   :  { %v1583_v60 = vpop.permute.xlu1 %1582  ;;  %v2214_v30 = vpack.c.bf16 %v1379_v45, %v1379_v45  ;;  %v1989_v45 = vrot.slane %v1983_v43, 1  ;;  %v1094_v43 = vmul.f32 %v6316_v28, %v4928_v5 }
 0x307   :  { %v1589_v61 = vmul.f32 %v1583_v60, %v5016_v6  ;;  %v1737_v52 = vmul.f32 %v1583_v60, %v5159_v26  ;;  %3286 = vmatpush.bf16.msrb.mxu3 %v4152_v17 }
 0x308   :  { %v2289_v41 = vunpack.c.l.b16 %v2214_v30 }
 0x309   :  { %v1591_v8 = vadd.f32 %v1589_v61, %v1489_v47  ;;  %v1739_v24 = vadd.f32 %v1737_v52, %v1687_v35  ;;  %v1595_v14 = vpop.permute.xlu2 %1594  ;;  %v7405_v52 = vrot.slane %v6415_v44, 1  ;;  %v1324_v47 = vmul.f32 %v6116_v15, %v1314_v4  ;;  %v7406_v35 = vld [vmem:[#allocation35_spill] sm:$0xff] }
 0x30a   :  { %v6504_v10 = vpack.c.b16 %v2289_v41, %v2288_v62  ;;  %v1741_v19 = vmul.f32 %v1595_v14, %v5159_v26  ;;  %v931_v30 = vadd.f32 %v928_v18, %v7406_v35  ;;  %v1871_v44 = vsel %vm1763_vm0, %v1869_v12, %v7099_v3  ;;  %v6525_v56 = vpop.f32.mrf.mxu2  ;;  %v7417_v3 = vld [vmem:[#allocation116_spill] sm:$0xff] }
 0x30b   :  { %v1861_v60 = vadd.f32 %v1856_v51, %v1739_v24  ;;  %v1699_v16 = vadd.f32 %v1697_v53, %v1591_v8  ;;  %v1991_v1 = vsel %vm1763_vm0, %v1989_v45, %v7405_v52  ;;  %v2126_v53 = vsel %vm1763_vm0, %v2124_v27, %v7407_v50  ;;  %7408 = vst [vmem:[#allocation18_spill] sm:$0xff] %v6525_v56 }
 0x30c   :  { %3128 = vmatmul.bf16.gmra.mxu1 %v6504_v10  ;;  %v1491_v61 = vmul.f32 %v1314_v4, %v7343_v20  ;;  %v2190_v24 = vmax.f32 %v2188_v55, 0.0  ;;  %v1097_v17 = vadd.f32 %v1094_v43, %v931_v30  ;;  %v1419_v45 = vmul.f32 %v6316_v28, %v5010_v2 }
 0x30d   :  { %v1996_v41 = vadd.f32 %v1991_v1, %v1861_v60  ;;  %v1743_v42 = vadd.f32 %v1741_v19, %v1699_v16  ;;  %v1095_v4 = vmul.f32 %v6458_v54, %v4928_v5  ;;  %v1601_v13 = vmul.f32 %v1595_v14, %v5016_v6  ;;  %v7409_v19 = vld [vmem:[#allocation32_spill] sm:$0xff] }
 0x30e   :  { %v6541_v28 = vmul.f32 %v6116_v15, %v7409_v19  ;;  %v2230_v1 = vpack.c.bf16 %v2190_v24, %v2190_v24  ;;  %v6545_v43 = vmul.f32 %v4928_v5, %v7396_v63  ;;  %v6550_v14 = vmul.f32 %v6116_v15, %v7387_v36 }
 0x30f   :  { %v6523_v62 = vadd.f32 %v1871_v44, %v1743_v42  ;;  %v1247_v51 = vpop.permute.xlu1 %1246  ;;  %v2131_v8 = vadd.f32 %v2126_v53, %v1996_v41  ;;  %v1258_v30 = vmul.f32 %v6437_v57, %v5218_v34  ;;  %v7410_v44 = vld [vmem:[#allocation113_spill] sm:$0xff] }
 0x310   :  { %v1257_v18 = vmul.f32 %v1247_v51, %v5218_v34  ;;  %v1455_v12 = vmul.f32 %v1247_v51, %v7346_v39  ;;  %v1098_v50 = vadd.f32 %v1095_v4, %v7410_v44  ;;  %v4146_v51 = vld [vmem:[#allocation6 + $0x190] sm:$0xff]  ;;  %v2319_v57 = vunpack.c.l.b16 %v2230_v1 }
 0x311   :  { %v2187_v27 = vadd.f32 %v6265_v0, %v2131_v8  ;;  %v7411_v8 = vld [vmem:[#allocation43_spill] sm:$0xff]  ;;  %3255 = vmatpush.bf16.msra.mxu2 %v4146_v51  ;;  %v4145_v51 = vld [vmem:[#allocation6 + $0x188] sm:$0xff] }
 0x312   :  { %v1260_v60 = vadd.f32 %v1257_v18, %v1097_v17  ;;  %v1457_v16 = vadd.f32 %v1455_v12, %v1419_v45  ;;  %v2133_v24 = vmul.f32 %v6116_v15, %v7411_v8  ;;  %v7412_v17 = vld [vmem:[#allocation60_spill] sm:$0xff]  ;;  %v6564_v12 = vmul.f32 %v5218_v34, %v7381_v29 }
 0x313   :  { %v1129_v55 = vpop.permute.xlu2 %1128  ;;  %v2189_v52 = vmax.f32 %v2187_v27, 0.0  ;;  %v1261_v29 = vadd.f32 %v1258_v30, %v1098_v50 }
 0x314   :  { %v1327_v41 = vadd.f32 %v1324_v47, %v1260_v60  ;;  %v1493_v42 = vadd.f32 %v1491_v61, %v1457_v16  ;;  %v1133_v35 = vmul.f32 %v1129_v55, %v5218_v34  ;;  %v1272_v47 = vmul.f32 %v6116_v15, %v7412_v17  ;;  %v7413_v61 = vld [vmem:[#allocation58_spill] sm:$0xff] }
 0x315   :  { %v2229_v53 = vpack.c.bf16 %v2189_v52, %v2189_v52  ;;  %v7414_v60 = vld [vmem:[#allocation62_spill] sm:$0xff]  ;;  %v1452_v55 = vmul.f32 %v7395_v25, %v7346_v39  ;;  %v1416_v52 = vmul.f32 %v7391_v58, %v5010_v2  ;;  %v7100_v17 = vrot.slane %v6550_v14, 1  ;;  %3256 = vmatpush.bf16.msra.mxu2 %v4145_v51 }
 0x316   :  { %v1136_v45 = vadd.f32 %v1133_v35, %v7413_v61  ;;  %v6560_v18 = vadd.f32 %v1601_v13, %v1493_v42  ;;  %v1381_v4 = vadd.f32 %v6265_v0, %v1327_v41  ;;  %v1998_v16 = vmul.f32 %v5218_v34, %v7414_v60  ;;  %v6573_v35 = vpop.f32.mrf.mxu2 }
 0x317   :  { %v2318_v27 = vunpack.c.l.b16 %v2229_v53  ;;  %7415 = vst [vmem:[#allocation49_spill] sm:$0xff] %v6573_v35  ;;  %v4163_v53 = vld [vmem:[#allocation6 + $0x218] sm:$0xff]  ;;  %v2139_v61 = vrot.slane %v2133_v24, 1  ;;  %v1488_v25 = vmul.f32 %v6458_v54, %v7343_v20  ;;  %v1454_v54 = vadd.f32 %v1452_v55, %v1416_v52 }
 0x318   :  { %v1275_v13 = vadd.f32 %v1272_v47, %v1136_v45  ;;  %v1318_v42 = vpop.permute.xlu1 %1317  ;;  %v7101_v47 = vrot.slane %v6564_v12, 1  ;;  %v6584_v45 = vpop.f32.mrf.mxu0  ;;  %v1384_v50 = vmax.f32 %v1381_v4, 0.0  ;;  %3312 = vmatpush.bf16.msra.mxu0 %v4163_v53  ;;  %v2004_v24 = vrot.slane %v1998_v16, 1  ;;  %v4144_v16 = vld [vmem:[#allocation6 + $0x180] sm:$0xff]  ;;  %v4162_v53 = vld [vmem:[#allocation6 + $0x210] sm:$0xff] }
 0x319   :  { %v1325_v44 = vmul.f32 %v6116_v15, %v1318_v42  ;;  %v1492_v1 = vmul.f32 %v1318_v42, %v7343_v20  ;;  %v6577_v41 = vpack.c.b16 %v2319_v57, %v2318_v27  ;;  %7416 = vst [vmem:[#allocation19_spill] sm:$0xff] %v6584_v45  ;;  %v6591_v57 = vpop.permute.xlu0 %1019  ;;  %v6594_v42 = vld [vmem:[#allocation2 + $0x8] ss:$0 sm:$0xff]  ;;  %v1590_v55 = vmul.f32 %v6399_v33, %v5016_v6  ;;  %v7418_v35 = vld [vmem:[#allocation67_spill] sm:$0xff]  ;;  %v4161_v45 = vld [vmem:[#allocation6 + $0x208] sm:$0xff] }
 0x31a   :  { %v1341_v58 = vadd.f32 %v6265_v0, %v1275_v13  ;;  %v2141_v51 = vsel %vm1763_vm0, %v2139_v61, %v7100_v17  ;;  %v2215_v27 = vpack.c.bf16 %v1384_v50, %v1384_v50  ;;  %v2000_v31 = vmul.f32 %v5218_v34, %v7418_v35  ;;  %3257 = vmatpush.bf16.msra.mxu2 %v4144_v16 }
 0x31b   :  { %v1328_v30 = vadd.f32 %v1325_v44, %v1261_v29  ;;  %v6587_v15 = vadd.f32 %v1492_v1, %v6470_v9  ;;  %3186 = vmatmul.bf16.gmra.mxu3 %v6577_v41  ;;  %v1284_v9 = vmul.f32 %v6594_v42, %v6591_v57  ;;  %v2423_v29 = vshll.u32 %v6043_v21, 16  ;;  %v6601_v1 = vld [vmem:[#allocation7] ss:$0 sm:$0xff] }
 0x31c   :  { %v1344_v60 = vmax.f32 %v1341_v58, 0.0  ;;  %3229 = vmatmul.bf16.vlgmr.msrb.gmra.mxu1 %v6216_v49  ;;  %v1490_v49 = vadd.f32 %v1488_v25, %v1454_v54  ;;  %v2006_v58 = vsel %vm1763_vm0, %v2004_v24, %v7101_v47  ;;  %v3086_v33 = vadd.f32 %v6601_v1, %v6531_v11  ;;  %3313 = vmatpush.bf16.msra.mxu0 %v4162_v53 }
 0x31d   :  { %v1165_v13 = vpop.permute.xlu2 %1164  ;;  %v1382_v4 = vadd.f32 %v6265_v0, %v1328_v30  ;;  %v2011_v25 = vadd.f32 %v2006_v58, %v6523_v62  ;;  %v1742_v61 = vmul.f32 %v6536_v22, %v5159_v26  ;;  %v2421_v16 = vshrl.u32 %v6043_v21, 16 }
 0x31e   :  { %v1169_v44 = vmul.f32 %v1165_v13, %v5218_v34  ;;  %v2236_v52 = vpack.c.bf16 %v1344_v60, %v1344_v60  ;;  %v3143_v11 = vpop.f32.mrf.mxu2  ;;  %v2007_v21 = vrot.slane %v2000_v31, 1 }
 0x31f   :  { %v1385_v30 = vmax.f32 %v1382_v4, 0.0 }
 0x320   :  { %v1172_v13 = vadd.f32 %v1169_v44, %v7417_v3  ;;  %v2418_v54 = vunpack.c.l.b16 %v2236_v52  ;;  %v2425_v3 = vrot.slane %v2423_v29, 1  ;;  %v1592_v44 = vadd.f32 %v1590_v55, %v1490_v49  ;;  %3314 = vmatpush.bf16.msra.mxu0 %v4161_v45 }
 0x321   :  { %v3114_v24 = vpop.f32.mrf.mxu1  ;;  %v1695_v4 = vpop.permute.xlu1 %1694  ;;  %v2216_v17 = vpack.c.bf16 %v1385_v30, %v1385_v30  ;;  %v2294_v52 = vunpack.c.l.b16 %v2215_v27 }
 0x322   :  { %v1287_v60 = vadd.f32 %v1284_v9, %v1172_v13  ;;  %v3115_v50 = vadd.f32 %v3114_v24, %v3086_v33  ;;  %v1698_v35 = vmul.f32 %v1695_v4, %v5145_v48  ;;  %v2419_v47 = vpack.c.b16 %v2418_v54, %v2418_v54  ;;  %v6622_v30 = vpop.f32.mrf.mxu0 }
 0x323   :  { %v2295_v53 = vunpack.c.l.b16 %v2216_v17  ;;  %v2146_v13 = vadd.f32 %v2141_v51, %v2011_v25  ;;  %v2142_v33 = vrot.slane %v6541_v28, 1  ;;  %v2426_v27 = vor.u32 %v2425_v3, %v2421_v16  ;;  %v7423_v16 = vld [vmem:[#allocation117_spill] sm:$0xff] }
 0x324   :  { %v1353_v62 = vadd.f32 %v6265_v0, %v1287_v60  ;;  %v1700_v58 = vadd.f32 %v1698_v35, %v1592_v44  ;;  %v2428_v56 = vshll.u32 %v2419_v47, 16  ;;  %v3144_v9 = vadd.f32 %v3143_v11, %v3115_v50  ;;  %v4160_v60 = vld [vmem:[#allocation6 + $0x200] sm:$0xff] }
 0x325   :  { %v6626_v49 = vpack.c.b16 %v2295_v53, %v2294_v52  ;;  %v7419_v47 = vrot.slane %v6545_v43, 1  ;;  %v7420_v51 = vrot.slane %v6487_v46, 1  ;;  %v2439_v24 = vshll.u32 %v6228_v40, 16  ;;  %3315 = vmatpush.bf16.msra.mxu0 %v4160_v60 }
 0x326   :  { %v1356_v29 = vmax.f32 %v1353_v62, 0.0  ;;  %v6624_v55 = vpop.permute.xlu2 %1037  ;;  %v1744_v54 = vadd.f32 %v1742_v61, %v1700_v58  ;;  %v2430_v17 = vrot.slane %v2428_v56, 1  ;;  %v2191_v28 = vadd.f32 %v6265_v0, %v2146_v13  ;;  %v7424_v58 = vld [vmem:[#allocation86_spill] sm:$0xff] }
 0x327   :  { %v1873_v45 = vsel %vm1763_vm0, %v7420_v51, %v7419_v47  ;;  %3157 = vmatmul.bf16.gmra.mxu2 %v6626_v49  ;;  %v7421_v56 = vrot.slane %v6564_v12, 1  ;;  %v7422_v44 = vrot.slane %v6550_v14, 1  ;;  %v2441_v62 = vrot.slane %v2439_v24, 1 }
 0x328   :  { %v2238_v25 = vpack.c.bf16 %v1356_v29, %v1356_v29  ;;  %v1877_v4 = vadd.f32 %v1873_v45, %v1744_v54  ;;  %v2431_v50 = vsel %vm2355_vm1, %v2426_v27, %v2430_v17  ;;  %v2193_v53 = vmax.f32 %v2191_v28, 0.0 }
 0x329   :  { %v2008_v31 = vsel %vm1763_vm0, %v7421_v56, %v2007_v21  ;;  %v2143_v35 = vsel %vm1763_vm0, %v7422_v44, %v2142_v33  ;;  %v1266_v12 = vmul.f32 %v6594_v42, %v7423_v16  ;;  %v2437_v29 = vshrl.u32 %v6228_v40, 16 }
 0x32a   :  { %v2434_v43 = vunpack.c.l.b16 %v2238_v25  ;;  %v2012_v61 = vadd.f32 %v2008_v31, %v1877_v4  ;;  %v1111_v46 = vpop.permute.xlu1 %1110  ;;  %v6651_v17 = vpop.f32.mrf.mxu0  ;;  %v2231_v47 = vpack.c.bf16 %v2193_v53, %v2193_v53  ;;  %v413_v25 = vmul.f32 %v7376_v23, %v7346_v39  ;;  %v7427_v23 = vld [vmem:[#allocation89_spill] sm:$0xff] }
 0x32b   :  { %v1115_v3 = vmul.f32 %v1111_v46, %v5218_v34  ;;  %3287 = vmatmul.bf16.vlgmr.msrb.gmra.mxu3 %v2431_v50  ;;  %v2442_v60 = vor.u32 %v2441_v62, %v2437_v29  ;;  %v250_v50 = vmul.f32 %v7371_v59, %v5010_v2  ;;  %v504_v16 = vmul.f32 %v7343_v20, %v7380_v7 }
 0x32c   :  { %v2435_v11 = vpack.c.b16 %v2434_v43, %v2434_v43  ;;  %3234 = vmatmul.bf16.gmra.mxu1 %v6361_v37  ;;  %v2147_v52 = vadd.f32 %v2143_v35, %v2012_v61  ;;  %v2342_v31 = vunpack.c.l.b16 %v2231_v47  ;;  %v7425_v61 = vld [vmem:[#allocation68_spill] sm:$0xff]  ;;  %v431_v59 = vmul.f32 %v7394_v32, %v7346_v39 }
 0x32d   :  { %v1118_v13 = vadd.f32 %v1115_v3, %v7424_v58  ;;  %v2359_v46 = vshll.u32 %v7425_v61, 16  ;;  %v416_v35 = vadd.f32 %v413_v25, %v250_v50  ;;  %v6682_v39 = vmul.f32 %v4928_v5, %v7409_v19 }
 0x32e   :  { %v2444_v54 = vshll.u32 %v2435_v11, 16  ;;  %v2192_v27 = vadd.f32 %v6265_v0, %v2147_v52  ;;  %v7426_v11 = vld [vmem:[#allocation83_spill] sm:$0xff]  ;;  %v268_v32 = vmul.f32 %v7380_v7, %v5010_v2  ;;  %v2357_v19 = vshrl.u32 %v7425_v61, 16 }
 0x32f   :  { %v1269_v14 = vadd.f32 %v1266_v12, %v1118_v13  ;;  %v6653_v33 = vpop.permute.xlu2 %1055  ;;  %v1278_v62 = vmul.f32 %v6594_v42, %v7426_v11  ;;  %v7428_v12 = vld [vmem:[#allocation96_spill] sm:$0xff]  ;;  %v507_v47 = vadd.f32 %v504_v16, %v416_v35  ;;  %v6700_v61 = vmul.f32 %v4928_v5, %v7387_v36  ;;  %v6708_v11 = vpop.f32.mrf.mxu2 }
 0x330   :  { %v2446_v21 = vrot.slane %v2444_v54, 1  ;;  %v2194_v37 = vmax.f32 %v2192_v27, 0.0  ;;  %v646_v58 = vmul.f32 %v7428_v12, %v5016_v6  ;;  %v1024_v27 = vmul.f32 %v6591_v57, %v4928_v5 }
 0x331   :  { %v1335_v51 = vadd.f32 %v6265_v0, %v1269_v14  ;;  %v434_v50 = vadd.f32 %v431_v59, %v268_v32  ;;  %v1887_v36 = vrot.slane %v6682_v39, 1 }
 0x332   :  { %v2447_v45 = vsel %vm2355_vm1, %v2442_v60, %v2446_v21  ;;  %v2232_v40 = vpack.c.bf16 %v2194_v37, %v2194_v37  ;;  %v2361_v21 = vrot.slane %v2359_v46, 1 }
 0x333   :  { %v1338_v24 = vmax.f32 %v1335_v51, 0.0  ;;  %v7429_v51 = vld [vmem:[#allocation108_spill] sm:$0xff] }
 0x334   :  { %v1147_v4 = vpop.permute.xlu1 %1146  ;;  %v3172_v56 = vpop.f32.mrf.mxu3  ;;  %v2343_v43 = vunpack.c.l.b16 %v2232_v40  ;;  %v510_v40 = vmul.f32 %v7343_v20, %v7396_v63  ;;  %v1290_v20 = vmul.f32 %v6594_v42, %v6624_v55  ;;  %v2362_v63 = vor.u32 %v2361_v21, %v2357_v19 }
 0x335   :  { %v1151_v28 = vmul.f32 %v1147_v4, %v5218_v34  ;;  %v2235_v3 = vpack.c.bf16 %v1338_v24, %v1338_v24  ;;  %v3173_v44 = vadd.f32 %v3172_v56, %v3144_v9  ;;  %v894_v9 = vmul.f32 %v5159_v26, %v7428_v12  ;;  %v7430_v24 = vld [vmem:[#allocation41_spill] sm:$0xff]  ;;  %v7434_v12 = vld [vmem:[#allocation110_spill] sm:$0xff] }
 0x336   :  { %v2344_v53 = vpack.c.b16 %v2343_v43, %v2342_v31  ;;  %v809_v4 = vmul.f32 %v7430_v24, %v5145_v48  ;;  %v649_v56 = vadd.f32 %v646_v58, %v507_v47  ;;  %v7431_v43 = vld [vmem:[#allocation100_spill] sm:$0xff]  ;;  %v513_v59 = vadd.f32 %v510_v40, %v434_v50  ;;  %v7435_v40 = vld [vmem:[#allocation73_spill] sm:$0xff]  ;;  %v6728_v50 = vld [vmem:[#allocation4] ss:$0 sm:$0xff] }
 0x337   :  { %v1154_v52 = vadd.f32 %v1151_v28, %v7427_v23  ;;  %v2353_v13 = vunpack.c.l.b16 %v2235_v3  ;;  %v3201_v29 = vpop.f32.mrf.mxu0  ;;  %v897_v25 = vadd.f32 %v894_v9, %v7429_v51  ;;  %v2375_v46 = vshll.u32 %v7431_v43, 16 }
 0x338   :  { %v6672_v54 = vpop.permute.xlu2 %1236  ;;  %v6678_v60 = vadd.f32 %v3201_v29, %v3173_v44  ;;  %3215 = vmatmul.bf16.gmra.mxu0 %v2344_v53  ;;  %v827_v58 = vmul.f32 %v7434_v12, %v5145_v48  ;;  %v2373_v19 = vshrl.u32 %v7431_v43, 16  ;;  %v1296_v43 = vmul.f32 %v6594_v42, %v6653_v33 }
 0x339   :  { %v1281_v14 = vadd.f32 %v1278_v62, %v1154_v52  ;;  %v2354_v37 = vpack.c.b16 %v2353_v13, %v2353_v13  ;;  %v1027_v2 = vadd.f32 %v1024_v27, %v897_v25  ;;  %v6710_v62 = vpop.f32.mrf.mxu1  ;;  %v812_v27 = vadd.f32 %v809_v4, %v649_v56 }
 0x33a   :  { %v2377_v21 = vrot.slane %v2375_v46, 1  ;;  %v1602_v56 = vmul.f32 %v6536_v22, %v5016_v6 }
 0x33b   :  { %v1347_v57 = vadd.f32 %v6265_v0, %v1281_v14  ;;  %3292 = vmatmul.bf16.gmra.mxu3 %v2447_v45  ;;  %v2364_v28 = vshll.u32 %v2354_v37, 16  ;;  %v7432_v45 = vld [vmem:[#allocation70_spill] sm:$0xff]  ;;  %v1042_v14 = vmul.f32 %v6624_v55, %v4928_v5  ;;  %v1885_v37 = vrot.slane %v6700_v61, 1  ;;  %v7436_v55 = vld [vmem:[#allocation76_spill] sm:$0xff] }
 0x33c   :  { %3239 = vmatmul.bf16.gmra.mxu1 %v6577_v41  ;;  %v6704_v44 = vmul.f32 %v5218_v34, %v7432_v45  ;;  %v7433_v41 = vld [vmem:[#allocation99_spill] sm:$0xff]  ;;  %v6718_v29 = vpop.f32.mrf.mxu3 }
 0x33d   :  { %v1350_v7 = vmax.f32 %v1347_v57, 0.0  ;;  %v1183_v31 = vpop.permute.xlu1 %1182  ;;  %v2366_v3 = vrot.slane %v2364_v28, 1  ;;  %v664_v35 = vmul.f32 %v7433_v41, %v5016_v6  ;;  %v900_v52 = vmul.f32 %v5159_v26, %v7433_v41  ;;  %v7437_v6 = vld [vmem:[#allocation94_spill] sm:$0xff] }
 0x33e   :  { %v1187_v0 = vmul.f32 %v1183_v31, %v5218_v34  ;;  %v2022_v47 = vrot.slane %v6704_v44, 1  ;;  %v6726_v57 = vmul.f32 %v6594_v42, %v7435_v40  ;;  %v6734_v28 = vmul.f32 %v5218_v34, %v7436_v55 }
 0x33f   :  { %v2237_v23 = vpack.c.bf16 %v1350_v7, %v1350_v7  ;;  %v2367_v16 = vsel %vm2355_vm1, %v2362_v63, %v2366_v3  ;;  %v667_v51 = vadd.f32 %v664_v35, %v513_v59  ;;  %v903_v24 = vadd.f32 %v900_v52, %v812_v27  ;;  %v1219_v3 = vpop.permute.xlu0 %1218 }
 0x340   :  { %v1190_v53 = vadd.f32 %v1187_v0, %v1027_v2  ;;  %3258 = vmatmul.bf16.vlgmr.msra.gmra.mxu2 %v2367_v16  ;;  %v3091_v31 = vadd.f32 %v6601_v1, %v6622_v30  ;;  %v2378_v63 = vor.u32 %v2377_v21, %v2373_v19  ;;  %v906_v22 = vmul.f32 %v5159_v26, %v7437_v6  ;;  %v3148_v16 = vpop.f32.mrf.mxu2  ;;  %v7439_v19 = vld [vmem:[#allocation97_spill] sm:$0xff] }
 0x341   :  { %v2370_v13 = vunpack.c.l.b16 %v2237_v23  ;;  %v1707_v9 = vpop.permute.xlu2 %1706  ;;  %v830_v2 = vadd.f32 %v827_v58, %v667_v51  ;;  %v1045_v46 = vadd.f32 %v1042_v14, %v903_v24  ;;  %v1060_v30 = vmul.f32 %v6653_v33, %v4928_v5 }
 0x342   :  { %v1293_v32 = vadd.f32 %v1290_v20, %v1190_v53  ;;  %v1710_v45 = vmul.f32 %v1707_v9, %v5145_v48  ;;  %v2020_v53 = vrot.slane %v6734_v28, 1  ;;  %v1604_v59 = vadd.f32 %v1602_v56, %v6587_v15  ;;  %v7438_v9 = vld [vmem:[#allocation107_spill] sm:$0xff] }
 0x343   :  { %v2371_v25 = vpack.c.b16 %v2370_v13, %v2370_v13  ;;  %v2150_v27 = vmul.f32 %v6594_v42, %v7438_v9  ;;  %v909_v14 = vadd.f32 %v906_v22, %v830_v2  ;;  %v1223_v24 = vmul.f32 %v1219_v3, %v5218_v34  ;;  %v6781_v9 = vpop.f32.mrf.mxu0 }
 0x344   :  { %v1359_v4 = vadd.f32 %v6728_v50, %v1293_v32  ;;  %v1712_v33 = vadd.f32 %v1710_v45, %v1604_v59  ;;  %v912_v55 = vmul.f32 %v5159_v26, %v7439_v19  ;;  %v2155_v2 = vrot.slane %v6726_v57, 1 }
 0x345   :  { %v2380_v7 = vshll.u32 %v2371_v25, 16 }
 0x346   :  { %v1362_v20 = vmax.f32 %v1359_v4, 0.0  ;;  %v1201_v0 = vpop.permute.xlu1 %1200  ;;  %v1063_v4 = vadd.f32 %v1060_v30, %v909_v14 }
 0x347   :  { %v3119_v44 = vpop.f32.mrf.mxu1  ;;  %v1205_v41 = vmul.f32 %v1201_v0, %v5218_v34  ;;  %v2382_v35 = vrot.slane %v2380_v7, 1  ;;  %v2023_v0 = vsel %vm1763_vm0, %v2020_v53, %v2022_v47 }
 0x348   :  { %v3120_v23 = vadd.f32 %v3119_v44, %v3091_v31  ;;  %v2239_v52 = vpack.c.bf16 %v1362_v20, %v1362_v20  ;;  %v1888_v20 = vsel %vm1763_vm0, %v1885_v37, %v1887_v36  ;;  %v1226_v6 = vadd.f32 %v1223_v24, %v1063_v4  ;;  %v6773_v36 = vpop.permute.xlu0 %1091 }
 0x349   :  { %v1208_v12 = vadd.f32 %v1205_v41, %v1045_v46  ;;  %v3177_v58 = vpop.f32.mrf.mxu3  ;;  %v2383_v13 = vsel %vm2355_vm1, %v2378_v63, %v2382_v35  ;;  %v2157_v46 = vrot.slane %v2150_v27, 1  ;;  %v7440_v63 = vld [vmem:[#allocation112_spill] sm:$0xff]  ;;  %v2391_v41 = vshll.u32 %v5806_v38, 16 }
 0x34a   :  { %v3149_v32 = vadd.f32 %v3148_v16, %v3120_v23  ;;  %v1751_v21 = vpop.permute.xlu2 %1750  ;;  %3316 = vmatmul.bf16.vlgmr.msra.gmra.mxu0 %v2383_v13  ;;  %v2386_v51 = vunpack.c.l.b16 %v2239_v52  ;;  %v915_v3 = vadd.f32 %v912_v55, %v7440_v63  ;;  %v1241_v35 = vmul.f32 %v6672_v54, %v5218_v34  ;;  %v7441_v52 = vld [vmem:[#allocation16_spill] sm:$0xff] }
 0x34b   :  { %v1299_v25 = vadd.f32 %v1296_v43, %v1208_v12  ;;  %v1754_v40 = vmul.f32 %v1751_v21, %v5159_v26  ;;  %v2455_v16 = vshll.u32 %v7441_v52, 16  ;;  %v2158_v59 = vsel %vm1763_vm0, %v2155_v2, %v2157_v46 }
 0x34c   :  { %v3178_v15 = vadd.f32 %v3177_v58, %v3149_v32  ;;  %v2387_v31 = vpack.c.b16 %v2386_v51, %v2386_v51  ;;  %v1308_v54 = vmul.f32 %v6594_v42, %v6773_v36  ;;  %v2393_v27 = vrot.slane %v2391_v41, 1 }
 0x34d   :  { %v1365_v56 = vadd.f32 %v6728_v50, %v1299_v25  ;;  %v1756_v7 = vadd.f32 %v1754_v40, %v1712_v33  ;;  %v2389_v51 = vshrl.u32 %v5806_v38, 16  ;;  %v2457_v40 = vrot.slane %v2455_v16, 1 }
 0x34e   :  { %v2396_v47 = vshll.u32 %v2387_v31, 16  ;;  %v2453_v55 = vshrl.u32 %v7441_v52, 16 }
 0x34f   :  { %v1368_v43 = vmax.f32 %v1365_v56, 0.0  ;;  %v1892_v45 = vadd.f32 %v1888_v20, %v1756_v7  ;;  %v1074_v44 = vpop.permute.xlu1 %1073  ;;  %v2394_v19 = vor.u32 %v2393_v27, %v2389_v51  ;;  %v7442_v7 = vld [vmem:[#allocation109_spill] sm:$0xff]  ;;  %v7444_v51 = vld [vmem:[#allocation78_spill] sm:$0xff] }
 0x350   :  { %v1078_v39 = vmul.f32 %v1074_v44, %v4928_v5  ;;  %v1302_v22 = vmul.f32 %v6594_v42, %v1074_v44  ;;  %3263 = vmatmul.bf16.gmra.mxu2 %v2383_v13  ;;  %v2398_v33 = vrot.slane %v2396_v47, 1  ;;  %v2407_v31 = vshll.u32 %v7442_v7, 16 }
 0x351   :  { %v2027_v30 = vadd.f32 %v2023_v0, %v1892_v45  ;;  %v2240_v23 = vpack.c.bf16 %v1368_v43, %v1368_v43  ;;  %v1878_v47 = vmul.f32 %v4928_v5, %v7411_v8  ;;  %v2405_v52 = vshrl.u32 %v7442_v7, 16  ;;  %v6803_v8 = vpop.f32.mrf.mxu1 }
 0x352   :  { %v1081_v12 = vadd.f32 %v1078_v39, %v915_v3  ;;  %v1305_v58 = vadd.f32 %v1302_v22, %v1226_v6  ;;  %v2399_v63 = vsel %vm2355_vm1, %v2394_v19, %v2398_v33  ;;  %v2458_v3 = vor.u32 %v2457_v40, %v2453_v55 }
 0x353   :  { %v2450_v14 = vunpack.c.l.b16 %v2240_v23  ;;  %v2162_v32 = vadd.f32 %v2158_v59, %v2027_v30  ;;  %v2471_v30 = vshll.u32 %v6504_v10, 16  ;;  %v2148_v33 = vmul.f32 %v6594_v42, %v7444_v51 }
 0x354   :  { %v1244_v21 = vadd.f32 %v1241_v35, %v1081_v12  ;;  %v1371_v13 = vadd.f32 %v6728_v50, %v1305_v58  ;;  %v2409_v35 = vrot.slane %v2407_v31, 1  ;;  %v6799_v58 = vpop.f32.mrf.mxu2 }
 0x355   :  { %v2451_v25 = vpack.c.b16 %v2450_v14, %v2450_v14 }
 0x356   :  { %v1311_v24 = vadd.f32 %v1308_v54, %v1244_v21  ;;  %v1374_v4 = vmax.f32 %v1371_v13, 0.0  ;;  %v7443_v54 = vld [vmem:[#allocation24_spill] sm:$0xff]  ;;  %v2473_v21 = vrot.slane %v2471_v30, 1  ;;  %v1884_v13 = vrot.slane %v1878_v47, 1 }
 0x357   :  { %v2460_v56 = vshll.u32 %v2451_v25, 16  ;;  %v2013_v12 = vmul.f32 %v5218_v34, %v7443_v54  ;;  %v2469_v25 = vshrl.u32 %v6504_v10, 16 }
 0x358   :  { %v2241_v46 = vpack.c.bf16 %v1374_v4, %v1374_v4  ;;  %v1703_v20 = vpop.permute.xlu1 %1702  ;;  %v1377_v0 = vadd.f32 %v6728_v50, %v1311_v24 }
 0x359   :  { %v2462_v43 = vrot.slane %v2460_v56, 1  ;;  %v1709_v23 = vmul.f32 %v1703_v20, %v5145_v48  ;;  %v2019_v55 = vrot.slane %v2013_v12, 1  ;;  %v6809_v56 = vpop.f32.mrf.mxu3  ;;  %v2474_v31 = vor.u32 %v2473_v21, %v2469_v25 }
 0x35a   :  { %3321 = vmatmul.bf16.gmra.mxu0 %v2399_v63  ;;  %v2402_v38 = vunpack.c.l.b16 %v2241_v46  ;;  %v1380_v45 = vmax.f32 %v1377_v0, 0.0  ;;  %v2154_v20 = vrot.slane %v2148_v33, 1  ;;  %v1886_v0 = vsel %vm1763_vm0, %v1884_v13, %v1885_v37  ;;  %v1322_v37 = vpop.permute.xlu2 %1321 }
 0x35b   :  { %v3206_v44 = vpop.f32.mrf.mxu0  ;;  %v2463_v41 = vsel %vm2355_vm1, %v2458_v3, %v2462_v43  ;;  %v1711_v40 = vadd.f32 %v1709_v23, %v6560_v18  ;;  %v2196_v18 = vadd.f32 %v6728_v50, %v2162_v32  ;;  %v2021_v3 = vsel %vm1763_vm0, %v2019_v55, %v2020_v53  ;;  %v7445_v43 = vld [vmem:[#allocation17_spill] sm:$0xff] }
 0x35c   :  { %v6790_v6 = vadd.f32 %v3206_v44, %v3178_v15  ;;  %3297 = vmatmul.bf16.gmra.mxu3 %v2463_v41  ;;  %v2403_v39 = vpack.c.b16 %v2402_v38, %v2402_v38  ;;  %v2242_v22 = vpack.c.bf16 %v1380_v45, %v1380_v45  ;;  %v2410_v15 = vor.u32 %v2409_v35, %v2405_v52  ;;  %v3153_v28 = vpop.f32.mrf.mxu2 }
 0x35d   :  { %v3096_v38 = vadd.f32 %v6601_v1, %v7445_v43  ;;  %v2156_v61 = vsel %vm1763_vm0, %v2154_v20, %v2155_v2  ;;  %v1326_v57 = vmul.f32 %v6594_v42, %v1322_v37  ;;  %v2487_v13 = vshll.u32 %v6626_v49, 16  ;;  %v4172_v43 = vld [vmem:[#allocation9 + $0x20] sm:$0xff]  ;;  %v4182_v37 = vld [vmem:[#allocation9 + $0x70] sm:$0xff] }
 0x35e   :  { %v2412_v16 = vshll.u32 %v2403_v39, 16  ;;  %v2466_v59 = vunpack.c.l.b16 %v2242_v22  ;;  %v2198_v39 = vmax.f32 %v2196_v18, 0.0  ;;  %v2485_v25 = vshrl.u32 %v6626_v49, 16  ;;  %v4173_v49 = vld [vmem:[#allocation9 + $0x28] sm:$0xff] }
 0x360   :  { %v2414_v27 = vrot.slane %v2412_v16, 1  ;;  %v2467_v14 = vpack.c.b16 %v2466_v59, %v2466_v59  ;;  %3268 = vmatmul.bf16.gmra.mxu2 %v2399_v63  ;;  %v2234_v16 = vpack.c.bf16 %v2198_v39, %v2198_v39  ;;  %v4190_v39 = vld [vmem:[#allocation9 + $0xb0] sm:$0xff] }
 0x361   :  { %v1747_v48 = vpop.permute.xlu1 %1746 }
 0x362   :  { %v1753_v24 = vmul.f32 %v1747_v48, %v5159_v26  ;;  %v2415_v4 = vsel %vm2355_vm1, %v2410_v15, %v2414_v27  ;;  %v2476_v19 = vshll.u32 %v2467_v14, 16  ;;  %v1096_v26 = vmul.f32 %v6773_v36, %v4928_v5  ;;  %v7446_v5 = vld [vmem:[#allocation111_spill] sm:$0xff] }
 0x363   :  { %v2349_v27 = vunpack.c.l.b16 %v2234_v16  ;;  %v6832_v51 = vpop.f32.mrf.mxu0  ;;  %v2489_v48 = vrot.slane %v2487_v13, 1  ;;  %v4179_v16 = vld [vmem:[#allocation9 + $0x58] sm:$0xff] }
 0x364   :  { %v1755_v7 = vadd.f32 %v1753_v24, %v1711_v40  ;;  %v2478_v46 = vrot.slane %v2476_v19, 1  ;;  %v1099_v36 = vadd.f32 %v1096_v26, %v7446_v5  ;;  %v6844_v26 = vpop.f32.mrf.mxu2 }
 0x365   :  { %v2490_v24 = vor.u32 %v2489_v48, %v2485_v25  ;;  %v4176_v25 = vld [vmem:[#allocation9 + $0x40] sm:$0xff] }
 0x366   :  { %v1891_v63 = vadd.f32 %v1886_v0, %v1755_v7  ;;  %v2479_v10 = vsel %vm2355_vm1, %v2474_v31, %v2478_v46  ;;  %v7447_v31 = vld [vmem:[#allocation18_spill] sm:$0xff] }
 0x367   :  { %v3101_v46 = vadd.f32 %v6601_v1, %v7447_v31 }
 0x368   :  { %v2026_v45 = vadd.f32 %v2021_v3, %v1891_v63  ;;  %v3124_v44 = vpop.f32.mrf.mxu1  ;;  %v4175_v63 = vld [vmem:[#allocation9 + $0x38] sm:$0xff] }
 0x369   :  { %v3125_v41 = vadd.f32 %v3124_v44, %v3096_v38  ;;  %3608 = vmatpush.bf16.msra.mxu1 %v4175_v63  ;;  %v4183_v3 = vld [vmem:[#allocation9 + $0x78] sm:$0xff] }
 0x36a   :  { %3326 = vmatmul.bf16.gmra.mxu0 %v2415_v4  ;;  %v1255_v32 = vpop.permute.xlu1 %1254  ;;  %v2161_v35 = vadd.f32 %v2156_v61, %v2026_v45  ;;  %3622 = vmatpush.bf16.msrb.mxu2 %v4183_v3  ;;  %v4191_v38 = vld [vmem:[#allocation9 + $0xb8] sm:$0xff] }
 0x36b   :  { %v1259_v53 = vmul.f32 %v1255_v32, %v5218_v34  ;;  %v3154_v22 = vadd.f32 %v3153_v28, %v3125_v41  ;;  %v3182_v30 = vpop.f32.mrf.mxu3  ;;  %3636 = vmatpush.bf16.msra.mxu3 %v4191_v38  ;;  %v4171_v45 = vld [vmem:[#allocation9 + $0x18] sm:$0xff]  ;;  %v4169_v28 = vld [vmem:[#allocation9 + $0x8] sm:$0xff] }
 0x36c   :  { %3302 = vmatmul.bf16.gmra.mxu3 %v2479_v10  ;;  %v2195_v47 = vadd.f32 %v6728_v50, %v2161_v35  ;;  %v4174_v10 = vld [vmem:[#allocation9 + $0x30] sm:$0xff] }
 0x36d   :  { %v1262_v23 = vadd.f32 %v1259_v53, %v1099_v36  ;;  %v3183_v2 = vadd.f32 %v3182_v30, %v3154_v22  ;;  %3609 = vmatpush.bf16.msra.mxu1 %v4174_v10  ;;  %v4170_v35 = vld [vmem:[#allocation9 + $0x10] sm:$0xff]  ;;  %v4181_v53 = vld [vmem:[#allocation9 + $0x68] sm:$0xff]  ;;  %v4168_v30 = vld [vmem:[#allocation9] sm:$0xff] }
 0x36e   :  { %v2197_v52 = vmax.f32 %v2195_v47, 0.0  ;;  %3623 = vmatpush.bf16.msrb.mxu2 %v4182_v37  ;;  %v4180_v47 = vld [vmem:[#allocation9 + $0x60] sm:$0xff]  ;;  %v4186_v10 = vld [vmem:[#allocation9 + $0x90] sm:$0xff] }
 0x36f   :  { %v1329_v59 = vadd.f32 %v1326_v57, %v1262_v23  ;;  %3637 = vmatpush.bf16.msra.mxu3 %v4190_v39  ;;  %v4189_v57 = vld [vmem:[#allocation9 + $0xa8] sm:$0xff] }
 0x370   :  { %v2233_v54 = vpack.c.bf16 %v2197_v52, %v2197_v52  ;;  %3273 = vmatmul.bf16.gmra.mxu2 %v2415_v4  ;;  %v6838_v7 = vpop.f32.mrf.mxu1 }
 0x371   :  { %v1383_v12 = vadd.f32 %v6728_v50, %v1329_v59  ;;  %3610 = vmatpush.bf16.msra.mxu1 %v4173_v49 }
 0x372   :  { %v2348_v15 = vunpack.c.l.b16 %v2233_v54  ;;  %3624 = vmatpush.bf16.msrb.mxu2 %v4181_v53  ;;  %v4178_v54 = vld [vmem:[#allocation9 + $0x50] sm:$0xff]  ;;  %v4197_v53 = vld [vmem:[#allocation9 + $0xe8] sm:$0xff] }
 0x373   :  { %v1386_v14 = vmax.f32 %v1383_v12, 0.0  ;;  %v6842_v18 = vpop.f32.mrf.mxu3  ;;  %3638 = vmatpush.bf16.msra.mxu3 %v4189_v57  ;;  %v7448_v12 = vld [vmem:[#allocation19_spill] sm:$0xff] }
 0x374   :  { %v2350_v34 = vpack.c.b16 %v2349_v27, %v2348_v15  ;;  %v3088_v15 = vadd.f32 %v6601_v1, %v7448_v12  ;;  %v4188_v27 = vld [vmem:[#allocation9 + $0xa0] sm:$0xff] }
 0x375   :  { %v2243_v21 = vpack.c.bf16 %v1386_v14, %v1386_v14  ;;  %3611 = vmatpush.bf16.msra.mxu1 %v4172_v43 }
 0x376   :  { %3244 = vmatmul.bf16.gmra.mxu1 %v2350_v34  ;;  %3625 = vmatpush.bf16.msrb.mxu2 %v4180_v47 }
 0x377   :  { %v2482_v42 = vunpack.c.l.b16 %v2243_v21  ;;  %v3117_v21 = vadd.f32 %v6710_v62, %v3088_v15  ;;  %3639 = vmatpush.bf16.msra.mxu3 %v4188_v27  ;;  %v7449_v15 = vld [vmem:[#allocation38_spill] sm:$0xff] }
 0x379   :  { %v2483_v33 = vpack.c.b16 %v2482_v42, %v2482_v42  ;;  %3612 = vmatpush.bf16.msra.mxu1 %v4171_v45  ;;  %v4177_v42 = vld [vmem:[#allocation9 + $0x48] sm:$0xff] }
 0x37a   :  { %3626 = vmatpush.bf16.msrb.mxu2 %v4179_v16  ;;  %v4185_v45 = vld [vmem:[#allocation9 + $0x88] sm:$0xff] }
 0x37b   :  { %v2492_v40 = vshll.u32 %v2483_v33, 16  ;;  %v3146_v33 = vadd.f32 %v6708_v11, %v3117_v21  ;;  %v3093_v11 = vadd.f32 %v6601_v1, %v6651_v17 }
 0x37d   :  { %v2494_v19 = vrot.slane %v2492_v40, 1  ;;  %v3211_v50 = vpop.f32.mrf.mxu0  ;;  %3613 = vmatpush.bf16.msra.mxu1 %v4170_v35  ;;  %v3175_v40 = vadd.f32 %v6718_v29, %v3146_v33  ;;  %v4199_v29 = vld [vmem:[#allocation9 + $0xf8] sm:$0xff] }
 0x37e   :  { %v6836_v55 = vadd.f32 %v3211_v50, %v3183_v2  ;;  %3627 = vmatpush.bf16.msrb.mxu2 %v4178_v54 }
 0x37f   :  { %v2495_v4 = vsel %vm2355_vm1, %v2490_v24, %v2494_v19  ;;  %v4187_v19 = vld [vmem:[#allocation9 + $0x98] sm:$0xff]  ;;  %v3204_v62 = vadd.f32 %v6781_v9, %v3175_v40  ;;  %v4198_v9 = vld [vmem:[#allocation9 + $0xf0] sm:$0xff] }
 0x380   :  { %3331 = vmatmul.bf16.gmra.mxu0 %v2495_v4  ;;  %3640 = vmatpush.bf16.msra.mxu3 %v4187_v19 }
 0x381   :  { %3614 = vmatpush.bf16.msra.mxu1 %v4169_v28 }
 0x382   :  { %3628 = vmatpush.bf16.msrb.mxu2 %v4177_v42 }
 0x384   :  { %3641 = vmatpush.bf16.msra.mxu3 %v4186_v10  ;;  %v4192_v10 = vld [vmem:[#allocation9 + $0xc0] sm:$0xff] }
 0x385   :  { %v6848_v5 = vpop.f32.mrf.mxu0  ;;  %3615 = vmatpush.bf16.msra.mxu1 %v4168_v30 }
 0x386   :  { %3629 = vmatpush.bf16.msrb.mxu2 %v4176_v25 }
 0x388   :  { %3642 = vmatpush.bf16.msra.mxu3 %v4185_v45 }
 0x389   :  { %v3129_v20 = vpop.f32.mrf.mxu1  ;;  %3650 = vmatpush.bf16.msrb.mxu1 %v4199_v29 }
 0x38a   :  { %v3130_v0 = vadd.f32 %v3129_v20, %v3101_v46 }
 0x38d   :  { %3651 = vmatpush.bf16.msrb.mxu1 %v4198_v9 }
 0x391   :  { %v6846_v41 = vpop.f32.mrf.mxu1  ;;  %3652 = vmatpush.bf16.msrb.mxu1 %v4197_v53 }
 0x399   :  { %v3230_v23 = vpop.f32.mrf.mxu1 }
 0x39a   :  { %v3231_v24 = vadd.f32 %v3230_v23, %v6678_v60  ;;  %v3122_v60 = vadd.f32 %v6803_v8, %v3093_v11  ;;  %v4196_v23 = vld [vmem:[#allocation9 + $0xe0] sm:$0xff] }
 0x39b   :  { %3653 = vmatpush.bf16.msrb.mxu1 %v4196_v23 }
 0x39c   :  { %v3151_v37 = vadd.f32 %v6799_v58, %v3122_v60 }
 0x39e   :  { %v3187_v44 = vpop.f32.mrf.mxu3  ;;  %v3180_v30 = vadd.f32 %v6809_v56, %v3151_v37 }
 0x3a0   :  { %v3209_v58 = vadd.f32 %v6832_v51, %v3180_v30 }
 0x3a1   :  { %v3232_v13 = vpop.f32.mrf.mxu1 }
 0x3a2   :  { %v3233_v20 = vadd.f32 %v3232_v13, %v3204_v62  ;;  %v4193_v62 = vld [vmem:[#allocation9 + $0xc8] sm:$0xff] }
 0x3a6   :  { %v6850_v22 = vpop.f32.mrf.mxu3 }
 0x3a9   :  { %v3235_v46 = vpop.f32.mrf.mxu1 }
 0x3aa   :  { %v3158_v61 = vpop.f32.mrf.mxu2  ;;  %v3236_v28 = vadd.f32 %v3235_v46, %v6790_v6  ;;  %v3098_v6 = vadd.f32 %v6601_v1, %v7449_v15 }
 0x3ab   :  { %v3159_v32 = vadd.f32 %v3158_v61, %v3130_v0 }
 0x3ac   :  { %v3127_v56 = vadd.f32 %v6838_v7, %v3098_v6 }
 0x3ad   :  { %v3188_v36 = vadd.f32 %v3187_v44, %v3159_v32 }
 0x3ae   :  { %v3288_v14 = vpop.f32.mrf.mxu3  ;;  %v3156_v51 = vadd.f32 %v6844_v26, %v3127_v56 }
 0x3b0   :  { %v3185_v46 = vadd.f32 %v6842_v18, %v3156_v51 }
 0x3b1   :  { %v3237_v17 = vpop.f32.mrf.mxu1 }
 0x3b2   :  { %v6854_v59 = vpop.f32.mrf.mxu2 }
 0x3b5   :  { %v3216_v2 = vpop.f32.mrf.mxu0 }
 0x3b6   :  { %v6852_v52 = vadd.f32 %v3216_v2, %v3188_v36  ;;  %v3290_v31 = vpop.f32.mrf.mxu3  ;;  %v4184_v36 = vld [vmem:[#allocation9 + $0x80] sm:$0xff]  ;;  %v3238_v2 = vadd.f32 %v3237_v17, %v3209_v58 }
 0x3b7   :  { %3643 = vmatpush.bf16.msra.mxu3 %v4184_v36 }
 0x3b9   :  { %v3240_v21 = vpop.f32.mrf.mxu1 }
 0x3bd   :  { %v6858_v34 = vpop.f32.mrf.mxu0 }
 0x3be   :  { %v3293_v61 = vpop.f32.mrf.mxu3 }
 0x3c3   :  { %v3259_v48 = vpop.f32.mrf.mxu2 }
 0x3c4   :  { %v3260_v50 = vadd.f32 %v3259_v48, %v3231_v24  ;;  %v4194_v48 = vld [vmem:[#allocation9 + $0xd0] sm:$0xff] }
 0x3c6   :  { %v3289_v0 = vadd.f32 %v3288_v14, %v3260_v50  ;;  %v3295_v54 = vpop.f32.mrf.mxu3  ;;  %v4195_v14 = vld [vmem:[#allocation9 + $0xd8] sm:$0xff] }
 0x3c7   :  { %v3317_v4 = vpop.f32.mrf.mxu0  ;;  %3654 = vmatpush.bf16.msrb.mxu1 %v4195_v14 }
 0x3c8   :  { %v3318_v3 = vadd.f32 %v3317_v4, %v3289_v0  ;;  %v3241_v4 = vadd.f32 %v3240_v21, %v6836_v55  ;;  %v3242_v0 = vpop.f32.mrf.mxu1 }
 0x3ca   :  { %v3337_v32 = vmax.f32 %v3318_v3, 0.0 }
 0x3cb   :  { %v3261_v63 = vpop.f32.mrf.mxu2  ;;  %3655 = vmatpush.bf16.msrb.mxu1 %v4194_v48  ;;  %v3666_v48 = vld [vmem:[%s6908_s10] sm:$0xff] }
 0x3cc   :  { %v3262_v49 = vadd.f32 %v3261_v63, %v3233_v20  ;;  %v3214_v63 = vadd.f32 %v6848_v5, %v3185_v46 }
 0x3ce   :  { %v3291_v43 = vadd.f32 %v3290_v31, %v3262_v49  ;;  %v3243_v26 = vadd.f32 %v3242_v0, %v3214_v63 }
 0x3cf   :  { %v3319_v38 = vpop.f32.mrf.mxu0  ;;  %3656 = vmatpush.bf16.msrb.mxu1 %v4193_v62  ;;  %v3667_v62 = vld [vmem:[%s6908_s10 + $0x8] sm:$0xff] }
 0x3d0   :  { %v3320_v44 = vadd.f32 %v3319_v38, %v3291_v43  ;;  %v7450_v38 = vld [vmem:[#allocation49_spill] sm:$0xff] }
 0x3d1   :  { %v3103_v18 = vadd.f32 %v6601_v1, %v7450_v38 }
 0x3d2   :  { %v3338_v35 = vmax.f32 %v3320_v44, 0.0 }
 0x3d3   :  { %v3264_v39 = vpop.f32.mrf.mxu2  ;;  %3657 = vmatpush.bf16.msrb.mxu1 %v4192_v10  ;;  %v3132_v44 = vadd.f32 %v6846_v41, %v3103_v18 }
 0x3d4   :  { %v3345_v8 = vpack.c.bf16 %v3338_v35, %v3337_v32  ;;  %v3265_v47 = vadd.f32 %v3264_v39, %v3236_v28 }
 0x3d5   :  { %v3161_v5 = vadd.f32 %v6854_v59, %v3132_v44 }
 0x3d6   :  { %3616 = vmatmul.bf16.vlgmr.msra.gmra.mxu1 %v3345_v8  ;;  %v3294_v16 = vadd.f32 %v3293_v61, %v3265_v47 }
 0x3d7   :  { %v3322_v57 = vpop.f32.mrf.mxu0  ;;  %v3190_v17 = vadd.f32 %v6850_v22, %v3161_v5 }
 0x3d8   :  { %v3323_v13 = vadd.f32 %v3322_v57, %v3294_v16 }
 0x3d9   :  { %v3219_v36 = vadd.f32 %v6858_v34, %v3190_v17  ;;  %v4410_v34 = vld [vmem:[#allocation10] ss:$0 sm:$0xff] }
 0x3da   :  { %v3339_v40 = vmax.f32 %v3323_v13, 0.0 }
 0x3db   :  { %v3266_v12 = vpop.f32.mrf.mxu2 }
 0x3dc   :  { %v3267_v27 = vadd.f32 %v3266_v12, %v3238_v2 }
 0x3de   :  { %v3296_v42 = vadd.f32 %v3295_v54, %v3267_v27 }
 0x3df   :  { %v3324_v33 = vpop.f32.mrf.mxu0  ;;  %v3298_v19 = vpop.f32.mrf.mxu3 }
 0x3e0   :  { %v3325_v25 = vadd.f32 %v3324_v33, %v3296_v42 }
 0x3e2   :  { %v3340_v24 = vmax.f32 %v3325_v25, 0.0 }
 0x3e3   :  { %v3269_v50 = vpop.f32.mrf.mxu2 }
 0x3e4   :  { %v3346_v31 = vpack.c.bf16 %v3340_v24, %v3339_v40  ;;  %v3270_v7 = vadd.f32 %v3269_v50, %v3241_v4 }
 0x3e6   :  { %3630 = vmatmul.bf16.vlgmr.msrb.gmra.mxu2 %v3346_v31  ;;  %v3299_v11 = vadd.f32 %v3298_v19, %v3270_v7 }
 0x3e7   :  { %v3327_v20 = vpop.f32.mrf.mxu0  ;;  %v3300_v60 = vpop.f32.mrf.mxu3 }
 0x3e8   :  { %v3328_v3 = vadd.f32 %v3327_v20, %v3299_v11 }
 0x3ea   :  { %v3341_v9 = vmax.f32 %v3328_v3, 0.0 }
 0x3eb   :  { %v3271_v49 = vpop.f32.mrf.mxu2 }
 0x3ec   :  { %v3272_v29 = vadd.f32 %v3271_v49, %v3243_v26 }
 0x3ee   :  { %v3301_v55 = vadd.f32 %v3300_v60, %v3272_v29 }
 0x3ef   :  { %v3329_v43 = vpop.f32.mrf.mxu0  ;;  %v3303_v39 = vpop.f32.mrf.mxu3 }
 0x3f0   :  { %v3330_v45 = vadd.f32 %v3329_v43, %v3301_v55 }
 0x3f2   :  { %v3342_v61 = vmax.f32 %v3330_v45, 0.0 }
 0x3f3   :  { %v3245_v37 = vpop.f32.mrf.mxu1  ;;  %v3274_v32 = vpop.f32.mrf.mxu2 }
 0x3f4   :  { %v3347_v35 = vpack.c.bf16 %v3342_v61, %v3341_v9  ;;  %v3246_v28 = vadd.f32 %v3245_v37, %v6852_v52 }
 0x3f6   :  { %3644 = vmatmul.bf16.vlgmr.msra.gmra.mxu3 %v3347_v35  ;;  %v3275_v41 = vadd.f32 %v3274_v32, %v3246_v28 }
 0x3f7   :  { %v3305_v23 = vpop.f32.mrf.mxu3 }
 0x3f8   :  { %v3304_v57 = vadd.f32 %v3303_v39, %v3275_v41 }
 0x3fb   :  { %v3247_v8 = vpop.f32.mrf.mxu1  ;;  %v3276_v53 = vpop.f32.mrf.mxu2 }
 0x3fc   :  { %v3248_v1 = vadd.f32 %v3247_v8, %v3219_v36 }
 0x3fd   :  { %v3332_v30 = vpop.f32.mrf.mxu0 }
 0x3fe   :  { %v3277_v47 = vadd.f32 %v3276_v53, %v3248_v1  ;;  %v3333_v58 = vadd.f32 %v3332_v30, %v3304_v57 }
 0x400   :  { %v3306_v59 = vadd.f32 %v3305_v23, %v3277_v47  ;;  %v3343_v54 = vmax.f32 %v3333_v58, 0.0 }
 0x405   :  { %v3334_v2 = vpop.f32.mrf.mxu0 }
 0x406   :  { %v3335_v16 = vadd.f32 %v3334_v2, %v3306_v59 }
 0x408   :  { %v3344_v12 = vmax.f32 %v3335_v16, 0.0 }
 0x40a   :  { %v3348_v22 = vpack.c.bf16 %v3344_v12, %v3343_v54 }
 0x40c   :  { %3658 = vmatmul.bf16.vlgmr.msrb.gmra.mxu1 %v3348_v22 }
 0x453   :  { %v3617_v15 = vpop.f32.mrf.mxu1 }
 0x454   :  { %v3618_v14 = vadd.f32 %v4410_v34, %v3617_v15 }
 0x45b   :  { %v3619_v6 = vpop.f32.mrf.mxu1 }
 0x45c   :  { %v3620_v25 = vadd.f32 %v4410_v34, %v3619_v6 }
 0x469   :  { %v3631_v52 = vpop.f32.mrf.mxu2 }
 0x46a   :  { %v3632_v21 = vadd.f32 %v3631_v52, %v3618_v14 }
 0x471   :  { %v3633_v33 = vpop.f32.mrf.mxu2 }
 0x472   :  { %v3634_v24 = vadd.f32 %v3633_v33, %v3620_v25 }
 0x479   :  { %v3645_v27 = vpop.f32.mrf.mxu3 }
 0x47a   :  { %v3646_v56 = vadd.f32 %v3645_v27, %v3632_v21 }
 0x481   :  { %v3647_v40 = vpop.f32.mrf.mxu3 }
 0x482   :  { %v3648_v50 = vadd.f32 %v3647_v40, %v3634_v24 }
 0x489   :  { %v3659_v13 = vpop.f32.mrf.mxu1 }
 0x48a   :  { %v3660_v42 = vadd.f32 %v3659_v13, %v3646_v56 }
 0x48c   :  { %v3664_v51 = vmul.f32 5.656854, %v3660_v42 }
 0x48e   :  { %v3668_v19 = vadd.f32 %v3666_v48, %v3664_v51 }
 0x490   :  { %3670 = vst [vmem:[%s6909_s11] sm:$0xff] %v3668_v19 }
 0x491   :  { %v3661_v4 = vpop.f32.mrf.mxu1 }
 0x492   :  { %v3662_v31 = vadd.f32 %v3661_v4, %v3648_v50 }
 0x494   :  { %v3665_v46 = vmul.f32 5.656854, %v3662_v31 }
 0x496   :  { %v3669_v7 = vadd.f32 %v3667_v62, %v3665_v46 }
 0x498   :  { %3671 = vst [vmem:[%s6909_s11 + $0x8] sm:$0xff] %v3669_v7 }
 0x499   :  { %3676 = vsyncpa [#allocation3], 1 }
 0x49a   :  { %3677 = vsyncpa [#allocation5], 1 }
 0x49b   :  { %3678 = vsyncpa [#allocation8], 1 }
 0x49c   :  { %3679 = vsyncpa [#allocation11], 1 }

</bundles_post_ra>
